<compile_context>
chip_gen: v5e
topology: v5e:2x2
jax: 0.10.0
libtpu: 0.0.40
codegen_flags: <defaults>
</compile_context>

<pallas_src>
import functools

import jax
import jax.numpy as jnp
from jax.experimental import pallas as pl
from jax.experimental.pallas import tpu as pltpu


def _round_up(n, m):
    return (n + m - 1) // m * m


# ---------------------------------------------------------------------------
# Exact (erf-based) GELU, matching torch.nn.GELU() default.
# ---------------------------------------------------------------------------
_ERF_BOUND = 3.832506856900711


def _erf_f32(x):
    x = jnp.clip(x, -_ERF_BOUND, _ERF_BOUND)
    x2 = x * x
    p = jnp.float32(-2.72614225801306e-10)
    p = p * x2 + jnp.float32(2.77068142495902e-08)
    p = p * x2 + jnp.float32(-2.10102402082508e-06)
    p = p * x2 + jnp.float32(-5.69250639462346e-05)
    p = p * x2 + jnp.float32(-7.34990630326855e-04)
    p = p * x2 + jnp.float32(-2.95459980854025e-03)
    p = p * x2 + jnp.float32(-1.60960333262415e-02)
    p = p * x
    q = jnp.float32(-1.45660718464996e-05)
    q = q * x2 + jnp.float32(-2.13374055278905e-04)
    q = q * x2 + jnp.float32(-1.68282697438203e-03)
    q = q * x2 + jnp.float32(-7.37332916720468e-03)
    q = q * x2 + jnp.float32(-1.42647390514189e-02)
    # p / q via EUP approximate reciprocal (separate VLIW slot, ~1e-5 rel).
    return p * pl.reciprocal(q, approx=True)


def _gelu(x):
    return jnp.float32(0.5) * x * (
        jnp.float32(1.0) + _erf_f32(x * jnp.float32(0.7071067811865476)))


def _pooled_gelu_max(slices):
    """max_g GELU(y_g) via unimodality (GELU has a single minimum), so the
    phase max only needs GELU at the phase-wise max and min: 3 GELUs/element
    instead of (phases+1)."""
    ymax = slices[0]
    ymin = slices[0]
    for s in slices[1:]:
        ymax = jnp.maximum(ymax, s)
        ymin = jnp.minimum(ymin, s)
    return jnp.maximum(_gelu(ymax), _gelu(ymin))


# ---------------------------------------------------------------------------
# Fully fused kernel: conv block 1 -> conv block 2 (in-VMEM im2col) ->
# channel-first flatten (folded into the MLP-0 weight) -> MLP head.
# ---------------------------------------------------------------------------
def _fused_kernel(*refs, n_mlp, n_phase, ppad1, conv2_offsets, l2,
                  pool_offsets, l3):
    (patches_ref, w1c_ref, b1c_ref, w2c_ref, b2c_ref,
     w1hat_ref, b1m_ref) = refs[:7]
    rest = refs[7:7 + 2 * (n_mlp - 1)]
    out_ref = refs[7 + 2 * (n_mlp - 1)]
    feat1_scr = refs[-2]          # (C1p, Ppad1)
    y2_scr = refs[-1]             # (C2, L2)

    # ---- Conv block 1: all pool-window phases in ONE lane-dense matmul. ----
    y1 = jnp.dot(w1c_ref[...], patches_ref[0],
                 preferred_element_type=jnp.float32) + b1c_ref[...]
    # MaxPool3d(2) over the 8 phases = lane-aligned static slices + max,
    # GELU via unimodality, then the extra forward() GELU.
    phase_slices = [y1[:, g * ppad1:(g + 1) * ppad1] for g in range(n_phase)]
    feat1_scr[...] = _gelu(_pooled_gelu_max(phase_slices))

    # ---- Conv block 2: im2col from the VMEM-resident feature map via
    #      static lane-offset loads, then a single matmul. -------------------
    patches2 = jnp.concatenate(
        [feat1_scr[:, s:s + l2] for s in conv2_offsets], axis=0)
    y2_scr[...] = jnp.dot(w2c_ref[...], patches2,
                          preferred_element_type=jnp.float32) + b2c_ref[...]

    # ---- MaxPool3d(2) of block 2 via shifted lane windows + unimodality. ---
    pool_slices = [y2_scr[:, s:s + l3] for s in pool_offsets]
    feat2 = _gelu(_pooled_gelu_max(pool_slices))          # (C2, L3)

    # ---- MLP layer 0: the channel-first flatten/gather is pre-folded into
    #      w1hat (C2, L3, D1); one batched contraction + channel sum. --------
    zb = jnp.einsum('cql,clj->cqj', feat2[:, None, :], w1hat_ref[...],
                    preferred_element_type=jnp.float32)   # (C2, 1, D1)
    z = jnp.sum(zb, axis=0) + b1m_ref[...]                # (1, D1)
    if n_mlp > 1:
        z = _gelu(z)
        # TODO(synk): nn.Dropout(p=0.2) between MLP layers is an eval-mode
        # identity here (no stochastic masking).
    for i in range(n_mlp - 1):
        w = rest[2 * i][...]
        bb = rest[2 * i + 1][...]
        z = jnp.dot(z, w, preferred_element_type=jnp.float32) + bb
        if i < n_mlp - 2:
            z = _gelu(z)              # hidden layers only; last layer linear
    out_ref[0] = z


# ---------------------------------------------------------------------------
# Glue (pure data movement): stage-1 im2col, columns grouped by the 2x2x2
# pool-window phase, padded to a lane-dense (KC, 8*Ppad1) layout.
# ---------------------------------------------------------------------------
def _im2col_stage1(x, K, ppad1):
    B, C, D, H, W = x.shape
    OD, OH, OW = D - K + 1, H - K + 1, W - K + 1
    PD, PH, PW = OD // 2, OH // 2, OW // 2
    cols = []
    for kd in range(K):
        for kh in range(K):
            for kw in range(K):
                cols.append(x[:, :, kd:kd + OD, kh:kh + OH, kw:kw + OW])
    pat = jnp.stack(cols, axis=2)                  # (B, C, K^3, OD, OH, OW)
    KC = C * K * K * K
    pat = pat.reshape(B, KC, OD, OH, OW)           # kc = c*K^3 + kd*K^2+kh*K+kw
    pat = pat[:, :, :2 * PD, :2 * PH, :2 * PW]     # MaxPool3d floor behaviour
    pat = pat.reshape(B, KC, PD, 2, PH, 2, PW, 2)
    pat = pat.transpose(0, 1, 3, 5, 7, 2, 4, 6)    # (B, KC, dd,dh,dw, PD,PH,PW)
    P1 = PD * PH * PW
    pat = pat.reshape(B, KC, 8, P1)
    pat = jnp.pad(pat, ((0, 0), (0, 0), (0, 0), (0, ppad1 - P1)))
    return pat.reshape(B, KC, 8 * ppad1), (PD, PH, PW)


# ---------------------------------------------------------------------------
# Parameter construction (deterministic, synthetic) and forward pass.
# Conv weights mirror torch layout (Cout, Cin, kD, kH, kW); conv bias (Cout,1);
# MLP weights (Din, Dout); MLP bias (1, Dout).
# ---------------------------------------------------------------------------
def init_params(key, conv_dims, mlp_dims, K):
    conv_params, mlp_params = [], []
    for i in range(len(conv_dims) - 1):
        cin, cout = conv_dims[i], conv_dims[i + 1]
        key, kw, kb = jax.random.split(key, 3)
        fan_in = float(cin * K * K * K)
        w = jax.random.normal(kw, (cout, cin, K, K, K), jnp.float32) / jnp.sqrt(fan_in)
        b = 0.01 * jax.random.normal(kb, (cout, 1), jnp.float32)
        conv_params.append((w, b))
    for i in range(len(mlp_dims) - 1):
        din, dout = mlp_dims[i], mlp_dims[i + 1]
        key, kw, kb = jax.random.split(key, 3)
        w = jax.random.normal(kw, (din, dout), jnp.float32) / jnp.sqrt(float(din))
        b = 0.01 * jax.random.normal(kb, (1, dout), jnp.float32)
        mlp_params.append((w, b))
    return conv_params, mlp_params


def mrisubnet_forward(x, conv_params, mlp_params, K):
    # x: (1, B, D, H, W) -> squeeze(0), unsqueeze channel -> (B, 1, D, H, W)
    x = jnp.squeeze(x, axis=0).astype(jnp.float32)[:, None]
    B = x.shape[0]

    # TODO(synk): the fused kernel is specialised to exactly two conv blocks
    # (the configuration exercised here); deeper stacks would need a
    # standalone conv-block kernel for the leading blocks.
    assert len(conv_params) == 2
    assert len(mlp_params) >= 1

    (w1c, b1c), (w2c, b2c) = conv_params
    C1, Cin = w1c.shape[0], w1c.shape[1]
    C2 = w2c.shape[0]
    n_mlp = len(mlp_params)

    # ---- static geometry ---------------------------------------------------
    D_, H_, W_ = x.shape[2], x.shape[3], x.shape[4]
    O1 = (D_ - K + 1, H_ - K + 1, W_ - K + 1)
    S1 = tuple(o // 2 for o in O1)                 # pooled dims after block 1
    st = (S1[1] * S1[2], S1[2], 1)                 # feat1 spatial flatten strides
    O2 = tuple(s - K + 1 for s in S1)              # conv2 output dims
    P2 = tuple(o // 2 for o in O2)                 # pooled dims after block 2
    assert min(O2) >= 1 and min(P2) >= 1

    pool_offsets = tuple(dd * st[0] + dh * st[1] + dw
                         for dd in range(2) for dh in range(2) for dw in range(2))
    conv2_offsets = tuple(kd * st[0] + kh * st[1] + kw
                          for kd in range(K) for kh in range(K) for kw in range(K))

    def pool_lane(pa, pb, pc):
        return 2 * pa * st[0] + 2 * pb * st[1] + 2 * pc

    l3 = _round_up(pool_lane(P2[0] - 1, P2[1] - 1, P2[2] - 1) + 1, 128)
    l2 = _round_up(max(pool_offsets) + l3, 128)
    P1 = S1[0] * S1[1] * S1[2]
    ppad1 = _round_up(max(P1, max(conv2_offsets) + l2), 128)

    # ---- stage-1 im2col (XLA glue, pure data movement) ----------------------
    patches1, s1_check = _im2col_stage1(x, K, ppad1)
    assert s1_check == S1
    KC1 = Cin * K ** 3

    # ---- parameter re-layout (done once in XLA; zero padding is exact) -----
    c1p = _round_up(C1, 8)
    w1c_f = jnp.zeros((c1p, KC1), jnp.float32).at[:C1].set(w1c.reshape(C1, -1))
    b1c_f = jnp.zeros((c1p, 1), jnp.float32).at[:C1].set(b1c)
    # conv2 weight columns: (kd,kh,kw)-major, padded-channel minor — matches
    # the in-kernel patches2 concat order.
    w2c_r = jnp.transpose(w2c, (0, 2, 3, 4, 1))            # (C2, K,K,K, C1)
    w2c_r = jnp.pad(w2c_r, ((0, 0),) * 4 + ((0, c1p - C1),))
    w2c_f = w2c_r.reshape(C2, K ** 3 * c1p)
    b2c_f = b2c.reshape(C2, 1)

    # MLP layer 0: scatter the rows of W1 onto the pooled-output lane
    # positions (channel-first flatten order), so the kernel consumes the
    # (C2, L3) feature tile directly — no in-kernel flatten/gather.
    w1m, b1m = mlp_params[0]
    d1 = w1m.shape[1]
    n_flat = C2 * P2[0] * P2[1] * P2[2]
    assert w1m.shape[0] == n_flat, (w1m.shape, n_flat)
    d_last = mlp_params[-1][0].shape[1]
    d_pad = _round_up(d_last, 128)                 # lane-dense final store
    d1p = d_pad if n_mlp == 1 else d1
    w1m_p = jnp.pad(w1m.astype(jnp.float32), ((0, 0), (0, d1p - d1)))
    b1m_p = jnp.pad(b1m.astype(jnp.float32), ((0, 0), (0, d1p - d1)))
    w1_r = w1m_p.reshape(C2, P2[0], P2[1], P2[2], d1p)
    w1hat = jnp.zeros((C2, l3, d1p), jnp.float32)
    for pa in range(P2[0]):
        for pb in range(P2[1]):
            for pc in range(P2[2]):
                w1hat = w1hat.at[:, pool_lane(pa, pb, pc), :].set(
                    w1_r[:, pa, pb, pc, :])

    # Remaining MLP layers; the last one is lane-padded to 128 so the final
    # store is unmasked (sliced back in XLA below).
    rest = []
    for i, (w, bb) in enumerate(mlp_params[1:]):
        w = w.astype(jnp.float32)
        bb = bb.astype(jnp.float32)
        if i == n_mlp - 2:
            w = jnp.pad(w, ((0, 0), (0, d_pad - w.shape[1])))
            bb = jnp.pad(bb, ((0, 0), (0, d_pad - bb.shape[1])))
        rest.append((w, bb))

    operands = [patches1, w1c_f, b1c_f, w2c_f, b2c_f, w1hat, b1m_p]
    in_specs = [
        pl.BlockSpec((1, KC1, 8 * ppad1), lambda b: (b, 0, 0)),
        pl.BlockSpec(w1c_f.shape, lambda b: (0, 0)),
        pl.BlockSpec(b1c_f.shape, lambda b: (0, 0)),
        pl.BlockSpec(w2c_f.shape, lambda b: (0, 0)),
        pl.BlockSpec(b2c_f.shape, lambda b: (0, 0)),
        pl.BlockSpec(w1hat.shape, lambda b: (0, 0, 0)),
        pl.BlockSpec(b1m_p.shape, lambda b: (0, 0)),
    ]
    for (w, bb) in rest:
        operands += [w, bb]
        in_specs += [pl.BlockSpec(w.shape, lambda b: (0, 0)),
                     pl.BlockSpec(bb.shape, lambda b: (0, 0))]

    kernel = functools.partial(
        _fused_kernel, n_mlp=n_mlp, n_phase=8, ppad1=ppad1,
        conv2_offsets=conv2_offsets, l2=l2, pool_offsets=pool_offsets, l3=l3)

    flops = 2 * B * (c1p * KC1 * 8 * ppad1
                     + C2 * (K ** 3) * c1p * l2
                     + C2 * l3 * d1p
                     + sum(w.size for w, _ in rest))
    transc = B * 3 * (c1p * ppad1 + C2 * l3)

    out = pl.pallas_call(
        kernel,
        out_shape=jax.ShapeDtypeStruct((B, 1, d_pad), jnp.float32),
        grid=(B,),
        in_specs=in_specs,
        out_specs=pl.BlockSpec((1, 1, d_pad), lambda b: (b, 0, 0)),
        scratch_shapes=[pltpu.VMEM((c1p, ppad1), jnp.float32),
                        pltpu.VMEM((C2, l2), jnp.float32)],
        compiler_params=pltpu.CompilerParams(
            dimension_semantics=("parallel",)),
        cost_estimate=pl.CostEstimate(
            flops=flops, transcendentals=transc,
            bytes_accessed=4 * (sum(int(op.size) for op in operands)
                                + B * d_pad)),
    )(*operands)
    return out[:, 0, :d_last]


if __name__ == "__main__":
    # Small configuration consistent with the module:
    #   conv_dims=[1, 4, 8], kernel=3, input spatial 16^3
    #   16 -conv3-> 14 -pool-> 7 -conv3-> 5 -pool-> 2 => flatten = 8*2*2*2 = 64
    conv_dims = [1, 4, 8]
    mlp_dims = [64, 32, 8]
    if len(mlp_dims) == 1:                     # mirror module __init__
        mlp_dims = [conv_dims[-1]] + mlp_dims
    conv_kernel_size = 3

    key = jax.random.PRNGKey(0)
    key, kx = jax.random.split(key)
    x = jax.random.normal(kx, (1, 2, 16, 16, 16), jnp.float32)   # (1, B, D, H, W)

    conv_params, mlp_params = init_params(key, conv_dims, mlp_dims,
                                          conv_kernel_size)

    fwd = jax.jit(mrisubnet_forward, static_argnums=(3,))
    out = fwd(x, conv_params, mlp_params, conv_kernel_size)
    out = jax.block_until_ready(out)

    assert out.shape == (2, mlp_dims[-1]), out.shape
    assert bool(jnp.all(jnp.isfinite(out)))
    print("KERNEL_OK")
</pallas_src>

<mosaic_0001>
module attributes {stable_mosaic.version = 11 : i64} {
  func.func @_fused_kernel(%arg0: i32, %arg1: memref<1x27x3072xf32, #tpu.memory_space<vmem>>, %arg2: memref<8x27xf32, #tpu.memory_space<vmem>>, %arg3: memref<8x1xf32, #tpu.memory_space<vmem>>, %arg4: memref<8x216xf32, #tpu.memory_space<vmem>>, %arg5: memref<8x1xf32, #tpu.memory_space<vmem>>, %arg6: memref<8x128x32xf32, #tpu.memory_space<vmem>>, %arg7: memref<1x32xf32, #tpu.memory_space<vmem>>, %arg8: memref<32x128xf32, #tpu.memory_space<vmem>>, %arg9: memref<1x128xf32, #tpu.memory_space<vmem>>, %arg10: memref<1x1x128xf32, #tpu.memory_space<vmem>>, %arg11: memref<8x384xf32, #tpu.memory_space<vmem>>, %arg12: memref<8x256xf32, #tpu.memory_space<vmem>>) attributes {dimension_semantics = [#tpu.dimension_semantics<parallel>], iteration_bounds = array<i64: 2>, scalar_prefetch = 0 : i64, scratch_operands = 2 : i64, tpu.core_type = #tpu.core_type<tc>, window_params = [{transform_indices = @transform_0, window_bounds = array<i64: 1, 27, 3072>}, {pipeline_mode = #tpu.pipeline_mode<synchronous>, transform_indices = @transform_1, window_bounds = array<i64: 8, 27>}, {pipeline_mode = #tpu.pipeline_mode<synchronous>, transform_indices = @transform_2, window_bounds = array<i64: 8, 1>}, {pipeline_mode = #tpu.pipeline_mode<synchronous>, transform_indices = @transform_3, window_bounds = array<i64: 8, 216>}, {pipeline_mode = #tpu.pipeline_mode<synchronous>, transform_indices = @transform_4, window_bounds = array<i64: 8, 1>}, {pipeline_mode = #tpu.pipeline_mode<synchronous>, transform_indices = @transform_5, window_bounds = array<i64: 8, 128, 32>}, {pipeline_mode = #tpu.pipeline_mode<synchronous>, transform_indices = @transform_6, window_bounds = array<i64: 1, 32>}, {pipeline_mode = #tpu.pipeline_mode<synchronous>, transform_indices = @transform_7, window_bounds = array<i64: 32, 128>}, {pipeline_mode = #tpu.pipeline_mode<synchronous>, transform_indices = @transform_8, window_bounds = array<i64: 1, 128>}, {transform_indices = @transform_9, window_bounds = array<i64: 1, 1, 128>}]} {
    %c0 = arith.constant 0 : index
    %c0_0 = arith.constant 0 : index
    %0 = vector.load %arg2[%c0, %c0_0] : memref<8x27xf32, #tpu.memory_space<vmem>>, vector<8x27xf32>
    %c0_1 = arith.constant 0 : index
    %c0_2 = arith.constant 0 : index
    %c0_3 = arith.constant 0 : index
    %1 = vector.load %arg1[%c0_1, %c0_2, %c0_3] : memref<1x27x3072xf32, #tpu.memory_space<vmem>>, vector<1x27x3072xf32>
    %2 = vector.shape_cast %1 : vector<1x27x3072xf32> to vector<27x3072xf32>
    %cst = arith.constant dense<0.000000e+00> : vector<8x3072xf32>
    %3 = tpu.matmul %0, %2, %cst {dimension_numbers = #tpu.dot_dimension_numbers<[1], [0], [0], [1], [0, 0, 1, 1], [], []>} : vector<8x27xf32>, vector<27x3072xf32>, vector<8x3072xf32> -> vector<8x3072xf32>
    %c0_4 = arith.constant 0 : index
    %c0_5 = arith.constant 0 : index
    %4 = vector.load %arg3[%c0_4, %c0_5] : memref<8x1xf32, #tpu.memory_space<vmem>>, vector<8x1xf32>
    %5 = vector.broadcast %4 : vector<8x1xf32> to vector<8x3072xf32>
    %6 = arith.addf %3, %5 : vector<8x3072xf32>
    %7 = vector.extract_strided_slice %6 {offsets = [0, 0], sizes = [8, 384], strides = [1, 1]} : vector<8x3072xf32> to vector<8x384xf32>
    %8 = vector.extract_strided_slice %6 {offsets = [0, 384], sizes = [8, 384], strides = [1, 1]} : vector<8x3072xf32> to vector<8x384xf32>
    %9 = vector.extract_strided_slice %6 {offsets = [0, 768], sizes = [8, 384], strides = [1, 1]} : vector<8x3072xf32> to vector<8x384xf32>
    %10 = vector.extract_strided_slice %6 {offsets = [0, 1152], sizes = [8, 384], strides = [1, 1]} : vector<8x3072xf32> to vector<8x384xf32>
    %11 = vector.extract_strided_slice %6 {offsets = [0, 1536], sizes = [8, 384], strides = [1, 1]} : vector<8x3072xf32> to vector<8x384xf32>
    %12 = vector.extract_strided_slice %6 {offsets = [0, 1920], sizes = [8, 384], strides = [1, 1]} : vector<8x3072xf32> to vector<8x384xf32>
    %13 = vector.extract_strided_slice %6 {offsets = [0, 2304], sizes = [8, 384], strides = [1, 1]} : vector<8x3072xf32> to vector<8x384xf32>
    %14 = vector.extract_strided_slice %6 {offsets = [0, 2688], sizes = [8, 384], strides = [1, 1]} : vector<8x3072xf32> to vector<8x384xf32>
    %15 = arith.maximumf %7, %8 : vector<8x384xf32>
    %16 = arith.minimumf %7, %8 : vector<8x384xf32>
    %17 = arith.maximumf %15, %9 : vector<8x384xf32>
    %18 = arith.minimumf %16, %9 : vector<8x384xf32>
    %19 = arith.maximumf %17, %10 : vector<8x384xf32>
    %20 = arith.minimumf %18, %10 : vector<8x384xf32>
    %21 = arith.maximumf %19, %11 : vector<8x384xf32>
    %22 = arith.minimumf %20, %11 : vector<8x384xf32>
    %23 = arith.maximumf %21, %12 : vector<8x384xf32>
    %24 = arith.minimumf %22, %12 : vector<8x384xf32>
    %25 = arith.maximumf %23, %13 : vector<8x384xf32>
    %26 = arith.minimumf %24, %13 : vector<8x384xf32>
    %27 = arith.maximumf %25, %14 : vector<8x384xf32>
    %28 = arith.minimumf %26, %14 : vector<8x384xf32>
    %cst_6 = arith.constant 5.000000e-01 : f32
    %29 = vector.broadcast %cst_6 : f32 to vector<8x384xf32>
    %30 = arith.mulf %29, %27 : vector<8x384xf32>
    %cst_7 = arith.constant 0.707106769 : f32
    %31 = vector.broadcast %cst_7 : f32 to vector<8x384xf32>
    %32 = arith.mulf %27, %31 : vector<8x384xf32>
    %cst_8 = arith.constant -3.8325069 : f32
    %cst_9 = arith.constant 3.8325069 : f32
    %33 = vector.broadcast %cst_8 : f32 to vector<8x384xf32>
    %34 = arith.maximumf %33, %32 : vector<8x384xf32>
    %35 = vector.broadcast %cst_9 : f32 to vector<8x384xf32>
    %36 = arith.minimumf %35, %34 : vector<8x384xf32>
    %37 = arith.mulf %36, %36 : vector<8x384xf32>
    %cst_10 = arith.constant -2.72614237E-10 : f32
    %38 = vector.broadcast %cst_10 : f32 to vector<8x384xf32>
    %39 = arith.mulf %38, %37 : vector<8x384xf32>
    %cst_11 = arith.constant 2.77068146E-8 : f32
    %40 = vector.broadcast %cst_11 : f32 to vector<8x384xf32>
    %41 = arith.addf %39, %40 : vector<8x384xf32>
    %42 = arith.mulf %41, %37 : vector<8x384xf32>
    %cst_12 = arith.constant -2.10102394E-6 : f32
    %43 = vector.broadcast %cst_12 : f32 to vector<8x384xf32>
    %44 = arith.addf %42, %43 : vector<8x384xf32>
    %45 = arith.mulf %44, %37 : vector<8x384xf32>
    %cst_13 = arith.constant -5.69250624E-5 : f32
    %46 = vector.broadcast %cst_13 : f32 to vector<8x384xf32>
    %47 = arith.addf %45, %46 : vector<8x384xf32>
    %48 = arith.mulf %47, %37 : vector<8x384xf32>
    %cst_14 = arith.constant -7.34990637E-4 : f32
    %49 = vector.broadcast %cst_14 : f32 to vector<8x384xf32>
    %50 = arith.addf %48, %49 : vector<8x384xf32>
    %51 = arith.mulf %50, %37 : vector<8x384xf32>
    %cst_15 = arith.constant -2.954600e-03 : f32
    %52 = vector.broadcast %cst_15 : f32 to vector<8x384xf32>
    %53 = arith.addf %51, %52 : vector<8x384xf32>
    %54 = arith.mulf %53, %37 : vector<8x384xf32>
    %cst_16 = arith.constant -0.0160960332 : f32
    %55 = vector.broadcast %cst_16 : f32 to vector<8x384xf32>
    %56 = arith.addf %54, %55 : vector<8x384xf32>
    %57 = arith.mulf %56, %36 : vector<8x384xf32>
    %cst_17 = arith.constant -1.45660715E-5 : f32
    %58 = vector.broadcast %cst_17 : f32 to vector<8x384xf32>
    %59 = arith.mulf %58, %37 : vector<8x384xf32>
    %cst_18 = arith.constant -2.13374049E-4 : f32
    %60 = vector.broadcast %cst_18 : f32 to vector<8x384xf32>
    %61 = arith.addf %59, %60 : vector<8x384xf32>
    %62 = arith.mulf %61, %37 : vector<8x384xf32>
    %cst_19 = arith.constant -0.00168282702 : f32
    %63 = vector.broadcast %cst_19 : f32 to vector<8x384xf32>
    %64 = arith.addf %62, %63 : vector<8x384xf32>
    %65 = arith.mulf %64, %37 : vector<8x384xf32>
    %cst_20 = arith.constant -0.00737332925 : f32
    %66 = vector.broadcast %cst_20 : f32 to vector<8x384xf32>
    %67 = arith.addf %65, %66 : vector<8x384xf32>
    %68 = arith.mulf %67, %37 : vector<8x384xf32>
    %cst_21 = arith.constant -0.0142647391 : f32
    %69 = vector.broadcast %cst_21 : f32 to vector<8x384xf32>
    %70 = arith.addf %68, %69 : vector<8x384xf32>
    %71 = tpu.reciprocal %70 {approx = true} : vector<8x384xf32> -> vector<8x384xf32>
    %72 = arith.mulf %57, %71 : vector<8x384xf32>
    %cst_22 = arith.constant 1.000000e+00 : f32
    %73 = vector.broadcast %cst_22 : f32 to vector<8x384xf32>
    %74 = arith.addf %73, %72 : vector<8x384xf32>
    %75 = arith.mulf %30, %74 : vector<8x384xf32>
    %cst_23 = arith.constant 5.000000e-01 : f32
    %76 = vector.broadcast %cst_23 : f32 to vector<8x384xf32>
    %77 = arith.mulf %76, %28 : vector<8x384xf32>
    %cst_24 = arith.constant 0.707106769 : f32
    %78 = vector.broadcast %cst_24 : f32 to vector<8x384xf32>
    %79 = arith.mulf %28, %78 : vector<8x384xf32>
    %cst_25 = arith.constant -3.8325069 : f32
    %cst_26 = arith.constant 3.8325069 : f32
    %80 = vector.broadcast %cst_25 : f32 to vector<8x384xf32>
    %81 = arith.maximumf %80, %79 : vector<8x384xf32>
    %82 = vector.broadcast %cst_26 : f32 to vector<8x384xf32>
    %83 = arith.minimumf %82, %81 : vector<8x384xf32>
    %84 = arith.mulf %83, %83 : vector<8x384xf32>
    %cst_27 = arith.constant -2.72614237E-10 : f32
    %85 = vector.broadcast %cst_27 : f32 to vector<8x384xf32>
    %86 = arith.mulf %85, %84 : vector<8x384xf32>
    %cst_28 = arith.constant 2.77068146E-8 : f32
    %87 = vector.broadcast %cst_28 : f32 to vector<8x384xf32>
    %88 = arith.addf %86, %87 : vector<8x384xf32>
    %89 = arith.mulf %88, %84 : vector<8x384xf32>
    %cst_29 = arith.constant -2.10102394E-6 : f32
    %90 = vector.broadcast %cst_29 : f32 to vector<8x384xf32>
    %91 = arith.addf %89, %90 : vector<8x384xf32>
    %92 = arith.mulf %91, %84 : vector<8x384xf32>
    %cst_30 = arith.constant -5.69250624E-5 : f32
    %93 = vector.broadcast %cst_30 : f32 to vector<8x384xf32>
    %94 = arith.addf %92, %93 : vector<8x384xf32>
    %95 = arith.mulf %94, %84 : vector<8x384xf32>
    %cst_31 = arith.constant -7.34990637E-4 : f32
    %96 = vector.broadcast %cst_31 : f32 to vector<8x384xf32>
    %97 = arith.addf %95, %96 : vector<8x384xf32>
    %98 = arith.mulf %97, %84 : vector<8x384xf32>
    %cst_32 = arith.constant -2.954600e-03 : f32
    %99 = vector.broadcast %cst_32 : f32 to vector<8x384xf32>
    %100 = arith.addf %98, %99 : vector<8x384xf32>
    %101 = arith.mulf %100, %84 : vector<8x384xf32>
    %cst_33 = arith.constant -0.0160960332 : f32
    %102 = vector.broadcast %cst_33 : f32 to vector<8x384xf32>
    %103 = arith.addf %101, %102 : vector<8x384xf32>
    %104 = arith.mulf %103, %83 : vector<8x384xf32>
    %cst_34 = arith.constant -1.45660715E-5 : f32
    %105 = vector.broadcast %cst_34 : f32 to vector<8x384xf32>
    %106 = arith.mulf %105, %84 : vector<8x384xf32>
    %cst_35 = arith.constant -2.13374049E-4 : f32
    %107 = vector.broadcast %cst_35 : f32 to vector<8x384xf32>
    %108 = arith.addf %106, %107 : vector<8x384xf32>
    %109 = arith.mulf %108, %84 : vector<8x384xf32>
    %cst_36 = arith.constant -0.00168282702 : f32
    %110 = vector.broadcast %cst_36 : f32 to vector<8x384xf32>
    %111 = arith.addf %109, %110 : vector<8x384xf32>
    %112 = arith.mulf %111, %84 : vector<8x384xf32>
    %cst_37 = arith.constant -0.00737332925 : f32
    %113 = vector.broadcast %cst_37 : f32 to vector<8x384xf32>
    %114 = arith.addf %112, %113 : vector<8x384xf32>
    %115 = arith.mulf %114, %84 : vector<8x384xf32>
    %cst_38 = arith.constant -0.0142647391 : f32
    %116 = vector.broadcast %cst_38 : f32 to vector<8x384xf32>
    %117 = arith.addf %115, %116 : vector<8x384xf32>
    %118 = tpu.reciprocal %117 {approx = true} : vector<8x384xf32> -> vector<8x384xf32>
    %119 = arith.mulf %104, %118 : vector<8x384xf32>
    %cst_39 = arith.constant 1.000000e+00 : f32
    %120 = vector.broadcast %cst_39 : f32 to vector<8x384xf32>
    %121 = arith.addf %120, %119 : vector<8x384xf32>
    %122 = arith.mulf %77, %121 : vector<8x384xf32>
    %123 = arith.maximumf %75, %122 : vector<8x384xf32>
    %cst_40 = arith.constant 5.000000e-01 : f32
    %124 = vector.broadcast %cst_40 : f32 to vector<8x384xf32>
    %125 = arith.mulf %124, %123 : vector<8x384xf32>
    %cst_41 = arith.constant 0.707106769 : f32
    %126 = vector.broadcast %cst_41 : f32 to vector<8x384xf32>
    %127 = arith.mulf %123, %126 : vector<8x384xf32>
    %cst_42 = arith.constant -3.8325069 : f32
    %cst_43 = arith.constant 3.8325069 : f32
    %128 = vector.broadcast %cst_42 : f32 to vector<8x384xf32>
    %129 = arith.maximumf %128, %127 : vector<8x384xf32>
    %130 = vector.broadcast %cst_43 : f32 to vector<8x384xf32>
    %131 = arith.minimumf %130, %129 : vector<8x384xf32>
    %132 = arith.mulf %131, %131 : vector<8x384xf32>
    %cst_44 = arith.constant -2.72614237E-10 : f32
    %133 = vector.broadcast %cst_44 : f32 to vector<8x384xf32>
    %134 = arith.mulf %133, %132 : vector<8x384xf32>
    %cst_45 = arith.constant 2.77068146E-8 : f32
    %135 = vector.broadcast %cst_45 : f32 to vector<8x384xf32>
    %136 = arith.addf %134, %135 : vector<8x384xf32>
    %137 = arith.mulf %136, %132 : vector<8x384xf32>
    %cst_46 = arith.constant -2.10102394E-6 : f32
    %138 = vector.broadcast %cst_46 : f32 to vector<8x384xf32>
    %139 = arith.addf %137, %138 : vector<8x384xf32>
    %140 = arith.mulf %139, %132 : vector<8x384xf32>
    %cst_47 = arith.constant -5.69250624E-5 : f32
    %141 = vector.broadcast %cst_47 : f32 to vector<8x384xf32>
    %142 = arith.addf %140, %141 : vector<8x384xf32>
    %143 = arith.mulf %142, %132 : vector<8x384xf32>
    %cst_48 = arith.constant -7.34990637E-4 : f32
    %144 = vector.broadcast %cst_48 : f32 to vector<8x384xf32>
    %145 = arith.addf %143, %144 : vector<8x384xf32>
    %146 = arith.mulf %145, %132 : vector<8x384xf32>
    %cst_49 = arith.constant -2.954600e-03 : f32
    %147 = vector.broadcast %cst_49 : f32 to vector<8x384xf32>
    %148 = arith.addf %146, %147 : vector<8x384xf32>
    %149 = arith.mulf %148, %132 : vector<8x384xf32>
    %cst_50 = arith.constant -0.0160960332 : f32
    %150 = vector.broadcast %cst_50 : f32 to vector<8x384xf32>
    %151 = arith.addf %149, %150 : vector<8x384xf32>
    %152 = arith.mulf %151, %131 : vector<8x384xf32>
    %cst_51 = arith.constant -1.45660715E-5 : f32
    %153 = vector.broadcast %cst_51 : f32 to vector<8x384xf32>
    %154 = arith.mulf %153, %132 : vector<8x384xf32>
    %cst_52 = arith.constant -2.13374049E-4 : f32
    %155 = vector.broadcast %cst_52 : f32 to vector<8x384xf32>
    %156 = arith.addf %154, %155 : vector<8x384xf32>
    %157 = arith.mulf %156, %132 : vector<8x384xf32>
    %cst_53 = arith.constant -0.00168282702 : f32
    %158 = vector.broadcast %cst_53 : f32 to vector<8x384xf32>
    %159 = arith.addf %157, %158 : vector<8x384xf32>
    %160 = arith.mulf %159, %132 : vector<8x384xf32>
    %cst_54 = arith.constant -0.00737332925 : f32
    %161 = vector.broadcast %cst_54 : f32 to vector<8x384xf32>
    %162 = arith.addf %160, %161 : vector<8x384xf32>
    %163 = arith.mulf %162, %132 : vector<8x384xf32>
    %cst_55 = arith.constant -0.0142647391 : f32
    %164 = vector.broadcast %cst_55 : f32 to vector<8x384xf32>
    %165 = arith.addf %163, %164 : vector<8x384xf32>
    %166 = tpu.reciprocal %165 {approx = true} : vector<8x384xf32> -> vector<8x384xf32>
    %167 = arith.mulf %152, %166 : vector<8x384xf32>
    %cst_56 = arith.constant 1.000000e+00 : f32
    %168 = vector.broadcast %cst_56 : f32 to vector<8x384xf32>
    %169 = arith.addf %168, %167 : vector<8x384xf32>
    %170 = arith.mulf %125, %169 : vector<8x384xf32>
    %c0_57 = arith.constant 0 : index
    %c0_58 = arith.constant 0 : index
    %171 = vector.load %arg11[%c0_57, %c0_58] : memref<8x384xf32, #tpu.memory_space<vmem>>, vector<8x384xf32>
    tpu.vector_store %arg11[%c0_57, %c0_58], %170 {strides = array<i32>} : memref<8x384xf32, #tpu.memory_space<vmem>>, vector<8x384xf32>,
    %c0_59 = arith.constant 0 : index
    %c0_60 = arith.constant 0 : index
    %172 = vector.load %arg11[%c0_59, %c0_60] : memref<8x384xf32, #tpu.memory_space<vmem>>, vector<8x256xf32>
    %c0_61 = arith.constant 0 : index
    %c1 = arith.constant 1 : index
    %173 = vector.load %arg11[%c0_61, %c1] : memref<8x384xf32, #tpu.memory_space<vmem>>, vector<8x256xf32>
    %c0_62 = arith.constant 0 : index
    %c2 = arith.constant 2 : index
    %174 = vector.load %arg11[%c0_62, %c2] : memref<8x384xf32, #tpu.memory_space<vmem>>, vector<8x256xf32>
    %c0_63 = arith.constant 0 : index
    %c7 = arith.constant 7 : index
    %175 = vector.load %arg11[%c0_63, %c7] : memref<8x384xf32, #tpu.memory_space<vmem>>, vector<8x256xf32>
    %c0_64 = arith.constant 0 : index
    %c8 = arith.constant 8 : index
    %176 = vector.load %arg11[%c0_64, %c8] : memref<8x384xf32, #tpu.memory_space<vmem>>, vector<8x256xf32>
    %c0_65 = arith.constant 0 : index
    %c9 = arith.constant 9 : index
    %177 = vector.load %arg11[%c0_65, %c9] : memref<8x384xf32, #tpu.memory_space<vmem>>, vector<8x256xf32>
    %c0_66 = arith.constant 0 : index
    %c14 = arith.constant 14 : index
    %178 = vector.load %arg11[%c0_66, %c14] : memref<8x384xf32, #tpu.memory_space<vmem>>, vector<8x256xf32>
    %c0_67 = arith.constant 0 : index
    %c15 = arith.constant 15 : index
    %179 = vector.load %arg11[%c0_67, %c15] : memref<8x384xf32, #tpu.memory_space<vmem>>, vector<8x256xf32>
    %c0_68 = arith.constant 0 : index
    %c16 = arith.constant 16 : index
    %180 = vector.load %arg11[%c0_68, %c16] : memref<8x384xf32, #tpu.memory_space<vmem>>, vector<8x256xf32>
    %c0_69 = arith.constant 0 : index
    %c49 = arith.constant 49 : index
    %181 = vector.load %arg11[%c0_69, %c49] : memref<8x384xf32, #tpu.memory_space<vmem>>, vector<8x256xf32>
    %c0_70 = arith.constant 0 : index
    %c50 = arith.constant 50 : index
    %182 = vector.load %arg11[%c0_70, %c50] : memref<8x384xf32, #tpu.memory_space<vmem>>, vector<8x256xf32>
    %c0_71 = arith.constant 0 : index
    %c51 = arith.constant 51 : index
    %183 = vector.load %arg11[%c0_71, %c51] : memref<8x384xf32, #tpu.memory_space<vmem>>, vector<8x256xf32>
    %c0_72 = arith.constant 0 : index
    %c56 = arith.constant 56 : index
    %184 = vector.load %arg11[%c0_72, %c56] : memref<8x384xf32, #tpu.memory_space<vmem>>, vector<8x256xf32>
    %c0_73 = arith.constant 0 : index
    %c57 = arith.constant 57 : index
    %185 = vector.load %arg11[%c0_73, %c57] : memref<8x384xf32, #tpu.memory_space<vmem>>, vector<8x256xf32>
    %c0_74 = arith.constant 0 : index
    %c58 = arith.constant 58 : index
    %186 = vector.load %arg11[%c0_74, %c58] : memref<8x384xf32, #tpu.memory_space<vmem>>, vector<8x256xf32>
    %c0_75 = arith.constant 0 : index
    %c63 = arith.constant 63 : index
    %187 = vector.load %arg11[%c0_75, %c63] : memref<8x384xf32, #tpu.memory_space<vmem>>, vector<8x256xf32>
    %c0_76 = arith.constant 0 : index
    %c64 = arith.constant 64 : index
    %188 = vector.load %arg11[%c0_76, %c64] : memref<8x384xf32, #tpu.memory_space<vmem>>, vector<8x256xf32>
    %c0_77 = arith.constant 0 : index
    %c65 = arith.constant 65 : index
    %189 = vector.load %arg11[%c0_77, %c65] : memref<8x384xf32, #tpu.memory_space<vmem>>, vector<8x256xf32>
    %c0_78 = arith.constant 0 : index
    %c98 = arith.constant 98 : index
    %190 = vector.load %arg11[%c0_78, %c98] : memref<8x384xf32, #tpu.memory_space<vmem>>, vector<8x256xf32>
    %c0_79 = arith.constant 0 : index
    %c99 = arith.constant 99 : index
    %191 = vector.load %arg11[%c0_79, %c99] : memref<8x384xf32, #tpu.memory_space<vmem>>, vector<8x256xf32>
    %c0_80 = arith.constant 0 : index
    %c100 = arith.constant 100 : index
    %192 = vector.load %arg11[%c0_80, %c100] : memref<8x384xf32, #tpu.memory_space<vmem>>, vector<8x256xf32>
    %c0_81 = arith.constant 0 : index
    %c105 = arith.constant 105 : index
    %193 = vector.load %arg11[%c0_81, %c105] : memref<8x384xf32, #tpu.memory_space<vmem>>, vector<8x256xf32>
    %c0_82 = arith.constant 0 : index
    %c106 = arith.constant 106 : index
    %194 = vector.load %arg11[%c0_82, %c106] : memref<8x384xf32, #tpu.memory_space<vmem>>, vector<8x256xf32>
    %c0_83 = arith.constant 0 : index
    %c107 = arith.constant 107 : index
    %195 = vector.load %arg11[%c0_83, %c107] : memref<8x384xf32, #tpu.memory_space<vmem>>, vector<8x256xf32>
    %c0_84 = arith.constant 0 : index
    %c112 = arith.constant 112 : index
    %196 = vector.load %arg11[%c0_84, %c112] : memref<8x384xf32, #tpu.memory_space<vmem>>, vector<8x256xf32>
    %c0_85 = arith.constant 0 : index
    %c113 = arith.constant 113 : index
    %197 = vector.load %arg11[%c0_85, %c113] : memref<8x384xf32, #tpu.memory_space<vmem>>, vector<8x256xf32>
    %c0_86 = arith.constant 0 : index
    %c114 = arith.constant 114 : index
    %198 = vector.load %arg11[%c0_86, %c114] : memref<8x384xf32, #tpu.memory_space<vmem>>, vector<8x256xf32>
    %199 = tpu.concatenate %172, %173, %174, %175, %176, %177, %178, %179, %180, %181, %182, %183, %184, %185, %186, %187 in 0 : vector<8x256xf32>, vector<8x256xf32>, vector<8x256xf32>, vector<8x256xf32>, vector<8x256xf32>, vector<8x256xf32>, vector<8x256xf32>, vector<8x256xf32>, vector<8x256xf32>, vector<8x256xf32>, vector<8x256xf32>, vector<8x256xf32>, vector<8x256xf32>, vector<8x256xf32>, vector<8x256xf32>, vector<8x256xf32> -> vector<128x256xf32>
    %200 = tpu.concatenate %188, %189, %190, %191, %192, %193, %194, %195, %196, %197, %198 in 0 : vector<8x256xf32>, vector<8x256xf32>, vector<8x256xf32>, vector<8x256xf32>, vector<8x256xf32>, vector<8x256xf32>, vector<8x256xf32>, vector<8x256xf32>, vector<8x256xf32>, vector<8x256xf32>, vector<8x256xf32> -> vector<88x256xf32>
    %201 = tpu.concatenate %199, %200 in 0 : vector<128x256xf32>, vector<88x256xf32> -> vector<216x256xf32>
    %c0_87 = arith.constant 0 : index
    %c0_88 = arith.constant 0 : index
    %202 = vector.load %arg4[%c0_87, %c0_88] : memref<8x216xf32, #tpu.memory_space<vmem>>, vector<8x216xf32>
    %cst_89 = arith.constant dense<0.000000e+00> : vector<8x256xf32>
    %203 = tpu.matmul %202, %201, %cst_89 {dimension_numbers = #tpu.dot_dimension_numbers<[1], [0], [0], [1], [0, 0, 1, 1], [], []>} : vector<8x216xf32>, vector<216x256xf32>, vector<8x256xf32> -> vector<8x256xf32>
    %c0_90 = arith.constant 0 : index
    %c0_91 = arith.constant 0 : index
    %204 = vector.load %arg5[%c0_90, %c0_91] : memref<8x1xf32, #tpu.memory_space<vmem>>, vector<8x1xf32>
    %205 = vector.broadcast %204 : vector<8x1xf32> to vector<8x256xf32>
    %206 = arith.addf %203, %205 : vector<8x256xf32>
    %c0_92 = arith.constant 0 : index
    %c0_93 = arith.constant 0 : index
    %207 = vector.load %arg12[%c0_92, %c0_93] : memref<8x256xf32, #tpu.memory_space<vmem>>, vector<8x256xf32>
    tpu.vector_store %arg12[%c0_92, %c0_93], %206 {strides = array<i32>} : memref<8x256xf32, #tpu.memory_space<vmem>>, vector<8x256xf32>,
    %c0_94 = arith.constant 0 : index
    %c0_95 = arith.constant 0 : index
    %208 = vector.load %arg12[%c0_94, %c0_95] : memref<8x256xf32, #tpu.memory_space<vmem>>, vector<8x128xf32>
    %c0_96 = arith.constant 0 : index
    %c1_97 = arith.constant 1 : index
    %209 = vector.load %arg12[%c0_96, %c1_97] : memref<8x256xf32, #tpu.memory_space<vmem>>, vector<8x128xf32>
    %c0_98 = arith.constant 0 : index
    %c7_99 = arith.constant 7 : index
    %210 = vector.load %arg12[%c0_98, %c7_99] : memref<8x256xf32, #tpu.memory_space<vmem>>, vector<8x128xf32>
    %c0_100 = arith.constant 0 : index
    %c8_101 = arith.constant 8 : index
    %211 = vector.load %arg12[%c0_100, %c8_101] : memref<8x256xf32, #tpu.memory_space<vmem>>, vector<8x128xf32>
    %c0_102 = arith.constant 0 : index
    %c49_103 = arith.constant 49 : index
    %212 = vector.load %arg12[%c0_102, %c49_103] : memref<8x256xf32, #tpu.memory_space<vmem>>, vector<8x128xf32>
    %c0_104 = arith.constant 0 : index
    %c50_105 = arith.constant 50 : index
    %213 = vector.load %arg12[%c0_104, %c50_105] : memref<8x256xf32, #tpu.memory_space<vmem>>, vector<8x128xf32>
    %c0_106 = arith.constant 0 : index
    %c56_107 = arith.constant 56 : index
    %214 = vector.load %arg12[%c0_106, %c56_107] : memref<8x256xf32, #tpu.memory_space<vmem>>, vector<8x128xf32>
    %c0_108 = arith.constant 0 : index
    %c57_109 = arith.constant 57 : index
    %215 = vector.load %arg12[%c0_108, %c57_109] : memref<8x256xf32, #tpu.memory_space<vmem>>, vector<8x128xf32>
    %216 = arith.maximumf %208, %209 : vector<8x128xf32>
    %217 = arith.minimumf %208, %209 : vector<8x128xf32>
    %218 = arith.maximumf %216, %210 : vector<8x128xf32>
    %219 = arith.minimumf %217, %210 : vector<8x128xf32>
    %220 = arith.maximumf %218, %211 : vector<8x128xf32>
    %221 = arith.minimumf %219, %211 : vector<8x128xf32>
    %222 = arith.maximumf %220, %212 : vector<8x128xf32>
    %223 = arith.minimumf %221, %212 : vector<8x128xf32>
    %224 = arith.maximumf %222, %213 : vector<8x128xf32>
    %225 = arith.minimumf %223, %213 : vector<8x128xf32>
    %226 = arith.maximumf %224, %214 : vector<8x128xf32>
    %227 = arith.minimumf %225, %214 : vector<8x128xf32>
    %228 = arith.maximumf %226, %215 : vector<8x128xf32>
    %229 = arith.minimumf %227, %215 : vector<8x128xf32>
    %cst_110 = arith.constant 5.000000e-01 : f32
    %230 = vector.broadcast %cst_110 : f32 to vector<8x128xf32>
    %231 = arith.mulf %230, %228 : vector<8x128xf32>
    %cst_111 = arith.constant 0.707106769 : f32
    %232 = vector.broadcast %cst_111 : f32 to vector<8x128xf32>
    %233 = arith.mulf %228, %232 : vector<8x128xf32>
    %cst_112 = arith.constant -3.8325069 : f32
    %cst_113 = arith.constant 3.8325069 : f32
    %234 = vector.broadcast %cst_112 : f32 to vector<8x128xf32>
    %235 = arith.maximumf %234, %233 : vector<8x128xf32>
    %236 = vector.broadcast %cst_113 : f32 to vector<8x128xf32>
    %237 = arith.minimumf %236, %235 : vector<8x128xf32>
    %238 = arith.mulf %237, %237 : vector<8x128xf32>
    %cst_114 = arith.constant -2.72614237E-10 : f32
    %239 = vector.broadcast %cst_114 : f32 to vector<8x128xf32>
    %240 = arith.mulf %239, %238 : vector<8x128xf32>
    %cst_115 = arith.constant 2.77068146E-8 : f32
    %241 = vector.broadcast %cst_115 : f32 to vector<8x128xf32>
    %242 = arith.addf %240, %241 : vector<8x128xf32>
    %243 = arith.mulf %242, %238 : vector<8x128xf32>
    %cst_116 = arith.constant -2.10102394E-6 : f32
    %244 = vector.broadcast %cst_116 : f32 to vector<8x128xf32>
    %245 = arith.addf %243, %244 : vector<8x128xf32>
    %246 = arith.mulf %245, %238 : vector<8x128xf32>
    %cst_117 = arith.constant -5.69250624E-5 : f32
    %247 = vector.broadcast %cst_117 : f32 to vector<8x128xf32>
    %248 = arith.addf %246, %247 : vector<8x128xf32>
    %249 = arith.mulf %248, %238 : vector<8x128xf32>
    %cst_118 = arith.constant -7.34990637E-4 : f32
    %250 = vector.broadcast %cst_118 : f32 to vector<8x128xf32>
    %251 = arith.addf %249, %250 : vector<8x128xf32>
    %252 = arith.mulf %251, %238 : vector<8x128xf32>
    %cst_119 = arith.constant -2.954600e-03 : f32
    %253 = vector.broadcast %cst_119 : f32 to vector<8x128xf32>
    %254 = arith.addf %252, %253 : vector<8x128xf32>
    %255 = arith.mulf %254, %238 : vector<8x128xf32>
    %cst_120 = arith.constant -0.0160960332 : f32
    %256 = vector.broadcast %cst_120 : f32 to vector<8x128xf32>
    %257 = arith.addf %255, %256 : vector<8x128xf32>
    %258 = arith.mulf %257, %237 : vector<8x128xf32>
    %cst_121 = arith.constant -1.45660715E-5 : f32
    %259 = vector.broadcast %cst_121 : f32 to vector<8x128xf32>
    %260 = arith.mulf %259, %238 : vector<8x128xf32>
    %cst_122 = arith.constant -2.13374049E-4 : f32
    %261 = vector.broadcast %cst_122 : f32 to vector<8x128xf32>
    %262 = arith.addf %260, %261 : vector<8x128xf32>
    %263 = arith.mulf %262, %238 : vector<8x128xf32>
    %cst_123 = arith.constant -0.00168282702 : f32
    %264 = vector.broadcast %cst_123 : f32 to vector<8x128xf32>
    %265 = arith.addf %263, %264 : vector<8x128xf32>
    %266 = arith.mulf %265, %238 : vector<8x128xf32>
    %cst_124 = arith.constant -0.00737332925 : f32
    %267 = vector.broadcast %cst_124 : f32 to vector<8x128xf32>
    %268 = arith.addf %266, %267 : vector<8x128xf32>
    %269 = arith.mulf %268, %238 : vector<8x128xf32>
    %cst_125 = arith.constant -0.0142647391 : f32
    %270 = vector.broadcast %cst_125 : f32 to vector<8x128xf32>
    %271 = arith.addf %269, %270 : vector<8x128xf32>
    %272 = tpu.reciprocal %271 {approx = true} : vector<8x128xf32> -> vector<8x128xf32>
    %273 = arith.mulf %258, %272 : vector<8x128xf32>
    %cst_126 = arith.constant 1.000000e+00 : f32
    %274 = vector.broadcast %cst_126 : f32 to vector<8x128xf32>
    %275 = arith.addf %274, %273 : vector<8x128xf32>
    %276 = arith.mulf %231, %275 : vector<8x128xf32>
    %cst_127 = arith.constant 5.000000e-01 : f32
    %277 = vector.broadcast %cst_127 : f32 to vector<8x128xf32>
    %278 = arith.mulf %277, %229 : vector<8x128xf32>
    %cst_128 = arith.constant 0.707106769 : f32
    %279 = vector.broadcast %cst_128 : f32 to vector<8x128xf32>
    %280 = arith.mulf %229, %279 : vector<8x128xf32>
    %cst_129 = arith.constant -3.8325069 : f32
    %cst_130 = arith.constant 3.8325069 : f32
    %281 = vector.broadcast %cst_129 : f32 to vector<8x128xf32>
    %282 = arith.maximumf %281, %280 : vector<8x128xf32>
    %283 = vector.broadcast %cst_130 : f32 to vector<8x128xf32>
    %284 = arith.minimumf %283, %282 : vector<8x128xf32>
    %285 = arith.mulf %284, %284 : vector<8x128xf32>
    %cst_131 = arith.constant -2.72614237E-10 : f32
    %286 = vector.broadcast %cst_131 : f32 to vector<8x128xf32>
    %287 = arith.mulf %286, %285 : vector<8x128xf32>
    %cst_132 = arith.constant 2.77068146E-8 : f32
    %288 = vector.broadcast %cst_132 : f32 to vector<8x128xf32>
    %289 = arith.addf %287, %288 : vector<8x128xf32>
    %290 = arith.mulf %289, %285 : vector<8x128xf32>
    %cst_133 = arith.constant -2.10102394E-6 : f32
    %291 = vector.broadcast %cst_133 : f32 to vector<8x128xf32>
    %292 = arith.addf %290, %291 : vector<8x128xf32>
    %293 = arith.mulf %292, %285 : vector<8x128xf32>
    %cst_134 = arith.constant -5.69250624E-5 : f32
    %294 = vector.broadcast %cst_134 : f32 to vector<8x128xf32>
    %295 = arith.addf %293, %294 : vector<8x128xf32>
    %296 = arith.mulf %295, %285 : vector<8x128xf32>
    %cst_135 = arith.constant -7.34990637E-4 : f32
    %297 = vector.broadcast %cst_135 : f32 to vector<8x128xf32>
    %298 = arith.addf %296, %297 : vector<8x128xf32>
    %299 = arith.mulf %298, %285 : vector<8x128xf32>
    %cst_136 = arith.constant -2.954600e-03 : f32
    %300 = vector.broadcast %cst_136 : f32 to vector<8x128xf32>
    %301 = arith.addf %299, %300 : vector<8x128xf32>
    %302 = arith.mulf %301, %285 : vector<8x128xf32>
    %cst_137 = arith.constant -0.0160960332 : f32
    %303 = vector.broadcast %cst_137 : f32 to vector<8x128xf32>
    %304 = arith.addf %302, %303 : vector<8x128xf32>
    %305 = arith.mulf %304, %284 : vector<8x128xf32>
    %cst_138 = arith.constant -1.45660715E-5 : f32
    %306 = vector.broadcast %cst_138 : f32 to vector<8x128xf32>
    %307 = arith.mulf %306, %285 : vector<8x128xf32>
    %cst_139 = arith.constant -2.13374049E-4 : f32
    %308 = vector.broadcast %cst_139 : f32 to vector<8x128xf32>
    %309 = arith.addf %307, %308 : vector<8x128xf32>
    %310 = arith.mulf %309, %285 : vector<8x128xf32>
    %cst_140 = arith.constant -0.00168282702 : f32
    %311 = vector.broadcast %cst_140 : f32 to vector<8x128xf32>
    %312 = arith.addf %310, %311 : vector<8x128xf32>
    %313 = arith.mulf %312, %285 : vector<8x128xf32>
    %cst_141 = arith.constant -0.00737332925 : f32
    %314 = vector.broadcast %cst_141 : f32 to vector<8x128xf32>
    %315 = arith.addf %313, %314 : vector<8x128xf32>
    %316 = arith.mulf %315, %285 : vector<8x128xf32>
    %cst_142 = arith.constant -0.0142647391 : f32
    %317 = vector.broadcast %cst_142 : f32 to vector<8x128xf32>
    %318 = arith.addf %316, %317 : vector<8x128xf32>
    %319 = tpu.reciprocal %318 {approx = true} : vector<8x128xf32> -> vector<8x128xf32>
    %320 = arith.mulf %305, %319 : vector<8x128xf32>
    %cst_143 = arith.constant 1.000000e+00 : f32
    %321 = vector.broadcast %cst_143 : f32 to vector<8x128xf32>
    %322 = arith.addf %321, %320 : vector<8x128xf32>
    %323 = arith.mulf %278, %322 : vector<8x128xf32>
    %324 = arith.maximumf %276, %323 : vector<8x128xf32>
    %cst_144 = arith.constant 5.000000e-01 : f32
    %325 = vector.broadcast %cst_144 : f32 to vector<8x128xf32>
    %326 = arith.mulf %325, %324 : vector<8x128xf32>
    %cst_145 = arith.constant 0.707106769 : f32
    %327 = vector.broadcast %cst_145 : f32 to vector<8x128xf32>
    %328 = arith.mulf %324, %327 : vector<8x128xf32>
    %cst_146 = arith.constant -3.8325069 : f32
    %cst_147 = arith.constant 3.8325069 : f32
    %329 = vector.broadcast %cst_146 : f32 to vector<8x128xf32>
    %330 = arith.maximumf %329, %328 : vector<8x128xf32>
    %331 = vector.broadcast %cst_147 : f32 to vector<8x128xf32>
    %332 = arith.minimumf %331, %330 : vector<8x128xf32>
    %333 = arith.mulf %332, %332 : vector<8x128xf32>
    %cst_148 = arith.constant -2.72614237E-10 : f32
    %334 = vector.broadcast %cst_148 : f32 to vector<8x128xf32>
    %335 = arith.mulf %334, %333 : vector<8x128xf32>
    %cst_149 = arith.constant 2.77068146E-8 : f32
    %336 = vector.broadcast %cst_149 : f32 to vector<8x128xf32>
    %337 = arith.addf %335, %336 : vector<8x128xf32>
    %338 = arith.mulf %337, %333 : vector<8x128xf32>
    %cst_150 = arith.constant -2.10102394E-6 : f32
    %339 = vector.broadcast %cst_150 : f32 to vector<8x128xf32>
    %340 = arith.addf %338, %339 : vector<8x128xf32>
    %341 = arith.mulf %340, %333 : vector<8x128xf32>
    %cst_151 = arith.constant -5.69250624E-5 : f32
    %342 = vector.broadcast %cst_151 : f32 to vector<8x128xf32>
    %343 = arith.addf %341, %342 : vector<8x128xf32>
    %344 = arith.mulf %343, %333 : vector<8x128xf32>
    %cst_152 = arith.constant -7.34990637E-4 : f32
    %345 = vector.broadcast %cst_152 : f32 to vector<8x128xf32>
    %346 = arith.addf %344, %345 : vector<8x128xf32>
    %347 = arith.mulf %346, %333 : vector<8x128xf32>
    %cst_153 = arith.constant -2.954600e-03 : f32
    %348 = vector.broadcast %cst_153 : f32 to vector<8x128xf32>
    %349 = arith.addf %347, %348 : vector<8x128xf32>
    %350 = arith.mulf %349, %333 : vector<8x128xf32>
    %cst_154 = arith.constant -0.0160960332 : f32
    %351 = vector.broadcast %cst_154 : f32 to vector<8x128xf32>
    %352 = arith.addf %350, %351 : vector<8x128xf32>
    %353 = arith.mulf %352, %332 : vector<8x128xf32>
    %cst_155 = arith.constant -1.45660715E-5 : f32
    %354 = vector.broadcast %cst_155 : f32 to vector<8x128xf32>
    %355 = arith.mulf %354, %333 : vector<8x128xf32>
    %cst_156 = arith.constant -2.13374049E-4 : f32
    %356 = vector.broadcast %cst_156 : f32 to vector<8x128xf32>
    %357 = arith.addf %355, %356 : vector<8x128xf32>
    %358 = arith.mulf %357, %333 : vector<8x128xf32>
    %cst_157 = arith.constant -0.00168282702 : f32
    %359 = vector.broadcast %cst_157 : f32 to vector<8x128xf32>
    %360 = arith.addf %358, %359 : vector<8x128xf32>
    %361 = arith.mulf %360, %333 : vector<8x128xf32>
    %cst_158 = arith.constant -0.00737332925 : f32
    %362 = vector.broadcast %cst_158 : f32 to vector<8x128xf32>
    %363 = arith.addf %361, %362 : vector<8x128xf32>
    %364 = arith.mulf %363, %333 : vector<8x128xf32>
    %cst_159 = arith.constant -0.0142647391 : f32
    %365 = vector.broadcast %cst_159 : f32 to vector<8x128xf32>
    %366 = arith.addf %364, %365 : vector<8x128xf32>
    %367 = tpu.reciprocal %366 {approx = true} : vector<8x128xf32> -> vector<8x128xf32>
    %368 = arith.mulf %353, %367 : vector<8x128xf32>
    %cst_160 = arith.constant 1.000000e+00 : f32
    %369 = vector.broadcast %cst_160 : f32 to vector<8x128xf32>
    %370 = arith.addf %369, %368 : vector<8x128xf32>
    %371 = arith.mulf %326, %370 : vector<8x128xf32>
    %372 = vector.shape_cast %371 : vector<8x128xf32> to vector<8x1x128xf32>
    %c0_161 = arith.constant 0 : index
    %c0_162 = arith.constant 0 : index
    %c0_163 = arith.constant 0 : index
    %373 = vector.load %arg6[%c0_161, %c0_162, %c0_163] : memref<8x128x32xf32, #tpu.memory_space<vmem>>, vector<8x128x32xf32>
    "tpu.trace_start"() <{level = 10 : i32, message = "cql,clj->cqj"}> : () -> ()
    %cst_164 = arith.constant dense<0.000000e+00> : vector<8x1x32xf32>
    %374 = tpu.matmul %372, %373, %cst_164 {dimension_numbers = #tpu.dot_dimension_numbers<[2], [1], [1], [2], [0, 0, 0, 1, 1, 2], [0], [0]>} : vector<8x1x128xf32>, vector<8x128x32xf32>, vector<8x1x32xf32> -> vector<8x1x32xf32>
    "tpu.trace_stop"() : () -> ()
    %cst_165 = arith.constant dense<0.000000e+00> : vector<1x32xf32>
    %375 = vector.multi_reduction <add>, %374, %cst_165 [0] : vector<8x1x32xf32> to vector<1x32xf32>
    %c0_166 = arith.constant 0 : index
    %c0_167 = arith.constant 0 : index
    %376 = vector.load %arg7[%c0_166, %c0_167] : memref<1x32xf32, #tpu.memory_space<vmem>>, vector<1x32xf32>
    %377 = arith.addf %375, %376 : vector<1x32xf32>
    %cst_168 = arith.constant 5.000000e-01 : f32
    %378 = vector.broadcast %cst_168 : f32 to vector<1x32xf32>
    %379 = arith.mulf %378, %377 : vector<1x32xf32>
    %cst_169 = arith.constant 0.707106769 : f32
    %380 = vector.broadcast %cst_169 : f32 to vector<1x32xf32>
    %381 = arith.mulf %377, %380 : vector<1x32xf32>
    %cst_170 = arith.constant -3.8325069 : f32
    %cst_171 = arith.constant 3.8325069 : f32
    %382 = vector.broadcast %cst_170 : f32 to vector<1x32xf32>
    %383 = arith.maximumf %382, %381 : vector<1x32xf32>
    %384 = vector.broadcast %cst_171 : f32 to vector<1x32xf32>
    %385 = arith.minimumf %384, %383 : vector<1x32xf32>
    %386 = arith.mulf %385, %385 : vector<1x32xf32>
    %cst_172 = arith.constant -2.72614237E-10 : f32
    %387 = vector.broadcast %cst_172 : f32 to vector<1x32xf32>
    %388 = arith.mulf %387, %386 : vector<1x32xf32>
    %cst_173 = arith.constant 2.77068146E-8 : f32
    %389 = vector.broadcast %cst_173 : f32 to vector<1x32xf32>
    %390 = arith.addf %388, %389 : vector<1x32xf32>
    %391 = arith.mulf %390, %386 : vector<1x32xf32>
    %cst_174 = arith.constant -2.10102394E-6 : f32
    %392 = vector.broadcast %cst_174 : f32 to vector<1x32xf32>
    %393 = arith.addf %391, %392 : vector<1x32xf32>
    %394 = arith.mulf %393, %386 : vector<1x32xf32>
    %cst_175 = arith.constant -5.69250624E-5 : f32
    %395 = vector.broadcast %cst_175 : f32 to vector<1x32xf32>
    %396 = arith.addf %394, %395 : vector<1x32xf32>
    %397 = arith.mulf %396, %386 : vector<1x32xf32>
    %cst_176 = arith.constant -7.34990637E-4 : f32
    %398 = vector.broadcast %cst_176 : f32 to vector<1x32xf32>
    %399 = arith.addf %397, %398 : vector<1x32xf32>
    %400 = arith.mulf %399, %386 : vector<1x32xf32>
    %cst_177 = arith.constant -2.954600e-03 : f32
    %401 = vector.broadcast %cst_177 : f32 to vector<1x32xf32>
    %402 = arith.addf %400, %401 : vector<1x32xf32>
    %403 = arith.mulf %402, %386 : vector<1x32xf32>
    %cst_178 = arith.constant -0.0160960332 : f32
    %404 = vector.broadcast %cst_178 : f32 to vector<1x32xf32>
    %405 = arith.addf %403, %404 : vector<1x32xf32>
    %406 = arith.mulf %405, %385 : vector<1x32xf32>
    %cst_179 = arith.constant -1.45660715E-5 : f32
    %407 = vector.broadcast %cst_179 : f32 to vector<1x32xf32>
    %408 = arith.mulf %407, %386 : vector<1x32xf32>
    %cst_180 = arith.constant -2.13374049E-4 : f32
    %409 = vector.broadcast %cst_180 : f32 to vector<1x32xf32>
    %410 = arith.addf %408, %409 : vector<1x32xf32>
    %411 = arith.mulf %410, %386 : vector<1x32xf32>
    %cst_181 = arith.constant -0.00168282702 : f32
    %412 = vector.broadcast %cst_181 : f32 to vector<1x32xf32>
    %413 = arith.addf %411, %412 : vector<1x32xf32>
    %414 = arith.mulf %413, %386 : vector<1x32xf32>
    %cst_182 = arith.constant -0.00737332925 : f32
    %415 = vector.broadcast %cst_182 : f32 to vector<1x32xf32>
    %416 = arith.addf %414, %415 : vector<1x32xf32>
    %417 = arith.mulf %416, %386 : vector<1x32xf32>
    %cst_183 = arith.constant -0.0142647391 : f32
    %418 = vector.broadcast %cst_183 : f32 to vector<1x32xf32>
    %419 = arith.addf %417, %418 : vector<1x32xf32>
    %420 = tpu.reciprocal %419 {approx = true} : vector<1x32xf32> -> vector<1x32xf32>
    %421 = arith.mulf %406, %420 : vector<1x32xf32>
    %cst_184 = arith.constant 1.000000e+00 : f32
    %422 = vector.broadcast %cst_184 : f32 to vector<1x32xf32>
    %423 = arith.addf %422, %421 : vector<1x32xf32>
    %424 = arith.mulf %379, %423 : vector<1x32xf32>
    %c0_185 = arith.constant 0 : index
    %c0_186 = arith.constant 0 : index
    %425 = vector.load %arg8[%c0_185, %c0_186] : memref<32x128xf32, #tpu.memory_space<vmem>>, vector<32x128xf32>
    %c0_187 = arith.constant 0 : index
    %c0_188 = arith.constant 0 : index
    %426 = vector.load %arg9[%c0_187, %c0_188] : memref<1x128xf32, #tpu.memory_space<vmem>>, vector<1x128xf32>
    %cst_189 = arith.constant dense<0.000000e+00> : vector<1x128xf32>
    %427 = tpu.matmul %424, %425, %cst_189 {dimension_numbers = #tpu.dot_dimension_numbers<[1], [0], [0], [1], [0, 0, 1, 1], [], []>} : vector<1x32xf32>, vector<32x128xf32>, vector<1x128xf32> -> vector<1x128xf32>
    %428 = arith.addf %427, %426 : vector<1x128xf32>
    %c0_190 = arith.constant 0 : index
    %c0_191 = arith.constant 0 : index
    %c0_192 = arith.constant 0 : index
    %429 = vector.load %arg10[%c0_190, %c0_191, %c0_192] : memref<1x1x128xf32, #tpu.memory_space<vmem>>, vector<1x1x128xf32>
    %430 = vector.shape_cast %429 : vector<1x1x128xf32> to vector<1x128xf32>
    %431 = vector.shape_cast %428 : vector<1x128xf32> to vector<1x1x128xf32>
    tpu.vector_store %arg10[%c0_190, %c0_191, %c0_192], %431 {strides = array<i32>} : memref<1x1x128xf32, #tpu.memory_space<vmem>>, vector<1x1x128xf32>,
    return
  }
  func.func @transform_0(%arg0: i32) -> (i32, i32, i32) {
    %c0_i32 = arith.constant 0 : i32
    %c0_i32_0 = arith.constant 0 : i32
    %c0_i32_1 = arith.constant 0 : i32
    return %arg0, %c0_i32, %c0_i32_0 : i32, i32, i32
  }
  func.func @transform_1(%arg0: i32) -> (i32, i32) {
    %c0_i32 = arith.constant 0 : i32
    %c0_i32_0 = arith.constant 0 : i32
    %c0_i32_1 = arith.constant 0 : i32
    return %c0_i32, %c0_i32_0 : i32, i32
  }
  func.func @transform_2(%arg0: i32) -> (i32, i32) {
    %c0_i32 = arith.constant 0 : i32
    %c0_i32_0 = arith.constant 0 : i32
    %c0_i32_1 = arith.constant 0 : i32
    return %c0_i32, %c0_i32_0 : i32, i32
  }
  func.func @transform_3(%arg0: i32) -> (i32, i32) {
    %c0_i32 = arith.constant 0 : i32
    %c0_i32_0 = arith.constant 0 : i32
    %c0_i32_1 = arith.constant 0 : i32
    return %c0_i32, %c0_i32_0 : i32, i32
  }
  func.func @transform_4(%arg0: i32) -> (i32, i32) {
    %c0_i32 = arith.constant 0 : i32
    %c0_i32_0 = arith.constant 0 : i32
    %c0_i32_1 = arith.constant 0 : i32
    return %c0_i32, %c0_i32_0 : i32, i32
  }
  func.func @transform_5(%arg0: i32) -> (i32, i32, i32) {
    %c0_i32 = arith.constant 0 : i32
    %c0_i32_0 = arith.constant 0 : i32
    %c0_i32_1 = arith.constant 0 : i32
    %c0_i32_2 = arith.constant 0 : i32
    return %c0_i32, %c0_i32_0, %c0_i32_1 : i32, i32, i32
  }
  func.func @transform_6(%arg0: i32) -> (i32, i32) {
    %c0_i32 = arith.constant 0 : i32
    %c0_i32_0 = arith.constant 0 : i32
    %c0_i32_1 = arith.constant 0 : i32
    return %c0_i32, %c0_i32_0 : i32, i32
  }
  func.func @transform_7(%arg0: i32) -> (i32, i32) {
    %c0_i32 = arith.constant 0 : i32
    %c0_i32_0 = arith.constant 0 : i32
    %c0_i32_1 = arith.constant 0 : i32
    return %c0_i32, %c0_i32_0 : i32, i32
  }
  func.func @transform_8(%arg0: i32) -> (i32, i32) {
    %c0_i32 = arith.constant 0 : i32
    %c0_i32_0 = arith.constant 0 : i32
    %c0_i32_1 = arith.constant 0 : i32
    return %c0_i32, %c0_i32_0 : i32, i32
  }
  func.func @transform_9(%arg0: i32) -> (i32, i32, i32) {
    %c0_i32 = arith.constant 0 : i32
    %c0_i32_0 = arith.constant 0 : i32
    %c0_i32_1 = arith.constant 0 : i32
    return %arg0, %c0_i32, %c0_i32_0 : i32, i32, i32
  }
}

</mosaic_0001>

<bundles_post_ra>
// kernel: mrisubnet_forward.1
= control target key start
LH: loop header
LB: loop body
LE: loop exit
PB: predicated region body
PF: predicated region fallthrough
CT: control target
= control target key end

     0   :  { %14 = vsyncpa [#allocation5], 0  ;;  %s4086_s0 = inlined_call_operand.vmem [shape: f32[2,27,3072], index: 0, kind: input, shape index: {}]   ;;  %s4087_s1 = inlined_call_operand.vmem [shape: f32[8,27], index: 1, kind: input, shape index: {}]   ;;  %s4088_s2 = inlined_call_operand.vmem [shape: f32[8,1], index: 2, kind: input, shape index: {}]   ;;  %s4089_s3 = inlined_call_operand.vmem [shape: f32[8,216], index: 3, kind: input, shape index: {}]   ;;  %s4090_s4 = inlined_call_operand.vmem [shape: f32[8,1], index: 4, kind: input, shape index: {}]   ;;  %s4091_s5 = inlined_call_operand.vmem [shape: f32[8,128,32], index: 5, kind: input, shape index: {}]   ;;  %s4092_s6 = inlined_call_operand.vmem [shape: f32[1,32], index: 6, kind: input, shape index: {}]   ;;  %s4093_s7 = inlined_call_operand.vmem [shape: f32[32,128], index: 7, kind: input, shape index: {}]   ;;  %s4094_s8 = inlined_call_operand.vmem [shape: f32[1,128], index: 8, kind: input, shape index: {}]   ;;  %s4095_s9 = inlined_call_operand.hbm [shape: f32[2,1,128], index: 9, kind: output, shape index: {}]  }
   0x1   :  { %16 = vsyncpa [#allocation5 + $0x1], 0  ;;  %s2841_s30 = smov 0   ;;  %s2843_s10 = smov 0  }
   0x2   :  { %s2845_s11 = smov 0   ;;  %s2847_s12 = smov 0  }
   0x3 LB: > { %s2862_s13 = sadd.s32 4294967295, %s2765_s12   ;;  %s2350_s14 = sadd.s32 4294967294, %s2765_s12   ;;  %s2765_s12 = sphi %s2847_s12, %s4133_s12   ;;  %s2761_s11 = sphi %s2845_s11, %s4132_s11   ;;  %s2757_s10 = sphi %s2843_s10, %s4131_s10   ;;  %s2753_s30 = sphi %s2841_s30, %s4130_s30  }
   0x4   : > { %s2866_s15 = sadd.s32 1, %s2765_s12   ;;  %s223_s16 = sadd.s32 1, %s2761_s11 }
   0x5   : > { %s220_s17 = ssub.s32 %s2765_s12, %s2866_s15  ;;  %p233_p0 = scmp.ne.s32.totalorder %s2761_s11, %s2757_s10 }
   0x6   : > { %p221_p1 = scmp.eq.s32.totalorder %s220_s17, 0  ;;  %p234_p2 = scmp.eq.s32.totalorder %s2862_s13, 1 }
   0x7   : > { %p239_p3 = scmp.ne.s32.totalorder %s2757_s10, %s2753_s30  ;;  %p240_p4 = scmp.eq.s32.totalorder %s2350_s14, 1 }
   0x8   : > { %s2877_s18 = scalar_select %p221_p1, %s2761_s11, %s223_s16  }
   0x9   : > { %p2879_p5 = por %p234_p2, %p233_p0  ;;  %p2883_p6 = por %p240_p4, %p239_p3 }
   0xa   : > { %p2353_p7 = scmp.ge.s32.totalorder %s2765_s12, 1  ;;  %p290_p8 = scmp.lt.s32.totalorder %s2765_s12, 3 }
   0xc   : > { %p291_p9 = pnand %p2353_p7, %p290_p8 }
   0xd   : > { %p325_p10 = scmp.lt.s32.totalorder (!%p291_p9), %s2862_s13, 1  ;;  %s2768_s14 = smov (!%p291_p9), 86  }
   0xe   : > { %294 = sbr.rel (%p291_p9) target bundleno = 1348 (0x544), region = 56  ;;  %s4110_s16 = smov (!%p291_p9), 79  }
   0xf   : > { %s4106_s17 = smov (!%p291_p9), 78   ;;  %s4096_s21 = smov (!%p291_p9), 94  }
  0x10   : > { %s2772_s22 = smov (!%p291_p9), 80   ;;  %s4099_s25 = smov (!%p291_p9), 87  }
  0x11   : > { %s4104_s26 = smov (!%p291_p9), 92   ;;  %s2778_s28 = smov (!%p291_p9), 93  }
  0x12   : > { %s4100_s29 = smov (!%p291_p9), 127  }
  0x13   : > { %v427_v0 = vld [vmem:[%s4088_s2] sm:$0xff]  ;;  %v2767_v1 = vmov 0   ;;  %s326_s23 = scalar_select %p325_p10, %s2862_s13, 1  ;;  %vm437_vm0 = vcmask 1042432   ;;  %vm433_vm1 = vcmask 220160   ;;  %vm1532_vm2 = vcmask 695296  }
  0x14   : > { %2485 = vset.pattern.permute.xlu0 %v2767_v1  ;;  %2676 = vset.pattern.permute.xlu2 %v2767_v1  ;;  %v2922_v18 = vld [vmem:[%s4087_s1] sm:$0xff]  ;;  %vm1476_vm3 = vcmask 531456   ;;  %vm1487_vm4 = vcmask 769024   ;;  %vm1410_vm5 = vcmask 646144   ;;  %vm1523_vm6 = vcmask 703488  }
  0x15   : > { %430 = vperm.xlu0 %2485, %v427_v0   ;;  %s2421_s24 = smul.u32 768, %s326_s23  ;;  %s4105_s23 = smov 85   ;;  %vm1541_vm7 = vcmask 654336   ;;  %vm1505_vm8 = vcmask 752640   ;;  %vm1421_vm9 = vcmask 637952   ;;  %vm1514_vm10 = vcmask 711680  }
  0x16   : > { %vm1465_vm11 = vcmask 572416   ;;  %vm1322_vm12 = vcmask 1039360   ;;  %vm1454_vm13 = vcmask 580608   ;;  %vm1443_vm14 = vcmask 588800  }
  0x17   : > { %s2897_s27 = scalar_lea.vmem %s4086_s0, %s2421_s24  ;;  %s2774_s24 = smov 65   ;;  %vm1432_vm15 = vcmask 629760  }
  0x18   : > { %v403_v2 = vld [vmem:[%s2897_s27 + $0x240] sm:$0x7]  ;;  %v404_v3 = vld [vmem:[%s2897_s27 + $0x248] sm:$0x7]  ;;  %v405_v4 = vld [vmem:[%s2897_s27 + $0x250] sm:$0x7] }
  0x19   : > { %2355 = vmatpush.msk.msra.mxu3 %vm437_vm0, %v403_v2  ;;  %2357 = vmatpush.msk.msra.mxu1 %vm437_vm0, %v404_v3  ;;  %v407_v5 = vld [vmem:[%s2897_s27 + $0x260] sm:$0x7]  ;;  %v380_v7 = vld [vmem:[%s2897_s27 + $0x188] sm:$0xff]  ;;  %v381_v8 = vld [vmem:[%s2897_s27 + $0x190] sm:$0xff] }
  0x1a   : > { %v379_v6 = vld [vmem:[%s2897_s27 + $0x180] sm:$0xff]  ;;  %2359 = vmatpush.msk.msra.mxu2 %vm437_vm0, %v405_v4  ;;  %2363 = vmatpush.msk.msra.mxu0 %vm437_vm0, %v407_v5  ;;  %v356_v11 = vld [vmem:[%s2897_s27 + $0xc8] sm:$0xff]  ;;  %v357_v12 = vld [vmem:[%s2897_s27 + $0xd0] sm:$0xff] }
  0x1b   : > { %v383_v9 = vld [vmem:[%s2897_s27 + $0x1a0] sm:$0xff]  ;;  %523 = vmatpush.msra.mxu3 %v379_v6  ;;  %543 = vmatpush.msra.mxu1 %v380_v7  ;;  %v332_v15 = vld [vmem:[%s2897_s27 + $0x8] sm:$0xff]  ;;  %v333_v16 = vld [vmem:[%s2897_s27 + $0x10] sm:$0xff] }
  0x1c   : > { %v355_v10 = vld [vmem:[%s2897_s27 + $0xc0] sm:$0xff]  ;;  %563 = vmatpush.msra.mxu2 %v381_v8  ;;  %603 = vmatpush.msra.mxu0 %v383_v9  ;;  %v406_v19 = vld [vmem:[%s2897_s27 + $0x258] sm:$0x7]  ;;  %v408_v20 = vld [vmem:[%s2897_s27 + $0x268] sm:$0x7] }
  0x1d   : > { %v359_v13 = vld [vmem:[%s2897_s27 + $0xe0] sm:$0xff]  ;;  %524 = vmatpush.msra.mxu3 %v355_v10  ;;  %544 = vmatpush.msra.mxu1 %v356_v11  ;;  %v409_v21 = vld [vmem:[%s2897_s27 + $0x270] sm:$0x7]  ;;  %v382_v23 = vld [vmem:[%s2897_s27 + $0x198] sm:$0xff] }
  0x1e   : > { %v331_v14 = vld [vmem:[%s2897_s27] sm:$0xff]  ;;  %564 = vmatpush.msra.mxu2 %v357_v12  ;;  %604 = vmatpush.msra.mxu0 %v359_v13  ;;  %v384_v24 = vld [vmem:[%s2897_s27 + $0x1a8] sm:$0xff]  ;;  %v385_v25 = vld [vmem:[%s2897_s27 + $0x1b0] sm:$0xff] }
  0x1f   : > { %v335_v17 = vld [vmem:[%s2897_s27 + $0x20] sm:$0xff]  ;;  %525 = vmatpush.msra.mxu3 %v331_v14  ;;  %545 = vmatpush.msra.mxu1 %v332_v15  ;;  %v358_v27 = vld [vmem:[%s2897_s27 + $0xd8] sm:$0xff]  ;;  %v360_v28 = vld [vmem:[%s2897_s27 + $0xe8] sm:$0xff] }
  0x20   : > { %565 = vmatpush.msra.mxu2 %v333_v16  ;;  %605 = vmatpush.msra.mxu0 %v335_v17  ;;  %v411_v22 = vld [vmem:[%s2897_s27 + $0x280] sm:$0x7]  ;;  %v361_v29 = vld [vmem:[%s2897_s27 + $0xf0] sm:$0xff]  ;;  %v334_v31 = vld [vmem:[%s2897_s27 + $0x18] sm:$0xff] }
  0x21   : > { %2356 = vmatmul.msk.f32.vlgmr.msra.gmra.mxu3 %vm433_vm1, %v2922_v18  ;;  %2358 = vmatmul.msk.f32.vlgmr.msra.gmra.mxu1 %vm433_vm1, %v2922_v18  ;;  %v387_v26 = vld [vmem:[%s2897_s27 + $0x1c0] sm:$0xff]  ;;  %v336_v32 = vld [vmem:[%s2897_s27 + $0x28] sm:$0xff]  ;;  %v337_v33 = vld [vmem:[%s2897_s27 + $0x30] sm:$0xff] }
  0x22   : > { %2360 = vmatmul.msk.f32.vlgmr.msra.gmra.mxu2 %vm433_vm1, %v2922_v18  ;;  %2361 = vmatpush.msk.msrb.mxu3 %vm437_vm0, %v406_v19  ;;  %v363_v30 = vld [vmem:[%s2897_s27 + $0x100] sm:$0xff]  ;;  %v410_v35 = vld [vmem:[%s2897_s27 + $0x278] sm:$0x7]  ;;  %v412_v36 = vld [vmem:[%s2897_s27 + $0x288] sm:$0x7] }
  0x23   : > { %2364 = vmatmul.msk.f32.vlgmr.msra.gmra.mxu0 %vm433_vm1, %v2922_v18  ;;  %2365 = vmatpush.msk.msrb.mxu1 %vm437_vm0, %v408_v20  ;;  %v339_v34 = vld [vmem:[%s2897_s27 + $0x40] sm:$0xff]  ;;  %v413_v37 = vld [vmem:[%s2897_s27 + $0x290] sm:$0x7]  ;;  %v386_v39 = vld [vmem:[%s2897_s27 + $0x1b8] sm:$0xff] }
  0x24   : > { %2367 = vmatpush.msk.msrb.mxu2 %vm437_vm0, %v409_v21  ;;  %2371 = vmatpush.msk.msrb.mxu0 %vm437_vm0, %v411_v22  ;;  %v415_v38 = vld [vmem:[%s2897_s27 + $0x2a0] sm:$0x7]  ;;  %v388_v40 = vld [vmem:[%s2897_s27 + $0x1c8] sm:$0xff]  ;;  %v389_v41 = vld [vmem:[%s2897_s27 + $0x1d0] sm:$0xff] }
  0x25   : > { %583 = vmatpush.msrb.mxu3 %v382_v23  ;;  %623 = vmatpush.msrb.mxu1 %v384_v24  ;;  %v391_v42 = vld [vmem:[%s2897_s27 + $0x1e0] sm:$0xff]  ;;  %v362_v43 = vld [vmem:[%s2897_s27 + $0xf8] sm:$0xff]  ;;  %v364_v44 = vld [vmem:[%s2897_s27 + $0x108] sm:$0xff] }
  0x26   : > { %643 = vmatpush.msrb.mxu2 %v385_v25  ;;  %683 = vmatpush.msrb.mxu0 %v387_v26  ;;  %v365_v45 = vld [vmem:[%s2897_s27 + $0x110] sm:$0xff]  ;;  %v367_v46 = vld [vmem:[%s2897_s27 + $0x120] sm:$0xff]  ;;  %v338_v47 = vld [vmem:[%s2897_s27 + $0x38] sm:$0xff] }
  0x27   : > { %584 = vmatpush.msrb.mxu3 %v358_v27  ;;  %624 = vmatpush.msrb.mxu1 %v360_v28  ;;  %v340_v48 = vld [vmem:[%s2897_s27 + $0x48] sm:$0xff]  ;;  %v341_v49 = vld [vmem:[%s2897_s27 + $0x50] sm:$0xff]  ;;  %v343_v50 = vld [vmem:[%s2897_s27 + $0x60] sm:$0xff] }
  0x28   : > { %644 = vmatpush.msrb.mxu2 %v361_v29  ;;  %684 = vmatpush.msrb.mxu0 %v363_v30  ;;  %v414_v51 = vld [vmem:[%s2897_s27 + $0x298] sm:$0x7]  ;;  %v416_v52 = vld [vmem:[%s2897_s27 + $0x2a8] sm:$0x7]  ;;  %v417_v53 = vld [vmem:[%s2897_s27 + $0x2b0] sm:$0x7] }
  0x29   : > { %585 = vmatpush.msrb.mxu3 %v334_v31  ;;  %625 = vmatpush.msrb.mxu1 %v336_v32  ;;  %v419_v54 = vld [vmem:[%s2897_s27 + $0x2c0] sm:$0x7]  ;;  %v390_v55 = vld [vmem:[%s2897_s27 + $0x1d8] sm:$0xff]  ;;  %v392_v56 = vld [vmem:[%s2897_s27 + $0x1e8] sm:$0xff] }
  0x2a   : > { %645 = vmatpush.msrb.mxu2 %v337_v33  ;;  %685 = vmatpush.msrb.mxu0 %v339_v34  ;;  %v393_v57 = vld [vmem:[%s2897_s27 + $0x1f0] sm:$0xff]  ;;  %v395_v58 = vld [vmem:[%s2897_s27 + $0x200] sm:$0xff]  ;;  %v366_v59 = vld [vmem:[%s2897_s27 + $0x118] sm:$0xff] }
  0x2b   : > { %2362 = vmatmul.msk.f32.vlgmr.msrb.gmra.mxu3 %vm433_vm1, %v2922_v18  ;;  %2366 = vmatmul.msk.f32.vlgmr.msrb.gmra.mxu1 %vm433_vm1, %v2922_v18  ;;  %v368_v60 = vld [vmem:[%s2897_s27 + $0x128] sm:$0xff]  ;;  %v369_v61 = vld [vmem:[%s2897_s27 + $0x130] sm:$0xff]  ;;  %v371_v62 = vld [vmem:[%s2897_s27 + $0x140] sm:$0xff] }
  0x2c   : > { %2368 = vmatmul.msk.f32.vlgmr.msrb.gmra.mxu2 %vm433_vm1, %v2922_v18  ;;  %2369 = vmatpush.msk.msra.mxu3 %vm437_vm0, %v410_v35  ;;  %v342_v63 = vld [vmem:[%s2897_s27 + $0x58] sm:$0xff]  ;;  %v344_v0 = vld [vmem:[%s2897_s27 + $0x68] sm:$0xff]  ;;  %v345_v1 = vld [vmem:[%s2897_s27 + $0x70] sm:$0xff] }
  0x2d   : > { %2372 = vmatmul.msk.f32.vlgmr.msrb.gmra.mxu0 %vm433_vm1, %v2922_v18  ;;  %2373 = vmatpush.msk.msra.mxu1 %vm437_vm0, %v412_v36  ;;  %v347_v2 = vld [vmem:[%s2897_s27 + $0x80] sm:$0xff]  ;;  %v418_v3 = vld [vmem:[%s2897_s27 + $0x2b8] sm:$0x7]  ;;  %v420_v4 = vld [vmem:[%s2897_s27 + $0x2c8] sm:$0x7] }
  0x2e   : > { %2375 = vmatpush.msk.msra.mxu2 %vm437_vm0, %v413_v37  ;;  %2379 = vmatpush.msk.msra.mxu0 %vm437_vm0, %v415_v38  ;;  %v421_v5 = vld [vmem:[%s2897_s27 + $0x2d0] sm:$0x7]  ;;  %v423_v6 = vld [vmem:[%s2897_s27 + $0x2e0] sm:$0x7]  ;;  %v394_v7 = vld [vmem:[%s2897_s27 + $0x1f8] sm:$0xff] }
  0x2f   : > { %663 = vmatpush.msra.mxu3 %v386_v39  ;;  %703 = vmatpush.msra.mxu1 %v388_v40  ;;  %v396_v8 = vld [vmem:[%s2897_s27 + $0x208] sm:$0xff]  ;;  %v397_v9 = vld [vmem:[%s2897_s27 + $0x210] sm:$0xff]  ;;  %v399_v10 = vld [vmem:[%s2897_s27 + $0x220] sm:$0xff] }
  0x30   : > { %723 = vmatpush.msra.mxu2 %v389_v41  ;;  %763 = vmatpush.msra.mxu0 %v391_v42  ;;  %v370_v11 = vld [vmem:[%s2897_s27 + $0x138] sm:$0xff]  ;;  %v372_v12 = vld [vmem:[%s2897_s27 + $0x148] sm:$0xff]  ;;  %v373_v13 = vld [vmem:[%s2897_s27 + $0x150] sm:$0xff] }
  0x31   : > { %664 = vmatpush.msra.mxu3 %v362_v43  ;;  %704 = vmatpush.msra.mxu1 %v364_v44  ;;  %v375_v14 = vld [vmem:[%s2897_s27 + $0x160] sm:$0xff]  ;;  %v346_v15 = vld [vmem:[%s2897_s27 + $0x78] sm:$0xff]  ;;  %v348_v16 = vld [vmem:[%s2897_s27 + $0x88] sm:$0xff] }
  0x32   : > { %724 = vmatpush.msra.mxu2 %v365_v45  ;;  %764 = vmatpush.msra.mxu0 %v367_v46  ;;  %v349_v17 = vld [vmem:[%s2897_s27 + $0x90] sm:$0xff]  ;;  %v351_v19 = vld [vmem:[%s2897_s27 + $0xa0] sm:$0xff]  ;;  %v422_v20 = vld [vmem:[%s2897_s27 + $0x2d8] sm:$0x7] }
  0x33   : > { %665 = vmatpush.msra.mxu3 %v338_v47  ;;  %705 = vmatpush.msra.mxu1 %v340_v48  ;;  %v424_v21 = vld [vmem:[%s2897_s27 + $0x2e8] sm:$0x7]  ;;  %v425_v22 = vld [vmem:[%s2897_s27 + $0x2f0] sm:$0x7]  ;;  %v398_v23 = vld [vmem:[%s2897_s27 + $0x218] sm:$0xff] }
  0x34   : > { %725 = vmatpush.msra.mxu2 %v341_v49  ;;  %765 = vmatpush.msra.mxu0 %v343_v50  ;;  %v400_v24 = vld [vmem:[%s2897_s27 + $0x228] sm:$0xff]  ;;  %v401_v25 = vld [vmem:[%s2897_s27 + $0x230] sm:$0xff]  ;;  %v374_v26 = vld [vmem:[%s2897_s27 + $0x158] sm:$0xff] }
  0x35   : > { %2370 = vmatmul.msk.f32.vlgmr.msra.gmra.mxu3 %vm433_vm1, %v2922_v18  ;;  %2374 = vmatmul.msk.f32.vlgmr.msra.gmra.mxu1 %vm433_vm1, %v2922_v18  ;;  %v376_v27 = vld [vmem:[%s2897_s27 + $0x168] sm:$0xff]  ;;  %v377_v28 = vld [vmem:[%s2897_s27 + $0x170] sm:$0xff]  ;;  %v350_v29 = vld [vmem:[%s2897_s27 + $0x98] sm:$0xff] }
  0x36   : > { %2376 = vmatmul.msk.f32.vlgmr.msra.gmra.mxu2 %vm433_vm1, %v2922_v18  ;;  %2377 = vmatpush.msk.msrb.mxu3 %vm437_vm0, %v414_v51  ;;  %v352_v30 = vld [vmem:[%s2897_s27 + $0xa8] sm:$0xff]  ;;  %v353_v31 = vld [vmem:[%s2897_s27 + $0xb0] sm:$0xff]  ;;  %v426_v32 = vld [vmem:[%s2897_s27 + $0x2f8] sm:$0x7] }
  0x37   : > { %2380 = vmatmul.msk.f32.vlgmr.msra.gmra.mxu0 %vm433_vm1, %v2922_v18  ;;  %2381 = vmatpush.msk.msrb.mxu1 %vm437_vm0, %v416_v52  ;;  %v402_v33 = vld [vmem:[%s2897_s27 + $0x238] sm:$0xff] }
  0x38   : > { %2383 = vmatpush.msk.msrb.mxu2 %vm437_vm0, %v417_v53  ;;  %2387 = vmatpush.msk.msrb.mxu0 %vm437_vm0, %v419_v54  ;;  %v378_v34 = vld [vmem:[%s2897_s27 + $0x178] sm:$0xff] }
  0x39   : > { %743 = vmatpush.msrb.mxu3 %v390_v55  ;;  %783 = vmatpush.msrb.mxu1 %v392_v56  ;;  %v354_v35 = vld [vmem:[%s2897_s27 + $0xb8] sm:$0xff]  ;;  %s4097_s27 = smov 71  }
  0x3a   : > { %803 = vmatpush.msrb.mxu2 %v393_v57  ;;  %843 = vmatpush.msrb.mxu0 %v395_v58 }
  0x3b   : > { %744 = vmatpush.msrb.mxu3 %v366_v59  ;;  %784 = vmatpush.msrb.mxu1 %v368_v60 }
  0x3c   : > { %804 = vmatpush.msrb.mxu2 %v369_v61  ;;  %844 = vmatpush.msrb.mxu0 %v371_v62 }
  0x3d   : > { %745 = vmatpush.msrb.mxu3 %v342_v63  ;;  %785 = vmatpush.msrb.mxu1 %v344_v0 }
  0x3e   : > { %805 = vmatpush.msrb.mxu2 %v345_v1  ;;  %845 = vmatpush.msrb.mxu0 %v347_v2 }
  0x3f   : > { %2378 = vmatmul.msk.f32.vlgmr.msrb.gmra.mxu3 %vm433_vm1, %v2922_v18  ;;  %2382 = vmatmul.msk.f32.vlgmr.msrb.gmra.mxu1 %vm433_vm1, %v2922_v18 }
  0x40   : > { %2384 = vmatmul.msk.f32.vlgmr.msrb.gmra.mxu2 %vm433_vm1, %v2922_v18  ;;  %2385 = vmatpush.msk.msra.mxu3 %vm437_vm0, %v418_v3 }
  0x41   : > { %2388 = vmatmul.msk.f32.vlgmr.msrb.gmra.mxu0 %vm433_vm1, %v2922_v18  ;;  %2389 = vmatpush.msk.msra.mxu1 %vm437_vm0, %v420_v4 }
  0x42   : > { %2391 = vmatpush.msk.msra.mxu2 %vm437_vm0, %v421_v5  ;;  %2395 = vmatpush.msk.msra.mxu0 %vm437_vm0, %v423_v6 }
  0x43   : > { %823 = vmatpush.msra.mxu3 %v394_v7  ;;  %863 = vmatpush.msra.mxu1 %v396_v8 }
  0x44   : > { %883 = vmatpush.msra.mxu2 %v397_v9  ;;  %923 = vmatpush.msra.mxu0 %v399_v10 }
  0x45   : > { %824 = vmatpush.msra.mxu3 %v370_v11  ;;  %864 = vmatpush.msra.mxu1 %v372_v12 }
  0x46   : > { %884 = vmatpush.msra.mxu2 %v373_v13  ;;  %924 = vmatpush.msra.mxu0 %v375_v14 }
  0x47   : > { %825 = vmatpush.msra.mxu3 %v346_v15  ;;  %865 = vmatpush.msra.mxu1 %v348_v16 }
  0x48   : > { %885 = vmatpush.msra.mxu2 %v349_v17  ;;  %925 = vmatpush.msra.mxu0 %v351_v19 }
  0x49   : > { %2386 = vmatmul.msk.f32.vlgmr.msra.gmra.mxu3 %vm433_vm1, %v2922_v18  ;;  %2390 = vmatmul.msk.f32.vlgmr.msra.gmra.mxu1 %vm433_vm1, %v2922_v18 }
  0x4a   : > { %2392 = vmatmul.msk.f32.vlgmr.msra.gmra.mxu2 %vm433_vm1, %v2922_v18  ;;  %2396 = vmatmul.msk.f32.vlgmr.msra.gmra.mxu0 %vm433_vm1, %v2922_v18 }
  0x4b   : > { %2393 = vmatpush.msk.msrb.mxu3 %vm437_vm0, %v422_v20  ;;  %2397 = vmatpush.msk.msrb.mxu1 %vm437_vm0, %v424_v21 }
  0x4c   : > { %2399 = vmatpush.msk.msrb.mxu2 %vm437_vm0, %v425_v22 }
  0x4d   : > { %903 = vmatpush.msrb.mxu3 %v398_v23  ;;  %943 = vmatpush.msrb.mxu1 %v400_v24 }
  0x4e   : > { %963 = vmatpush.msrb.mxu2 %v401_v25 }
  0x4f   : > { %904 = vmatpush.msrb.mxu3 %v374_v26  ;;  %944 = vmatpush.msrb.mxu1 %v376_v27 }
  0x50   : > { %964 = vmatpush.msrb.mxu2 %v377_v28 }
  0x51   : > { %905 = vmatpush.msrb.mxu3 %v350_v29  ;;  %945 = vmatpush.msrb.mxu1 %v352_v30 }
  0x52   : > { %965 = vmatpush.msrb.mxu2 %v353_v31  ;;  %2394 = vmatmul.msk.f32.vlgmr.msrb.gmra.mxu3 %vm433_vm1, %v2922_v18 }
  0x53   : > { %2398 = vmatmul.msk.f32.vlgmr.msrb.gmra.mxu1 %vm433_vm1, %v2922_v18  ;;  %2400 = vmatmul.msk.f32.vlgmr.msrb.gmra.mxu2 %vm433_vm1, %v2922_v18 }
  0x54   : > { %2401 = vmatpush.msk.msra.mxu3 %vm437_vm0, %v426_v32  ;;  %vm1496_vm0 = vcmask 760832  }
  0x56   : > { %983 = vmatpush.msra.mxu3 %v402_v33 }
  0x58   : > { %984 = vmatpush.msra.mxu3 %v378_v34 }
  0x5a   : > { %985 = vmatpush.msra.mxu3 %v354_v35 }
  0x5b   : > { %2402 = vmatmul.msk.f32.vlgmr.msra.gmra.mxu3 %vm433_vm1, %v2922_v18  ;;  %vm1399_vm1 = vcmask 916480  }
  0x87   : > { %v3072_v46 = vpop.permute.xlu0 %430 }
  0x9e   : > { %v547_v36 = vpop.f32.mrf.mxu1 }
  0x9f   : > { %v548_v55 = vadd.f32 %v547_v36, %v3072_v46 }
  0xa0   : > { %v607_v43 = vpop.f32.mrf.mxu0 }
  0xa1   : > { %v608_v56 = vadd.f32 %v607_v43, %v3072_v46 }
  0xa3   : > { %v991_v0 = vmax.f32 %v548_v55, %v608_v56  ;;  %v994_v1 = vmin.f32 %v548_v55, %v608_v56 }
  0xa4   : > { %v527_v37 = vpop.f32.mrf.mxu3 }
  0xa5   : > { %v567_v38 = vpop.f32.mrf.mxu2  ;;  %v528_v50 = vadd.f32 %v527_v37, %v3072_v46 }
  0xa6   : > { %v568_v63 = vadd.f32 %v567_v38, %v3072_v46 }
  0xa8   : > { %v627_v39 = vpop.f32.mrf.mxu1 }
  0xa9   : > { %v628_v2 = vadd.f32 %v627_v39, %v3072_v46 }
  0xaa   : > { %v687_v48 = vpop.f32.mrf.mxu0 }
  0xab   : > { %v992_v10 = vmax.f32 %v568_v63, %v628_v2  ;;  %v688_v15 = vadd.f32 %v687_v48, %v3072_v46  ;;  %v995_v20 = vmin.f32 %v568_v63, %v628_v2 }
  0xad   : > { %v998_v30 = vmax.f32 %v992_v10, %v688_v15  ;;  %v1001_v34 = vmin.f32 %v995_v20, %v688_v15 }
  0xae   : > { %v587_v40 = vpop.f32.mrf.mxu3 }
  0xaf   : > { %v647_v41 = vpop.f32.mrf.mxu2  ;;  %v588_v49 = vadd.f32 %v587_v40, %v3072_v46 }
  0xb0   : > { %v648_v52 = vadd.f32 %v647_v41, %v3072_v46 }
  0xb1   : > { %v990_v51 = vmax.f32 %v528_v50, %v588_v49  ;;  %v993_v18 = vmin.f32 %v528_v50, %v588_v49 }
  0xb2   : > { %v707_v42 = vpop.f32.mrf.mxu1 }
  0xb3   : > { %v996_v57 = vmax.f32 %v990_v51, %v648_v52  ;;  %v999_v58 = vmin.f32 %v993_v18, %v648_v52  ;;  %v708_v59 = vadd.f32 %v707_v42, %v3072_v46 }
  0xb4   : > { %v767_v62 = vpop.f32.mrf.mxu0 }
  0xb5   : > { %v1002_v3 = vmax.f32 %v996_v57, %v708_v59  ;;  %v1005_v4 = vmin.f32 %v999_v58, %v708_v59  ;;  %v768_v5 = vadd.f32 %v767_v62, %v3072_v46 }
  0xb7   : > { %v1008_v11 = vmax.f32 %v1002_v3, %v768_v5  ;;  %v1011_v12 = vmin.f32 %v1005_v4, %v768_v5 }
  0xb8   : > { %v667_v44 = vpop.f32.mrf.mxu3 }
  0xb9   : > { %v727_v45 = vpop.f32.mrf.mxu2  ;;  %v668_v60 = vadd.f32 %v667_v44, %v3072_v46 }
  0xba   : > { %v728_v8 = vadd.f32 %v727_v45, %v3072_v46 }
  0xbb   : > { %v997_v6 = vmax.f32 %v991_v0, %v668_v60  ;;  %v1000_v7 = vmin.f32 %v994_v1, %v668_v60 }
  0xbc   : > { %v787_v47 = vpop.f32.mrf.mxu1 }
  0xbd   : > { %v1003_v16 = vmax.f32 %v997_v6, %v728_v8  ;;  %v1006_v17 = vmin.f32 %v1000_v7, %v728_v8  ;;  %v788_v19 = vadd.f32 %v787_v47, %v3072_v46 }
  0xbe   : > { %v847_v26 = vpop.f32.mrf.mxu0 }
  0xbf   : > { %v1009_v31 = vmax.f32 %v1003_v16, %v788_v19  ;;  %v1012_v32 = vmin.f32 %v1006_v17, %v788_v19  ;;  %v848_v33 = vadd.f32 %v847_v26, %v3072_v46 }
  0xc1   : > { %v1015_v42 = vmax.f32 %v1009_v31, %v848_v33  ;;  %v1018_v43 = vmin.f32 %v1012_v32, %v848_v33 }
  0xc2   : > { %v747_v53 = vpop.f32.mrf.mxu3 }
  0xc3   : > { %v807_v54 = vpop.f32.mrf.mxu2  ;;  %v748_v24 = vadd.f32 %v747_v53, %v3072_v46 }
  0xc4   : > { %v808_v44 = vadd.f32 %v807_v54, %v3072_v46 }
  0xc5   : > { %v1004_v37 = vmax.f32 %v998_v30, %v748_v24  ;;  %v1007_v38 = vmin.f32 %v1001_v34, %v748_v24 }
  0xc6   : > { %v867_v61 = vpop.f32.mrf.mxu1 }
  0xc7   : > { %v1010_v50 = vmax.f32 %v1004_v37, %v808_v44  ;;  %v1013_v53 = vmin.f32 %v1007_v38, %v808_v44  ;;  %v868_v56 = vadd.f32 %v867_v61, %v3072_v46  ;;  %v927_v59 = vpop.f32.mrf.mxu0 }
  0xc8   : > { %v928_v6 = vadd.f32 %v927_v59, %v3072_v46 }
  0xc9   : > { %v1016_v0 = vmax.f32 %v1010_v50, %v868_v56  ;;  %v1019_v3 = vmin.f32 %v1013_v53, %v868_v56 }
  0xcb   : > { %v1025_v17 = vmin.f32 %v1019_v3, %v928_v6 }
  0xcc   : > { %v827_v9 = vpop.f32.mrf.mxu3 }
  0xcd   : > { %v828_v13 = vadd.f32 %v827_v9, %v3072_v46  ;;  %v887_v14 = vpop.f32.mrf.mxu2 }
  0xce   : > { %v888_v23 = vadd.f32 %v887_v14, %v3072_v46 }
  0xcf   : > { %v1014_v21 = vmax.f32 %v1008_v11, %v828_v13  ;;  %v1017_v22 = vmin.f32 %v1011_v12, %v828_v13  ;;  %v1022_v13 = vmax.f32 %v1016_v0, %v928_v6 }
  0xd0   : > { %v947_v25 = vpop.f32.mrf.mxu1 }
  0xd1   : > { %v1020_v27 = vmax.f32 %v1014_v21, %v888_v23  ;;  %v1023_v28 = vmin.f32 %v1017_v22, %v888_v23  ;;  %v948_v29 = vadd.f32 %v947_v25, %v3072_v46 }
  0xd3   : > { %v1026_v35 = vmax.f32 %v1020_v27, %v948_v29  ;;  %v3092_v36 = vmin.f32 %v1023_v28, %v948_v29 }
  0xd5   : > { %v1035_v39 = vmul.f32 0.70710677, %v1026_v35  ;;  %v1125_v40 = vmul.f32 0.70710677, %v3092_v36  ;;  %v907_v41 = vpop.f32.mrf.mxu3  ;;  %v3140_v27 = vmul.f32 0.5, %v1026_v35 }
  0xd6   : > { %v908_v45 = vadd.f32 %v907_v41, %v3072_v46  ;;  %v967_v47 = vpop.f32.mrf.mxu2 }
  0xd7   : > { %v3097_v48 = vclamps-f32 %v1035_v39, 3.832507  ;;  %v3099_v49 = vclamps-f32 %v1125_v40, 3.832507  ;;  %v968_v52 = vadd.f32 %v967_v47, %v3072_v46 }
  0xd8   : > { %v1021_v51 = vmax.f32 %v1015_v42, %v908_v45  ;;  %v1024_v18 = vmin.f32 %v1018_v43, %v908_v45 }
  0xd9   : > { %v3104_v55 = vmul.f32 %v3097_v48, %v3097_v48  ;;  %v3108_v54 = vmul.f32 %v3099_v49, %v3099_v49 }
  0xda   : > { %v3111_v57 = vmax.f32 %v1021_v51, %v968_v52  ;;  %v3113_v58 = vmin.f32 %v1024_v18, %v968_v52 }
  0xdb   : > { %v1047_v60 = vmul.f32 -2.7261424e-10, %v3104_v55  ;;  %v1086_v62 = vmul.f32 -1.45660715e-05, %v3104_v55  ;;  %v1137_v63 = vmul.f32 -2.7261424e-10, %v3108_v54 }
  0xdc   : > { %v1176_v1 = vmul.f32 -1.45660715e-05, %v3108_v54  ;;  %v1036_v2 = vmul.f32 0.70710677, %v3111_v57  ;;  %v1126_v9 = vmul.f32 0.70710677, %v3113_v58 }
  0xdd   : > { %v1050_v4 = vadd.f32 2.7706815e-08, %v1047_v60  ;;  %v1089_v5 = vadd.f32 -0.00021337405, %v1086_v62  ;;  %v1140_v61 = vadd.f32 2.7706815e-08, %v1137_v63 }
  0xde   : > { %v1179_v7 = vadd.f32 -0.00021337405, %v1176_v1  ;;  %v3121_v8 = vclamps-f32 %v1036_v2, 3.832507  ;;  %v3132_v16 = vclamps-f32 %v1126_v9, 3.832507  ;;  %v987_v26 = vpop.f32.mrf.mxu3 }
  0xdf   : > { %v1053_v10 = vmul.f32 %v1050_v4, %v3104_v55  ;;  %v1092_v11 = vmul.f32 %v1089_v5, %v3104_v55  ;;  %v1143_v12 = vmul.f32 %v1140_v61, %v3108_v54  ;;  %v988_v40 = vadd.f32 %v987_v26, %v3072_v46 }
  0xe0   : > { %v1182_v14 = vmul.f32 %v1179_v7, %v3108_v54  ;;  %v3130_v15 = vmul.f32 %v3121_v8, %v3121_v8  ;;  %v3138_v25 = vmul.f32 %v3132_v16, %v3132_v16 }
  0xe1   : > { %v1056_v19 = vadd.f32 -2.101024e-06, %v1053_v10  ;;  %v1095_v20 = vadd.f32 -0.001682827, %v1092_v11  ;;  %v1146_v21 = vadd.f32 -2.101024e-06, %v1143_v12  ;;  %v3156_v60 = vmax.f32 %v1022_v13, %v988_v40 }
  0xe2   : > { %v1185_v22 = vadd.f32 -0.001682827, %v1182_v14  ;;  %v1048_v23 = vmul.f32 -2.7261424e-10, %v3130_v15  ;;  %v1087_v24 = vmul.f32 -1.45660715e-05, %v3130_v15  ;;  %v3162_v5 = vmin.f32 %v1025_v17, %v988_v40 }
  0xe3   : > { %v1059_v28 = vmul.f32 %v1056_v19, %v3104_v55  ;;  %v1098_v29 = vmul.f32 %v1095_v20, %v3104_v55  ;;  %v1149_v30 = vmul.f32 %v1146_v21, %v3108_v54  ;;  %v1138_v34 = vmul.f32 -2.7261424e-10, %v3138_v25 }
  0xe4   : > { %v1188_v31 = vmul.f32 %v1185_v22, %v3108_v54  ;;  %v1051_v32 = vadd.f32 2.7706815e-08, %v1048_v23  ;;  %v1090_v33 = vadd.f32 -0.00021337405, %v1087_v24  ;;  %v1177_v50 = vmul.f32 -1.45660715e-05, %v3138_v25 }
  0xe5   : > { %v1062_v37 = vadd.f32 -5.6925062e-05, %v1059_v28  ;;  %v1101_v38 = vadd.f32 -0.0073733293, %v1098_v29  ;;  %v1152_v39 = vadd.f32 -5.6925062e-05, %v1149_v30 }
  0xe6   : > { %v1191_v41 = vadd.f32 -0.0073733293, %v1188_v31  ;;  %v1054_v35 = vmul.f32 %v1051_v32, %v3130_v15  ;;  %v1093_v42 = vmul.f32 %v1090_v33, %v3130_v15  ;;  %v1141_v43 = vadd.f32 2.7706815e-08, %v1138_v34 }
  0xe7   : > { %v1065_v44 = vmul.f32 %v1062_v37, %v3104_v55  ;;  %v1104_v45 = vmul.f32 %v1101_v38, %v3104_v55  ;;  %v1155_v47 = vmul.f32 %v1152_v39, %v3108_v54  ;;  %v1180_v4 = vadd.f32 -0.00021337405, %v1177_v50 }
  0xe8   : > { %v1194_v51 = vmul.f32 %v1191_v41, %v3108_v54  ;;  %v1057_v18 = vadd.f32 -2.101024e-06, %v1054_v35  ;;  %v1096_v52 = vadd.f32 -0.001682827, %v1093_v42  ;;  %v1144_v46 = vmul.f32 %v1141_v43, %v3138_v25 }
  0xe9   : > { %v1068_v53 = vadd.f32 -0.00073499064, %v1065_v44  ;;  %v1107_v56 = vadd.f32 -0.014264739, %v1104_v45  ;;  %v1158_v59 = vadd.f32 -0.00073499064, %v1155_v47  ;;  %v1183_v11 = vmul.f32 %v1180_v4, %v3138_v25 }
  0xea   : > { %v1197_v62 = vadd.f32 -0.014264739, %v1194_v51  ;;  %v1060_v63 = vmul.f32 %v1057_v18, %v3130_v15  ;;  %v1099_v0 = vmul.f32 %v1096_v52, %v3130_v15  ;;  %v1147_v1 = vadd.f32 -2.101024e-06, %v1144_v46 }
  0xeb   : > { %v1071_v2 = vmul.f32 %v1068_v53, %v3104_v55  ;;  %v1161_v3 = vmul.f32 %v1158_v59, %v3108_v54  ;;  %2677 = vrcp.f32 %v1107_v56  ;;  %v1037_v19 = vmul.f32 0.70710677, %v3156_v60 }
  0xec   : > { %v1063_v61 = vadd.f32 -5.6925062e-05, %v1060_v63  ;;  %v1102_v6 = vadd.f32 -0.0073733293, %v1099_v0  ;;  %v1150_v7 = vmul.f32 %v1147_v1, %v3138_v25  ;;  %2679 = vrcp.f32 %v1197_v62 }
  0xed   : > { %v1074_v9 = vadd.f32 -0.0029546, %v1071_v2  ;;  %v1164_v10 = vadd.f32 -0.0029546, %v1161_v3  ;;  %v1122_v20 = vmul.f32 0.5, %v3092_v36 }
  0xee   : > { %v1066_v12 = vmul.f32 %v1063_v61, %v3130_v15  ;;  %v1105_v13 = vmul.f32 %v1102_v6, %v3130_v15  ;;  %v1153_v14 = vadd.f32 -5.6925062e-05, %v1150_v7  ;;  %v1186_v22 = vadd.f32 -0.001682827, %v1183_v11 }
  0xef   : > { %v1077_v17 = vmul.f32 %v1074_v9, %v3104_v55  ;;  %v1167_v21 = vmul.f32 %v1164_v10, %v3108_v54  ;;  %v3173_v28 = vclamps-f32 %v1037_v19, 3.832507  ;;  %v1127_v32 = vmul.f32 0.70710677, %v3162_v5 }
  0xf0   : > { %v1069_v23 = vadd.f32 -0.00073499064, %v1066_v12  ;;  %v1108_v24 = vadd.f32 -0.014264739, %v1105_v13  ;;  %v1156_v26 = vmul.f32 %v1153_v14, %v3138_v25  ;;  %v1189_v31 = vmul.f32 %v1186_v22, %v3138_v25 }
  0xf1   : > { %v1080_v29 = vadd.f32 -0.016096033, %v1077_v17  ;;  %v1170_v30 = vadd.f32 -0.016096033, %v1167_v21  ;;  %v2678_v33 = vpop.eup %2677  ;;  %v3180_v54 = vmul.f32 %v3173_v28, %v3173_v28  ;;  %v3184_v40 = vclamps-f32 %v1127_v32, 3.832507 }
  0xf2   : > { %v1072_v55 = vmul.f32 %v1069_v23, %v3130_v15  ;;  %2681 = vrcp.f32 %v1108_v24  ;;  %v1159_v36 = vadd.f32 -0.00073499064, %v1156_v26  ;;  %v2680_v34 = vpop.eup %2679  ;;  %v1192_v39 = vadd.f32 -0.0073733293, %v1189_v31 }
  0xf3   : > { %v1083_v37 = vmul.f32 %v3097_v48, %v1080_v29  ;;  %v1173_v38 = vmul.f32 %v3099_v49, %v1170_v30  ;;  %v1049_v42 = vmul.f32 -2.7261424e-10, %v3180_v54  ;;  %v1088_v43 = vmul.f32 -1.45660715e-05, %v3180_v54 }
  0xf4   : > { %v1075_v41 = vadd.f32 -0.0029546, %v1072_v55  ;;  %v1162_v35 = vmul.f32 %v1159_v36, %v3138_v25  ;;  %v1195_v47 = vmul.f32 %v1192_v39, %v3138_v25  ;;  %v3192_v50 = vmul.f32 %v3184_v40, %v3184_v40 }
  0xf5   : > { %v1113_v44 = vmul.f32 %v2678_v33, %v1083_v37  ;;  %v1203_v45 = vmul.f32 %v2680_v34, %v1173_v38  ;;  %v1052_v51 = vadd.f32 2.7706815e-08, %v1049_v42  ;;  %v1091_v18 = vadd.f32 -0.00021337405, %v1088_v43 }
  0xf6   : > { %v1078_v48 = vmul.f32 %v1075_v41, %v3130_v15  ;;  %v1165_v49 = vadd.f32 -0.0029546, %v1162_v35  ;;  %v1198_v53 = vadd.f32 -0.014264739, %v1195_v47  ;;  %v1139_v56 = vmul.f32 -2.7261424e-10, %v3192_v50 }
  0xf7   : > { %v1116_v52 = vadd.f32 1.0, %v1113_v44  ;;  %v1206_v46 = vadd.f32 1.0, %v1203_v45  ;;  %v1055_v0 = vmul.f32 %v1052_v51, %v3180_v54  ;;  %v1094_v1 = vmul.f32 %v1091_v18, %v3180_v54 }
  0xf8   : > { %v2682_v59 = vpop.eup %2681  ;;  %v1081_v62 = vadd.f32 -0.016096033, %v1078_v48  ;;  %v1168_v63 = vmul.f32 %v1165_v49, %v3138_v25  ;;  %2683 = vrcp.f32 %v1198_v53  ;;  %v1142_v15 = vadd.f32 2.7706815e-08, %v1139_v56 }
  0xf9   : > { %v1119_v2 = vmul.f32 %v1116_v52, %v3140_v27  ;;  %v1209_v3 = vmul.f32 %v1206_v46, %v1122_v20  ;;  %v1058_v6 = vadd.f32 -2.101024e-06, %v1055_v0  ;;  %v1097_v7 = vadd.f32 -0.001682827, %v1094_v1 }
  0xfa   : > { %v1084_v4 = vmul.f32 %v3121_v8, %v1081_v62  ;;  %v1171_v61 = vadd.f32 -0.016096033, %v1168_v63  ;;  %v1145_v10 = vmul.f32 %v1142_v15, %v3192_v50  ;;  %v1178_v25 = vmul.f32 -1.45660715e-05, %v3192_v50 }
  0xfb   : > { %v3201_v9 = vmax.f32 %v1119_v2, %v1209_v3  ;;  %v1061_v13 = vmul.f32 %v1058_v6, %v3180_v54  ;;  %v1100_v27 = vmul.f32 %v1097_v7, %v3180_v54  ;;  %v1033_v26 = vmul.f32 0.5, %v3111_v57 }
  0xfc   : > { %v1114_v11 = vmul.f32 %v2682_v59, %v1084_v4  ;;  %v1174_v12 = vmul.f32 %v3132_v16, %v1171_v61  ;;  %v1148_v19 = vadd.f32 -2.101024e-06, %v1145_v10  ;;  %v1181_v24 = vadd.f32 -0.00021337405, %v1178_v25 }
  0xfd   : > { %v1218_v14 = vmul.f32 0.70710677, %v3201_v9  ;;  %v1064_v17 = vadd.f32 -5.6925062e-05, %v1061_v13  ;;  %v1103_v20 = vadd.f32 -0.0073733293, %v1100_v27 }
  0xfe   : > { %v1117_v8 = vadd.f32 1.0, %v1114_v11  ;;  %v2684_v21 = vpop.eup %2683  ;;  %v1151_v23 = vmul.f32 %v1148_v19, %v3192_v50  ;;  %v1123_v32 = vmul.f32 0.5, %v3113_v58  ;;  %v1184_v55 = vmul.f32 %v1181_v24, %v3192_v50 }
  0xff   : > { %v3209_v22 = vclamps-f32 %v1218_v14, 3.832507  ;;  %v1204_v29 = vmul.f32 %v2684_v21, %v1174_v12  ;;  %v1067_v16 = vmul.f32 %v1064_v17, %v3180_v54  ;;  %v1106_v30 = vmul.f32 %v1103_v20, %v3180_v54 }
 0x100   : > { %v1154_v33 = vadd.f32 -5.6925062e-05, %v1151_v23  ;;  %v1120_v36 = vmul.f32 %v1117_v8, %v1033_v26  ;;  %v1187_v35 = vadd.f32 -0.001682827, %v1184_v55  ;;  %v1034_v24 = vmul.f32 0.5, %v3156_v60 }
 0x101   : > { %v3217_v31 = vmul.f32 %v3209_v22, %v3209_v22  ;;  %v1207_v34 = vadd.f32 1.0, %v1204_v29  ;;  %v1070_v37 = vadd.f32 -0.00073499064, %v1067_v16  ;;  %v1109_v38 = vadd.f32 -0.014264739, %v1106_v30 }
 0x102   : > { %v1157_v41 = vmul.f32 %v1154_v33, %v3192_v50  ;;  %v1190_v47 = vmul.f32 %v1187_v35, %v3192_v50  ;;  %v1124_v30 = vmul.f32 0.5, %v3162_v5  ;;  %v1215_v5 = vmul.f32 0.5, %v3201_v9 }
 0x103   : > { %v1230_v57 = vmul.f32 -2.7261424e-10, %v3217_v31  ;;  %v1269_v39 = vmul.f32 -1.45660715e-05, %v3217_v31  ;;  %v1210_v42 = vmul.f32 %v1207_v34, %v1123_v32  ;;  %v1073_v43 = vmul.f32 %v1070_v37, %v3180_v54 }
 0x104   : > { %v1160_v58 = vadd.f32 -0.00073499064, %v1157_v41  ;;  %2685 = vrcp.f32 %v1109_v38  ;;  %v1193_v46 = vadd.f32 -0.0073733293, %v1190_v47 }
 0x105   : > { %v1233_v44 = vadd.f32 2.7706815e-08, %v1230_v57  ;;  %v1272_v45 = vadd.f32 -0.00021337405, %v1269_v39  ;;  %v3226_v48 = vmax.f32 %v1120_v36, %v1210_v42  ;;  %v1076_v49 = vadd.f32 -0.0029546, %v1073_v43 }
 0x106   : > { %v1163_v52 = vmul.f32 %v1160_v58, %v3192_v50  ;;  %v1196_v0 = vmul.f32 %v1193_v46, %v3192_v50 }
 0x107   : > { %v1236_v51 = vmul.f32 %v1233_v44, %v3217_v31  ;;  %v1275_v18 = vmul.f32 %v1272_v45, %v3217_v31  ;;  %v1219_v53 = vmul.f32 0.70710677, %v3226_v48  ;;  %v1079_v56 = vmul.f32 %v1076_v49, %v3180_v54 }
 0x108   : > { %v1166_v63 = vadd.f32 -0.0029546, %v1163_v52  ;;  %v1199_v61 = vadd.f32 -0.014264739, %v1196_v0 }
 0x109   : > { %v1239_v59 = vadd.f32 -2.101024e-06, %v1236_v51  ;;  %v1278_v62 = vadd.f32 -0.001682827, %v1275_v18  ;;  %v3234_v1 = vclamps-f32 %v1219_v53, 3.832507 }
 0x10a   : > { %v1082_v2 = vadd.f32 -0.016096033, %v1079_v56  ;;  %v1169_v4 = vmul.f32 %v1166_v63, %v3192_v50  ;;  %v2686_v6 = vpop.eup %2685  ;;  %2687 = vrcp.f32 %v1199_v61 }
 0x10b   : > { %v1242_v3 = vmul.f32 %v1239_v59, %v3217_v31  ;;  %v1281_v15 = vmul.f32 %v1278_v62, %v3217_v31  ;;  %v3241_v7 = vmul.f32 %v3234_v1, %v3234_v1 }
 0x10c   : > { %v1085_v54 = vmul.f32 %v3173_v28, %v1082_v2  ;;  %v1172_v11 = vadd.f32 -0.016096033, %v1169_v4 }
 0x10d   : > { %v1245_v10 = vadd.f32 -5.6925062e-05, %v1242_v3  ;;  %v1284_v25 = vadd.f32 -0.0073733293, %v1281_v15  ;;  %v1231_v12 = vmul.f32 -2.7261424e-10, %v3241_v7 }
 0x10e   : > { %v1115_v13 = vmul.f32 %v2686_v6, %v1085_v54  ;;  %v1175_v19 = vmul.f32 %v3184_v40, %v1172_v11  ;;  %v1270_v55 = vmul.f32 -1.45660715e-05, %v3241_v7 }
 0x10f   : > { %v1248_v27 = vmul.f32 %v1245_v10, %v3217_v31  ;;  %v1287_v14 = vmul.f32 %v1284_v25, %v3217_v31  ;;  %v1234_v50 = vadd.f32 2.7706815e-08, %v1231_v12 }
 0x110   : > { %v1118_v20 = vadd.f32 1.0, %v1115_v13  ;;  %v2688_v21 = vpop.eup %2687  ;;  %v1273_v39 = vadd.f32 -0.00021337405, %v1270_v55 }
 0x111   : > { %v1251_v8 = vadd.f32 -0.00073499064, %v1248_v27  ;;  %v1290_v17 = vadd.f32 -0.014264739, %v1287_v14  ;;  %v1237_v23 = vmul.f32 %v1234_v50, %v3241_v7  ;;  %v1205_v26 = vmul.f32 %v2688_v21, %v1175_v19 }
 0x112   : > { %v1121_v16 = vmul.f32 %v1118_v20, %v1034_v24  ;;  %v1276_v44 = vmul.f32 %v1273_v39, %v3241_v7 }
 0x113   : > { %v1254_v28 = vmul.f32 %v1251_v8, %v3217_v31  ;;  %2689 = vrcp.f32 %v1290_v17  ;;  %v1208_v32 = vadd.f32 1.0, %v1205_v26  ;;  %v1240_v40 = vadd.f32 -2.101024e-06, %v1237_v23 }
 0x114   : > { %v1279_v9 = vadd.f32 -0.001682827, %v1276_v44 }
 0x115   : > { %v1257_v29 = vadd.f32 -0.0029546, %v1254_v28  ;;  %v1211_v36 = vmul.f32 %v1208_v32, %v1124_v30  ;;  %v1243_v60 = vmul.f32 %v1240_v40, %v3241_v7 }
 0x116   : > { %v1282_v56 = vmul.f32 %v1279_v9, %v3241_v7 }
 0x117   : > { %v1260_v33 = vmul.f32 %v1257_v29, %v3217_v31  ;;  %v3254_v37 = vmax.f32 %v1121_v16, %v1211_v36  ;;  %v1246_v31 = vadd.f32 -5.6925062e-05, %v1243_v60  ;;  %v1216_v29 = vmul.f32 0.5, %v3226_v48 }
 0x118   : > { %v1285_v3 = vadd.f32 -0.0073733293, %v1282_v56 }
 0x119   : > { %v1263_v34 = vadd.f32 -0.016096033, %v1260_v33  ;;  %v2690_v57 = vpop.eup %2689  ;;  %v1220_v35 = vmul.f32 0.70710677, %v3254_v37  ;;  %v1249_v47 = vmul.f32 %v1246_v31, %v3241_v7 }
 0x11a   : > { %v1288_v10 = vmul.f32 %v1285_v3, %v3241_v7 }
 0x11b   : > { %v1266_v38 = vmul.f32 %v3209_v22, %v1263_v34  ;;  %v2411_v43 = vclamps-f32 %v1220_v35, 3.832507  ;;  %v1252_v52 = vadd.f32 -0.00073499064, %v1249_v47 }
 0x11c   : > { %v1291_v27 = vadd.f32 -0.014264739, %v1288_v10 }
 0x11d   : > { %v1296_v41 = vmul.f32 %v2690_v57, %v1266_v38  ;;  %v1229_v58 = vmul.f32 %v2411_v43, %v2411_v43  ;;  %v1255_v63 = vmul.f32 %v1252_v52, %v3241_v7 }
 0x11f   : > { %v1299_v42 = vadd.f32 1.0, %v1296_v41  ;;  %v1232_v22 = vmul.f32 -2.7261424e-10, %v1229_v58  ;;  %v1271_v49 = vmul.f32 -1.45660715e-05, %v1229_v58 }
 0x120   : > { %v1258_v61 = vadd.f32 -0.0029546, %v1255_v63 }
 0x121   : > { %v3261_v45 = vmul.f32 %v1299_v42, %v1215_v5  ;;  %v1235_v51 = vadd.f32 2.7706815e-08, %v1232_v22  ;;  %v1274_v18 = vadd.f32 -0.00021337405, %v1271_v49 }
 0x122   : > { %v1261_v12 = vmul.f32 %v1258_v61, %v3241_v7 }
 0x123   : > { %1517 = vrot.lane.b32.xlu1 %v3261_v45, %s2768_s14  ;;  %1404 = vrot.lane.b32.xlu0 %v3261_v45, %s4110_s16  ;;  %v1238_v46 = vmul.f32 %v1235_v51, %v1229_v58  ;;  %v1277_v53 = vmul.f32 %v1274_v18, %v1229_v58 }
 0x124   : > { %1415 = vrot.lane.b32.xlu2 %v3261_v45, %s4106_s17  ;;  %v1264_v50 = vadd.f32 -0.016096033, %v1261_v12 }
 0x125   : > { %v1241_v59 = vadd.f32 -2.101024e-06, %v1238_v46  ;;  %v1280_v62 = vadd.f32 -0.001682827, %v1277_v53 }
 0x126   : > { %v1267_v8 = vmul.f32 %v3234_v1, %v1264_v50  ;;  %v1217_v1 = vmul.f32 0.5, %v3254_v37 }
 0x127   : > { %v1244_v0 = vmul.f32 %v1241_v59, %v1229_v58  ;;  %v1283_v2 = vmul.f32 %v1280_v62, %v1229_v58 }
 0x129   : > { %v1247_v15 = vadd.f32 -5.6925062e-05, %v1244_v0  ;;  %v1286_v4 = vadd.f32 -0.0073733293, %v1283_v2 }
 0x12b   : > { %1481 = vrot.lane.b32.xlu1 %v3261_v45, %s4096_s21  ;;  %1535 = vrot.lane.b32.xlu0 %v3261_v45, %s2772_s22  ;;  %v1250_v6 = vmul.f32 %v1247_v15, %v1229_v58  ;;  %v1289_v54 = vmul.f32 %v1286_v4, %v1229_v58  ;;  %s4102_s21 = smov 112  }
 0x12c   : > { %1526 = vrot.lane.b32.xlu2 %v3261_v45, %s4105_s23  ;;  %s2787_s23 = smov 119  }
 0x12d   : > { %v1253_v25 = vadd.f32 -0.00073499064, %v1250_v6  ;;  %v1292_v11 = vadd.f32 -0.014264739, %v1289_v54 }
 0x12f   : > { %v1256_v13 = vmul.f32 %v1253_v25, %v1229_v58  ;;  %2691 = vrcp.f32 %v1292_v11 }
 0x130   : > { %2693 = vrcp.f32 %v1291_v27 }
 0x131   : > { %v1259_v14 = vadd.f32 -0.0029546, %v1256_v13 }
 0x133   : > { %1470 = vrot.lane.b32.xlu1 %v3261_v45, %s2774_s24  ;;  %1508 = vrot.lane.b32.xlu0 %v3261_v45, %s4099_s25  ;;  %v1262_v19 = vmul.f32 %v1259_v14, %v1229_v58  ;;  %s4112_s25 = smov 72  }
 0x134   : > { %1499 = vrot.lane.b32.xlu2 %v3261_v45, %s4104_s26  ;;  %s2786_s26 = smov 114  }
 0x135   : > { %v1265_v7 = vadd.f32 -0.016096033, %v1262_v19  ;;  %v2692_v20 = vpop.eup %2691 }
 0x136   : > { %v2694_v28 = vpop.eup %2693 }
 0x137   : > { %v1268_v17 = vmul.f32 %v2411_v43, %v1265_v7  ;;  %v1297_v23 = vmul.f32 %v2694_v28, %v1267_v8 }
 0x139   : > { %v1298_v21 = vmul.f32 %v2692_v20, %v1268_v17  ;;  %v1300_v26 = vadd.f32 1.0, %v1297_v23 }
 0x13b   : > { %1448 = vrot.lane.b32.xlu1 %v3261_v45, %s4097_s27  ;;  %1490 = vrot.lane.b32.xlu0 %v3261_v45, %s2778_s28  ;;  %v1301_v24 = vadd.f32 1.0, %v1298_v21  ;;  %s4103_s27 = smov 70   ;;  %v3302_v30 = vmul.f32 %v1300_v26, %v1216_v29 }
 0x13c   : > { %1316 = vrot.lane.b32.xlu2 %v3261_v45, %s4100_s29  ;;  %s4114_s29 = smov 113  }
 0x13d   : > { %v3300_v16 = vmul.f32 %v1301_v24, %v1217_v1 }
 0x13f   : > { %v2486_v32 = vpack.i.bf16 %v3300_v16, %v3302_v30 }
 0x143   : > { %1393 = vrot.lane.b32.xlu1 %v3261_v45, %s4102_s21  ;;  %1459 = vrot.lane.b32.xlu0 %v3261_v45, %s4103_s27  ;;  %s2784_s21 = smov 77   ;;  %s4108_s27 = smov 121  }
 0x144   : > { %1437 = vrot.lane.b32.xlu2 %v3261_v45, %s4112_s25 }
 0x14b   : > { %1382 = vrot.lane.b32.xlu1 %v3261_v45, %s4114_s29  ;;  %2487 = vrot.lane.b32.xlu0 %v2486_v32, %s4106_s17  ;;  %s2788_s17 = smov 120   ;;  %s4123_s29 = smov 71  }
 0x14c   : > { %1426 = vrot.lane.b32.xlu2 %v3261_v45, %s2784_s21 }
 0x153   : > { %1338 = vrot.lane.b32.xlu1 %v3261_v45, %s4108_s27  ;;  %2522 = vrot.lane.b32.xlu0 %v2486_v32, %s2778_s28  ;;  %s4117_s28 = smov 85   ;;  %s4118_s27 = smov 92  }
 0x154   : > { %1371 = vrot.lane.b32.xlu2 %v3261_v45, %s2786_s26 }
 0x15b   : > { %2492 = vrot.lane.b32.xlu1 %v2486_v32, %s4110_s16  ;;  %2537 = vrot.lane.b32.xlu0 %v2486_v32, %s2774_s24  ;;  %s4119_s24 = smov 87   ;;  %s4120_s16 = smov 127  }
 0x15c   : > { %1360 = vrot.lane.b32.xlu2 %v3261_v45, %s2787_s23 }
 0x163   : > { %2497 = vrot.lane.b32.xlu1 %v2486_v32, %s2772_s22  ;;  %2552 = vrot.lane.b32.xlu0 %v2486_v32, %s4112_s25  ;;  %s4121_s22 = smov 94   ;;  %s4122_s25 = smov 70  }
 0x164   : > { %1349 = vrot.lane.b32.xlu2 %v3261_v45, %s2788_s17 }
 0x16b   : > { %2507 = vrot.lane.b32.xlu1 %v2486_v32, %s2768_s14  ;;  %2572 = vrot.lane.b32.xlu0 %v2486_v32, %s2786_s26  ;;  %s4124_s14 = smov 112   ;;  %s4126_s26 = smov 121  }
 0x16c   : > { %2502 = vrot.lane.b32.xlu2 %v2486_v32, %s4117_s28  ;;  %s2723_s28 = scalar_lea.hbm %s4095_s9, 2 }
 0x173   : > { %2517 = vrot.lane.b32.xlu1 %v2486_v32, %s4118_s27  ;;  %2577 = vrot.lane.b32.xlu0 %v2486_v32, %s2787_s23  ;;  %s4125_s23 = smov 113   ;;  %s4129_s27 = smov 79  }
 0x174   : > { %2512 = vrot.lane.b32.xlu2 %v2486_v32, %s4119_s24  ;;  %s2291_s24 = scalar_lea.hbm %s4095_s9, %s2862_s13 }
 0x17b   : > { %2532 = vrot.lane.b32.xlu1 %v2486_v32, %s4120_s16  ;;  %2582 = vrot.lane.b32.xlu0 %v2486_v32, %s2788_s17 }
 0x17c   : > { %2527 = vrot.lane.b32.xlu2 %v2486_v32, %s4121_s22 }
 0x17e   : > { %v3327_v48 = vpop.permute.xlu2 %1415 }
 0x183   : > { %2542 = vrot.lane.b32.xlu1 %v2486_v32, %s4122_s25  ;;  %s2789_s25 = smov 126  }
 0x184   : > { %2547 = vrot.lane.b32.xlu2 %v2486_v32, %s4123_s29 }
 0x186   : > { %v3331_v33 = vpop.permute.xlu2 %1526 }
 0x18b   : > { %2562 = vrot.lane.b32.xlu1 %v2486_v32, %s4124_s14 }
 0x18c   : > { %2557 = vrot.lane.b32.xlu2 %v2486_v32, %s2784_s21  ;;  %s2790_s21 = smov 64  }
 0x18e   : > { %v3334_v40 = vpop.permute.xlu2 %1499 }
 0x193   : > { %2567 = vrot.lane.b32.xlu1 %v2486_v32, %s4125_s23 }
 0x195   : > { %v1518_v55 = vpop.permute.xlu1 %1517  ;;  %v1405_v36 = vpop.permute.xlu0 %1404 }
 0x196   : > { %v3337_v34 = vpop.permute.xlu2 %1316 }
 0x19b   : > { %2587 = vrot.lane.b32.xlu1 %v2486_v32, %s4126_s26 }
 0x19d   : > { %v1482_v37 = vpop.permute.xlu1 %1481  ;;  %v3340_v38 = vpop.permute.xlu0 %1535 }
 0x19e   : > { %v3342_v60 = vpop.permute.xlu2 %1437 }
 0x1a3   : > { %2592 = vrot.lane.b32.xlu1 %v2486_v32, %s2789_s25 }
 0x1a5   : > { %v1471_v57 = vpop.permute.xlu1 %1470  ;;  %v3345_v39 = vpop.permute.xlu0 %1508 }
 0x1a6   : > { %v3347_v41 = vpop.permute.xlu2 %1426 }
 0x1ad   : > { %v3349_v35 = vpop.permute.xlu1 %1448  ;;  %v3351_v5 = vpop.permute.xlu0 %1490 }
 0x1ae   : > { %v3353_v42 = vpop.permute.xlu2 %1371 }
 0x1b5   : > { %v3355_v31 = vpop.permute.xlu1 %1393  ;;  %v3357_v43 = vpop.permute.xlu0 %1459 }
 0x1b6   : > { %v3359_v44 = vpop.permute.xlu2 %1360 }
 0x1bd   : > { %v3361_v58 = vpop.permute.xlu1 %1382  ;;  %v3363_v47 = vpop.permute.xlu0 %2487 }
 0x1be   : > { %v3365_v22 = vpop.permute.xlu2 %1349  ;;  %v2489_v1 = vunpack.i.l.bf16 %v3363_v47 }
 0x1c5   : > { %v3367_v49 = vpop.permute.xlu1 %1338  ;;  %v3369_v9 = vpop.permute.xlu0 %2522 }
 0x1c6   : > { %v2503_v51 = vpop.permute.xlu2 %2502 }
 0x1c7   : > { %v2505_v18 = vunpack.i.h.bf16 %v2503_v51  ;;  %v2504_v52 = vunpack.i.l.bf16 %v2503_v51 }
 0x1c9   : > { %v1534_v46 = vsel %vm1532_vm2, %v2504_v52, %v2505_v18  ;;  %v1533_v51 = vsel %vm1532_vm2, %v3331_v33, %v2504_v52  ;;  %vm1388_vm2 = vcmask 924672  }
 0x1ca   : > { %v2631_v53 = vpack.i.bf16 %v2505_v18, %v1534_v46 }
 0x1cc   : > { %2632 = vrot.lane.b32.xlu1 %v2631_v53, %s2790_s21 }
 0x1cd   : > { %v3373_v56 = vpop.permute.xlu1 %2492  ;;  %v2538_v59 = vpop.permute.xlu0 %2537 }
 0x1ce   : > { %v2540_v62 = vunpack.i.h.bf16 %v2538_v59  ;;  %v2539_v63 = vunpack.i.l.bf16 %v2538_v59  ;;  %v3375_v0 = vpop.permute.xlu2 %2512  ;;  %v2494_v54 = vunpack.i.l.bf16 %v3373_v56 }
 0x1d0   : > { %v1477_v2 = vsel %vm1476_vm3, %v1471_v57, %v2539_v63  ;;  %v1478_v3 = vsel %vm1476_vm3, %v2539_v63, %v2540_v62  ;;  %v3389_v13 = vsel %vm1410_vm5, %v1405_v36, %v2494_v54  ;;  %v1422_v36 = vsel %vm1421_vm9, %v3327_v48, %v2489_v1 }
 0x1d1   : > { %1667 = vmatpush.msrb.mxu0 %v1477_v2  ;;  %1707 = vmatpush.msra.mxu2 %v1478_v3  ;;  %v2514_v57 = vunpack.i.l.bf16 %v3375_v0  ;;  %vm1377_vm3 = vcmask 932864  }
 0x1d3   : > { %v1515_v2 = vsel %vm1514_vm10, %v3345_v39, %v2514_v57 }
 0x1d5   : > { %v3377_v15 = vpop.permute.xlu1 %2497  ;;  %v2553_v24 = vpop.permute.xlu0 %2552 }
 0x1d6   : > { %v3379_v4 = vpop.permute.xlu2 %2527  ;;  %v2500_v19 = vunpack.i.h.bf16 %v3377_v15  ;;  %v2499_v7 = vunpack.i.l.bf16 %v3377_v15 }
 0x1d7   : > { %v2529_v61 = vunpack.i.l.bf16 %v3379_v4  ;;  %v2530_v10 = vunpack.i.h.bf16 %v3379_v4  ;;  %v2555_v4 = vunpack.i.h.bf16 %v2553_v24 }
 0x1d8   : > { %v1543_v17 = vsel %vm1541_vm7, %v2499_v7, %v2500_v19 }
 0x1d9   : > { %v3382_v6 = vsel %vm1487_vm4, %v1482_v37, %v2529_v61  ;;  %v1489_v14 = vsel %vm1487_vm4, %v2529_v61, %v2530_v10  ;;  %v2626_v28 = vpack.i.bf16 %v2500_v19, %v1543_v17  ;;  %v2515_v37 = vunpack.i.h.bf16 %v3375_v0 }
 0x1da   : > { %v2554_v61 = vunpack.i.l.bf16 %v2553_v24  ;;  %v2495_v24 = vunpack.i.h.bf16 %v3373_v56  ;;  %vm1366_vm4 = vcmask 973824  }
 0x1db   : > { %v1516_v48 = vsel %vm1514_vm10, %v2514_v57, %v2515_v37  ;;  %vm1344_vm10 = vcmask 990208  }
 0x1dc   : > { %v2641_v0 = vpack.i.bf16 %v2515_v37, %v1516_v48  ;;  %v1445_v17 = vsel %vm1443_vm14, %v2554_v61, %v2555_v4 }
 0x1dd   : > { %v2508_v25 = vpop.permute.xlu1 %2507  ;;  %v3428_v53 = vpop.permute.xlu0 %2572 }
 0x1de   : > { %v2510_v11 = vunpack.i.h.bf16 %v2508_v25  ;;  %v2509_v12 = vunpack.i.l.bf16 %v2508_v25  ;;  %v2548_v29 = vpop.permute.xlu2 %2547  ;;  %v2575_v56 = vunpack.i.h.bf16 %v3428_v53 }
 0x1df   : > { %v2550_v62 = vunpack.i.h.bf16 %v2548_v29  ;;  %v2549_v63 = vunpack.i.l.bf16 %v2548_v29 }
 0x1e0   : > { %v2601_v27 = vpack.i.bf16 %v3389_v13, %v2510_v11  ;;  %v1524_v50 = vsel %vm1523_vm6, %v1518_v55, %v2509_v12 }
 0x1e1   : > { %v2656_v8 = vpack.i.bf16 %v1489_v14, %v1524_v50  ;;  %v1455_v39 = vsel %vm1454_vm13, %v3349_v35, %v2549_v63 }
 0x1e2   : > { %2602 = vrot.lane.b32.xlu2 %v2601_v27, %s2790_s21 }
 0x1e3   : > { %2657 = vrot.lane.b32.xlu1 %v2656_v8, %s2790_s21  ;;  %v1456_v8 = vsel %vm1454_vm13, %v2549_v63, %v2550_v62 }
 0x1e5   : > { %v3400_v20 = vpop.permute.xlu1 %2517 }
 0x1e6   : > { %v2519_v21 = vunpack.i.l.bf16 %v3400_v20  ;;  %v2520_v32 = vunpack.i.h.bf16 %v3400_v20  ;;  %v2558_v3 = vpop.permute.xlu2 %2557 }
 0x1e7   : > { %v2560_v50 = vunpack.i.h.bf16 %v2558_v3  ;;  %v2559_v19 = vunpack.i.l.bf16 %v2558_v3 }
 0x1e8   : > { %v1506_v23 = vsel %vm1505_vm8, %v3334_v40, %v2519_v21  ;;  %v1525_v40 = vsel %vm1523_vm6, %v2509_v12, %v2510_v11  ;;  %v2606_v46 = vpack.i.bf16 %v1533_v51, %v2520_v32  ;;  %v2611_v12 = vpack.i.bf16 %v1515_v2, %v2530_v10 }
 0x1e9   : > { %v2596_v26 = vpack.i.bf16 %v3302_v30, %v1506_v23  ;;  %v2636_v18 = vpack.i.bf16 %v1525_v40, %v1422_v36  ;;  %v1444_v10 = vsel %vm1443_vm14, %v3342_v60, %v2554_v61  ;;  %v1434_v29 = vsel %vm1432_vm15, %v2559_v19, %v2560_v50 }
 0x1ea   : > { %2627 = vrot.lane.b32.xlu2 %v2626_v28, %s2790_s21  ;;  %v2578_v28 = vpop.permute.xlu0 %2577  ;;  %v2524_v40 = vunpack.i.l.bf16 %v3369_v9  ;;  %vm1355_vm6 = vcmask 982016  }
 0x1eb   : > { %2597 = vrot.lane.b32.xlu0 %v2596_v26, %s2790_s21  ;;  %1327 = vrot.lane.b32.xlu1 %v3261_v45, %s2789_s25  ;;  %v1433_v26 = vsel %vm1432_vm15, %v3347_v41, %v2559_v19  ;;  %v1412_v41 = vsel %vm1410_vm5, %v2494_v54, %v2495_v24  ;;  %v2574_v54 = vunpack.i.l.bf16 %v3428_v53  ;;  %v2579_v63 = vunpack.i.l.bf16 %v2578_v28  ;;  %s4127_s25 = smov 72  }
 0x1ec   : > { %v2525_v19 = vunpack.i.h.bf16 %v3369_v9 }
 0x1ed   : > { %v3414_v55 = vpop.permute.xlu1 %2532  ;;  %v1378_v53 = vsel %vm1377_vm3, %v3353_v42, %v2574_v54  ;;  %v1379_v3 = vsel %vm1377_vm3, %v2574_v54, %v2575_v56 }
 0x1ee   : > { %v2535_v27 = vunpack.i.h.bf16 %v3414_v55  ;;  %v2534_v14 = vunpack.i.l.bf16 %v3414_v55 }
 0x1f0   : > { %v3449_v23 = vsel %vm1322_vm12, %v2534_v14, %v2535_v27 }
 0x1f1   : > { %v2661_v37 = vpack.i.bf16 %v2535_v27, %v3449_v23 }
 0x1f2   : > { %2637 = vrot.lane.b32.xlu2 %v2636_v18, %s2790_s21 }
 0x1f3   : > { %1544 = vrot.lane.b32.xlu1 %v3261_v45, %s2790_s21  ;;  %2607 = vrot.lane.b32.xlu0 %v2606_v46, %s2790_s21 }
 0x1f5   : > { %v2543_v59 = vpop.permute.xlu1 %2542 }
 0x1f6   : > { %v2545_v33 = vunpack.i.h.bf16 %v2543_v59  ;;  %v2544_v52 = vunpack.i.l.bf16 %v2543_v59  ;;  %v2583_v59 = vpop.permute.xlu0 %2582 }
 0x1f7   : > { %v2584_v2 = vunpack.i.l.bf16 %v2583_v59 }
 0x1f8   : > { %v1466_v25 = vsel %vm1465_vm11, %v3357_v43, %v2544_v52  ;;  %v1467_v11 = vsel %vm1465_vm11, %v2544_v52, %v2545_v33  ;;  %v2490_v43 = vunpack.i.h.bf16 %v3363_v47  ;;  %vm1333_vm11 = vcmask 1031168  }
 0x1f9   : > { %1668 = vmatpush.msrb.mxu0 %v1466_v25  ;;  %1708 = vmatpush.msra.mxu2 %v1467_v11  ;;  %v1356_v11 = vsel %vm1355_vm6, %v3365_v22, %v2584_v2  ;;  %v1542_v22 = vsel %vm1541_vm7, %v3340_v38, %v2499_v7  ;;  %v1323_v38 = vsel %vm1322_vm12, %v3337_v34, %v2534_v14  ;;  %vm1610_vm7 = vcmask 523264  }
 0x1fa   : > { %2642 = vrot.lane.b32.xlu2 %v2641_v0, %s2790_s21  ;;  %v1423_v60 = vsel %vm1421_vm9, %v2489_v1, %v2490_v43  ;;  %v2585_v0 = vunpack.i.h.bf16 %v2583_v59  ;;  %v2671_v7 = vpack.i.bf16 %v1323_v38, %v3382_v6 }
 0x1fb   : > { %1669 = vmatpush.msrb.mxu0 %v1455_v39  ;;  %1709 = vmatpush.msra.mxu2 %v1456_v8  ;;  %v2616_v18 = vpack.i.bf16 %v2490_v43, %v1423_v60 }
 0x1fc   : > { %2612 = vrot.lane.b32.xlu0 %v2611_v12, %s2790_s21  ;;  %v1357_v42 = vsel %vm1355_vm6, %v2584_v2, %v2585_v0 }
 0x1fd   : > { %v2563_v35 = vpop.permute.xlu1 %2562  ;;  %1670 = vmatpush.msrb.mxu0 %v1444_v10  ;;  %1710 = vmatpush.msra.mxu2 %v1445_v17 }
 0x1fe   : > { %v2565_v57 = vunpack.i.h.bf16 %v2563_v35  ;;  %v2564_v51 = vunpack.i.l.bf16 %v2563_v35 }
 0x1ff   : > { %1671 = vmatpush.msrb.mxu0 %v1433_v26  ;;  %1711 = vmatpush.msra.mxu2 %v1434_v29  ;;  %v1655_v26 = vld [vmem:[%s4089_s3] sm:$0xff] }
 0x200   : > { %v1400_v47 = vsel %vm1399_vm1, %v3355_v31, %v2564_v51  ;;  %v1401_v1 = vsel %vm1399_vm1, %v2564_v51, %v2565_v57  ;;  %v2580_v31 = vunpack.i.h.bf16 %v2578_v28 }
 0x201   : > { %1672 = vmatpush.msrb.mxu0 %v1422_v36  ;;  %1712 = vmatpush.msra.mxu2 %v1423_v60  ;;  %v1497_v36 = vsel %vm1496_vm0, %v3351_v5, %v2524_v40  ;;  %v2621_v5 = vpack.i.bf16 %v2495_v24, %v1412_v41 }
 0x202   : > { %2662 = vrot.lane.b32.xlu2 %v2661_v37, %s2790_s21  ;;  %v2666_v62 = vpack.i.bf16 %v1497_v36, %v3300_v16  ;;  %v1367_v16 = vsel %vm1366_vm4, %v3359_v44, %v2579_v63  ;;  %v1507_v44 = vsel %vm1505_vm8, %v2519_v21, %v2520_v32  ;;  %vm1663_vm8 = vcmask 719872  }
 0x203   : > { %1673 = vmatpush.msrb.mxu0 %v3389_v13  ;;  %1713 = vmatpush.msra.mxu2 %v1412_v41  ;;  %v2646_v50 = vpack.i.bf16 %v1507_v44, %v1542_v22 }
 0x204   : > { %2617 = vrot.lane.b32.xlu0 %v2616_v18, %s2790_s21 }
 0x205   : > { %v2568_v46 = vpop.permute.xlu1 %2567  ;;  %1674 = vmatpush.msrb.mxu0 %v1400_v47  ;;  %1714 = vmatpush.msra.mxu2 %v1401_v1  ;;  %v1657_v47 = vld [vmem:[%s4090_s4] sm:$0xff] }
 0x206   : > { %v2570_v13 = vunpack.i.h.bf16 %v2568_v46  ;;  %v2569_v48 = vunpack.i.l.bf16 %v2568_v46 }
 0x208   : > { %v1389_v33 = vsel %vm1388_vm2, %v3361_v58, %v2569_v48  ;;  %v1390_v52 = vsel %vm1388_vm2, %v2569_v48, %v2570_v13  ;;  %v1368_v58 = vsel %vm1366_vm4, %v2579_v63, %v2580_v31 }
 0x209   : > { %1675 = vmatpush.msrb.mxu0 %v1389_v33  ;;  %1715 = vmatpush.msra.mxu2 %v1390_v52 }
 0x20a   : > { %2667 = vrot.lane.b32.xlu2 %v2666_v62, %s2790_s21 }
 0x20b   : > { %1676 = vmatpush.msrb.mxu0 %v1378_v53  ;;  %1716 = vmatpush.msra.mxu2 %v1379_v3 }
 0x20c   : > { %2622 = vrot.lane.b32.xlu0 %v2621_v5, %s2790_s21 }
 0x20d   : > { %v2588_v4 = vpop.permute.xlu1 %2587  ;;  %1677 = vmatpush.msrb.mxu0 %v1367_v16  ;;  %1717 = vmatpush.msra.mxu2 %v1368_v58 }
 0x20e   : > { %v2590_v61 = vunpack.i.h.bf16 %v2588_v4  ;;  %v2589_v25 = vunpack.i.l.bf16 %v2588_v4 }
 0x20f   : > { %1678 = vmatpush.msrb.mxu0 %v1356_v11  ;;  %1718 = vmatpush.msra.mxu2 %v1357_v42 }
 0x210   : > { %v1345_v12 = vsel %vm1344_vm10, %v3367_v49, %v2589_v25  ;;  %v1346_v27 = vsel %vm1344_vm10, %v2589_v25, %v2590_v61  ;;  %v1498_v49 = vsel %vm1496_vm0, %v2524_v40, %v2525_v19 }
 0x211   : > { %1679 = vmatpush.msrb.mxu0 %v1345_v12  ;;  %1719 = vmatpush.msra.mxu2 %v1346_v27  ;;  %v2651_v15 = vpack.i.bf16 %v2525_v19, %v1498_v49 }
 0x212   : > { %1660 = vperm.xlu2 %2676, %v1657_v47  }
 0x214   : > { %2647 = vrot.lane.b32.xlu0 %v2646_v50, %s2790_s21 }
 0x215   : > { %v2593_v20 = vpop.permute.xlu1 %2592 }
 0x216   : > { %v2595_v21 = vunpack.i.h.bf16 %v2593_v20  ;;  %v2594_v32 = vunpack.i.l.bf16 %v2593_v20 }
 0x218   : > { %v1335_v39 = vsel %vm1333_vm11, %v2594_v32, %v2595_v21 }
 0x219   : > { %1720 = vmatpush.msra.mxu2 %v1335_v39 }
 0x21b   : > { %1721 = vmatpush.msra.mxu2 %v3449_v23 }
 0x21c   : > { %2652 = vrot.lane.b32.xlu0 %v2651_v15, %s2790_s21 }
 0x21d   : > { %1722 = vmatpush.msra.mxu2 %v3302_v30 }
 0x21e   : > { %1723 = vmatmul.f32.vlgmr.msra.gmra.mxu2 %v1655_v26 }
 0x224   : > { %2672 = vrot.lane.b32.xlu0 %v2671_v7, %s2790_s21  ;;  %s4128_s21 = smov 78  }
 0x23c   : > { %v2603_v43 = vpop.permute.xlu2 %2602 }
 0x23d   : > { %v2605_v40 = vunpack.i.h.bf16 %v2603_v43  ;;  %v2604_v59 = vunpack.i.l.bf16 %v2603_v43 }
 0x23e   : > { %v3507_v9 = vpop.permute.xlu1 %2632 }
 0x23f   : > { %v2635_v1 = vunpack.i.h.bf16 %v3507_v9  ;;  %v2634_v36 = vunpack.i.l.bf16 %v3507_v9 }
 0x241   : > { %v1626_v63 = vsel %vm1610_vm7, %v2634_v36, %v2635_v1 }
 0x244   : > { %v2628_v34 = vpop.permute.xlu2 %2627 }
 0x245   : > { %v2630_v57 = vunpack.i.h.bf16 %v2628_v34  ;;  %v2629_v51 = vunpack.i.l.bf16 %v2628_v34 }
 0x247   : > { %v1628_v13 = vsel %vm1610_vm7, %v2629_v51, %v2630_v57 }
 0x24c   : > { %v2638_v6 = vpop.permute.xlu2 %2637 }
 0x24d   : > { %v2639_v23 = vunpack.i.l.bf16 %v2638_v6  ;;  %v2640_v54 = vunpack.i.h.bf16 %v2638_v6 }
 0x24f   : > { %v1624_v2 = vsel %vm1610_vm7, %v2640_v54, %v2604_v59 }
 0x254   : > { %v2643_v60 = vpop.permute.xlu2 %2642 }
 0x255   : > { %v3509_v8 = vpop.permute.xlu1 %2657  ;;  %v2645_v62 = vunpack.i.h.bf16 %v2643_v60  ;;  %v2644_v31 = vunpack.i.l.bf16 %v2643_v60 }
 0x256   : > { %v2659_v53 = vunpack.i.l.bf16 %v3509_v8  ;;  %v2660_v20 = vunpack.i.h.bf16 %v3509_v8 }
 0x257   : > { %v1622_v58 = vsel %vm1610_vm7, %v2644_v31, %v2645_v62 }
 0x258   : > { %v1623_v11 = vsel %vm1610_vm7, %v2659_v53, %v2640_v54 }
 0x25c   : > { %v3530_v48 = vpop.permute.xlu2 %2662 }
 0x25d   : > { %v3511_v10 = vpop.permute.xlu0 %2597  ;;  %v1328_v17 = vpop.permute.xlu1 %1327  ;;  %v2665_v21 = vunpack.i.h.bf16 %v3530_v48 }
 0x25e   : > { %v1334_v28 = vsel %vm1333_vm11, %v1328_v17, %v2594_v32  ;;  %v2599_v42 = vunpack.i.l.bf16 %v3511_v10  ;;  %v2664_v32 = vunpack.i.l.bf16 %v3530_v48  ;;  %v2600_v8 = vunpack.i.h.bf16 %v3511_v10 }
 0x25f   : > { %1680 = vmatpush.msrb.mxu0 %v1334_v28  ;;  %v1656_v28 = vld [vmem:[%s4089_s3 + $0x8] sm:$0xff] }
 0x260   : > { %v1614_v43 = vsel %vm1610_vm7, %v2664_v32, %v2665_v21 }
 0x261   : > { %1681 = vmatpush.msrb.mxu0 %v1323_v38 }
 0x263   : > { %1682 = vmatpush.msrb.mxu0 %v3261_v45 }
 0x264   : > { %1683 = vmatmul.f32.vlgmr.msrb.gmra.mxu0 %v1655_v26  ;;  %v2668_v44 = vpop.permute.xlu2 %2667 }
 0x265   : > { %v2608_v30 = vpop.permute.xlu0 %2607  ;;  %v2670_v49 = vunpack.i.h.bf16 %v2668_v44  ;;  %v2669_v38 = vunpack.i.l.bf16 %v2668_v44 }
 0x266   : > { %v2610_v52 = vunpack.i.h.bf16 %v2608_v30  ;;  %v2609_v3 = vunpack.i.l.bf16 %v2608_v30 }
 0x268   : > { %v1625_v61 = vsel %vm1610_vm7, %v2610_v52, %v2634_v36 }
 0x26e   : > { %v3515_v55 = vpop.permute.xlu0 %2612 }
 0x26f   : > { %v2615_v4 = vunpack.i.h.bf16 %v3515_v55  ;;  %v2614_v27 = vunpack.i.l.bf16 %v3515_v55  ;;  %v1612_v55 = vsel %vm1610_vm7, %v2600_v8, %v2669_v38 }
 0x271   : > { %v1621_v19 = vsel %vm1610_vm7, %v2615_v4, %v2644_v31  ;;  %v1616_v9 = vsel %vm1610_vm7, %v2660_v20, %v2614_v27 }
 0x276   : > { %v2618_v14 = vpop.permute.xlu0 %2617 }
 0x277   : > { %v2620_v35 = vunpack.i.h.bf16 %v2618_v14  ;;  %v2619_v24 = vunpack.i.l.bf16 %v2618_v14  ;;  %v1545_v14 = vpop.permute.xlu1 %1544 }
 0x279   : > { %v1631_v29 = vsel %vm1610_vm7, %v2639_v23, %v2619_v24  ;;  %v1632_v45 = vsel %vm1610_vm7, %v2619_v24, %v2620_v35  ;;  %v1611_v23 = vsel %vm1610_vm7, %v1545_v14, %v2600_v8  ;;  %v1661_v35 = vpop.permute.xlu2 %1660 }
 0x27a   : > { %1692 = vmatpush.msra.mxu1 %v1631_v29  ;;  %1732 = vmatpush.msrb.mxu3 %v1632_v45 }
 0x27e   : > { %v2623_v37 = vpop.permute.xlu0 %2622 }
 0x27f   : > { %v2625_v18 = vunpack.i.h.bf16 %v2623_v37  ;;  %v2624_v41 = vunpack.i.l.bf16 %v2623_v37 }
 0x281   : > { %v1629_v46 = vsel %vm1610_vm7, %v2605_v40, %v2624_v41  ;;  %v1630_v56 = vsel %vm1610_vm7, %v2624_v41, %v2625_v18 }
 0x282   : > { %1693 = vmatpush.msra.mxu1 %v1629_v46  ;;  %1733 = vmatpush.msrb.mxu3 %v1630_v56 }
 0x284   : > { %1734 = vmatpush.msrb.mxu3 %v1628_v13 }
 0x286   : > { %v2648_v33 = vpop.permute.xlu0 %2647  ;;  %1735 = vmatpush.msrb.mxu3 %v1626_v63 }
 0x287   : > { %v2650_v5 = vunpack.i.h.bf16 %v2648_v33  ;;  %v2649_v0 = vunpack.i.l.bf16 %v2648_v33 }
 0x288   : > { %1736 = vmatpush.msrb.mxu3 %v1624_v2 }
 0x289   : > { %v1627_v16 = vsel %vm1610_vm7, %v2649_v0, %v2629_v51  ;;  %v1620_v25 = vsel %vm1610_vm7, %v2650_v5, %v2609_v3  ;;  %v1619_v39 = vsel %vm1610_vm7, %v2599_v42, %v2650_v5 }
 0x28a   : > { %1694 = vmatpush.msra.mxu1 %v1627_v16  ;;  %1737 = vmatpush.msrb.mxu3 %v1622_v58 }
 0x28c   : > { %1695 = vmatpush.msra.mxu1 %v1625_v61  ;;  %1738 = vmatpush.msrb.mxu3 %v1620_v25 }
 0x28e   : > { %v2653_v12 = vpop.permute.xlu0 %2652  ;;  %1696 = vmatpush.msra.mxu1 %v1623_v11 }
 0x28f   : > { %v2655_v22 = vunpack.i.h.bf16 %v2653_v12  ;;  %v2654_v50 = vunpack.i.l.bf16 %v2653_v12 }
 0x290   : > { %1697 = vmatpush.msra.mxu1 %v1621_v19 }
 0x291   : > { %v1618_v15 = vsel %vm1610_vm7, %v2654_v50, %v2655_v22  ;;  %v1617_v7 = vsel %vm1610_vm7, %v2670_v49, %v2654_v50 }
 0x292   : > { %1698 = vmatpush.msra.mxu1 %v1619_v39  ;;  %1739 = vmatpush.msrb.mxu3 %v1618_v15 }
 0x294   : > { %1699 = vmatpush.msra.mxu1 %v1617_v7  ;;  %1740 = vmatpush.msrb.mxu3 %v1616_v9 }
 0x296   : > { %v2673_v17 = vpop.permute.xlu0 %2672  ;;  %1741 = vmatpush.msrb.mxu3 %v1614_v43 }
 0x297   : > { %v2675_v30 = vunpack.i.h.bf16 %v2673_v17  ;;  %v2674_v34 = vunpack.i.l.bf16 %v2673_v17 }
 0x298   : > { %1742 = vmatpush.msrb.mxu3 %v1612_v55 }
 0x299   : > { %2413 = vmatmul.msk.f32.vlgmr.msrb.gmra.mxu3 %vm1663_vm8, %v1656_v28  ;;  %v1615_v6 = vsel %vm1610_vm7, %v2674_v34, %v2660_v20  ;;  %v1613_v10 = vsel %vm1610_vm7, %v2675_v30, %v2664_v32 }
 0x29a   : > { %1700 = vmatpush.msra.mxu1 %v1615_v6 }
 0x29c   : > { %1701 = vmatpush.msra.mxu1 %v1613_v10 }
 0x29e   : > { %1702 = vmatpush.msra.mxu1 %v1611_v23 }
 0x29f   : > { %2412 = vmatmul.msk.f32.vlgmr.msra.gmra.mxu1 %vm1663_vm8, %v1656_v28 }
 0x2a1   : > { %v1724_v60 = vpop.f32.mrf.mxu2 }
 0x2a2   : > { %v1725_v40 = vadd.f32 %v1724_v60, %v1661_v35  ;;  %v1931_v60 = vld [vmem:[%s4091_s5 + $0x78] sm:$0xff] }
 0x2a3   : > { %2044 = vmatpush.msrb.mxu1 %v1931_v60  ;;  %v1955_v60 = vld [vmem:[%s4091_s5 + $0x138] sm:$0xff] }
 0x2e1   : > { %v1684_v24 = vpop.f32.mrf.mxu0 }
 0x2e2   : > { %v1685_v26 = vadd.f32 %v1684_v24, %v1661_v35 }
 0x31c   : > { %v1704_v29 = vpop.f32.mrf.mxu1  ;;  %v1744_v37 = vpop.f32.mrf.mxu3 }
 0x31d   : > { %v1705_v45 = vadd.f32 %v1704_v29, %v1685_v26  ;;  %v1745_v57 = vadd.f32 %v1744_v37, %v1725_v40 }
 0x31f   : > { %1770 = vrot.lane.b32.xlu1 %v1705_v45, %s2788_s17  ;;  %1762 = vrot.lane.b32.xlu2 %v1705_v45, %s4126_s26 }
 0x320   : > { %1754 = vrot.lane.b32.xlu0 %v1705_v45, %s4120_s16 }
 0x327   : > { %1794 = vrot.lane.b32.xlu1 %v1705_v45, %s4127_s25  ;;  %1786 = vrot.lane.b32.xlu2 %v1705_v45, %s4128_s21 }
 0x328   : > { %1778 = vrot.lane.b32.xlu0 %v1705_v45, %s4129_s27 }
 0x32f   : > { %1772 = vrot.lane.b32.xlu2 %v1745_v57, %s2788_s17  ;;  %1756 = vrot.lane.b32.xlu1 %v1745_v57, %s4120_s16 }
 0x330   : > { %1764 = vrot.lane.b32.xlu0 %v1745_v57, %s4126_s26 }
 0x337   : > { %1796 = vrot.lane.b32.xlu2 %v1745_v57, %s4127_s25  ;;  %1780 = vrot.lane.b32.xlu1 %v1745_v57, %s4129_s27 }
 0x338   : > { %1788 = vrot.lane.b32.xlu0 %v1745_v57, %s4128_s21  ;;  %s2295_s21 = sshll.u32 %s2291_s24, 4  ;;  %s2296_s21 = int_to_ptr.hbm [resolvable:$true] %s2295_s21 }
 0x339   : > { %s2717_s16 = sshra.s32 %s2296_s21, 4  ;;  %s2718_s16 = int_to_ptr.hbm [resolvable:$true] %s2717_s16 }
 0x33a   : > { %s2719_s17 = scalar_lea.hbm %s2718_s16, 1  ;;  %p2724_p0 = scmp.lt.s32.totalorder %s2718_s16, %s4095_s9 }
 0x33b   : > { %p2720_p11 = scmp.ne.s32.totalorder %s2718_s16, %s2719_s17  ;;  %p2725_p1 = scmp.lt.s32.totalorder %s2723_s28, %s2719_s17 }
 0x33d   : > { %p2721_p12 = pnand %p2720_p11, %p2879_p5  ;;  %p2726_p2 = por %p2725_p1, %p2724_p0 }
 0x33f   : > { %1804 = vrot.lane.b32.xlu1 %v1745_v57, %s4123_s29  ;;  %p2722_p13 = pneg %p2721_p12 }
 0x340   : > { %1802 = vrot.lane.b32.xlu0 %v1705_v45, %s4123_s29  ;;  %s323_s29 = sand.u32 1, %s2757_s10  }
 0x341   : > { %s324_s23 = scalar_lea.vmem [#allocation4], %s323_s29  ;;  %s2283_s27 = scalar_lea.sflag [#allocation5], %s323_s29 }
 0x342   : > { %s2293_s25 = sshll.u32 %s324_s23, 4  ;;  %p2727_p3 = pnand %p2726_p2, %p2722_p13  ;;  %s2294_s25 = int_to_ptr.vmem [resolvable:$true] %s2293_s25 }
 0x379   : > { %v1763_v18 = vpop.permute.xlu2 %1762 }
 0x381   : > { %v1787_v36 = vpop.permute.xlu2 %1786 }
 0x389   : > { %v1773_v63 = vpop.permute.xlu2 %1772 }
 0x391   : > { %v1771_v51 = vpop.permute.xlu1 %1770  ;;  %v1797_v25 = vpop.permute.xlu2 %1796 }
 0x392   : > { %v1755_v41 = vpop.permute.xlu0 %1754  ;;  %v1774_v33 = vsel %vm1355_vm6, %v1771_v51, %v1773_v63 }
 0x399   : > { %v1795_v47 = vpop.permute.xlu1 %1794 }
 0x39a   : > { %v1779_v1 = vpop.permute.xlu0 %1778  ;;  %v1798_v11 = vsel %vm1443_vm14, %v1795_v47, %v1797_v25  ;;  %v1947_v47 = vld [vmem:[%s4091_s5 + $0xf8] sm:$0xff]  ;;  %v1960_v25 = vld [vmem:[%s4091_s5 + $0x160] sm:$0xff] }
 0x39b   : > { %2064 = vmatpush.msra.mxu3 %v1947_v47  ;;  %v1954_v47 = vld [vmem:[%s4091_s5 + $0x130] sm:$0xff] }
 0x3a1   : > { %v1757_v46 = vpop.permute.xlu1 %1756 }
 0x3a2   : > { %v1765_v56 = vpop.permute.xlu0 %1764  ;;  %v1758_v54 = vsel %vm1322_vm12, %v1755_v41, %v1757_v46  ;;  %v1930_v41 = vld [vmem:[%s4091_s5 + $0x70] sm:$0xff] }
 0x3a3   : > { %v1760_v13 = vmax.f32 %v1705_v45, %v1758_v54  ;;  %v1761_v48 = vmin.f32 %v1705_v45, %v1758_v54  ;;  %v1766_v59 = vsel %vm1344_vm10, %v1763_v18, %v1765_v56  ;;  %2045 = vmatpush.msrb.mxu1 %v1930_v41  ;;  %v1979_v54 = vld [vmem:[%s4091_s5 + $0x1f8] sm:$0xff]  ;;  %v1921_v41 = vld [vmem:[%s4091_s5 + $0x28] sm:$0xff] }
 0x3a4   : > { %2104 = vmatpush.msrb.mxu2 %v1979_v54  ;;  %v1953_v54 = vld [vmem:[%s4091_s5 + $0x128] sm:$0xff] }
 0x3a5   : > { %v1768_v62 = vmax.f32 %v1760_v13, %v1766_v59  ;;  %v1769_v31 = vmin.f32 %v1761_v48, %v1766_v59  ;;  %v1929_v13 = vld [vmem:[%s4091_s5 + $0x68] sm:$0xff]  ;;  %v1946_v48 = vld [vmem:[%s4091_s5 + $0xf0] sm:$0xff] }
 0x3a6   : > { %2046 = vmatpush.msrb.mxu1 %v1929_v13  ;;  %2065 = vmatpush.msra.mxu3 %v1946_v48  ;;  %v1969_v13 = vld [vmem:[%s4091_s5 + $0x1a8] sm:$0xff] }
 0x3a7   : > { %v1776_v52 = vmax.f32 %v1768_v62, %v1774_v33  ;;  %v1777_v5 = vmin.f32 %v1769_v31, %v1774_v33  ;;  %v1962_v62 = vld [vmem:[%s4091_s5 + $0x170] sm:$0xff] }
 0x3a8   : > { %v1978_v31 = vld [vmem:[%s4091_s5 + $0x1f0] sm:$0xff] }
 0x3a9   : > { %v1781_v0 = vpop.permute.xlu1 %1780  ;;  %2105 = vmatpush.msrb.mxu2 %v1978_v31  ;;  %v1952_v31 = vld [vmem:[%s4091_s5 + $0x120] sm:$0xff] }
 0x3aa   : > { %v1789_v2 = vpop.permute.xlu0 %1788  ;;  %v1782_v53 = vsel %vm1410_vm5, %v1779_v1, %v1781_v0  ;;  %v1963_v1 = vld [vmem:[%s4091_s5 + $0x178] sm:$0xff]  ;;  %v1928_v0 = vld [vmem:[%s4091_s5 + $0x60] sm:$0xff]  ;;  %vm2204_vm5 = vcmask 253952  }
 0x3ab   : > { %v1784_v3 = vmax.f32 %v1776_v52, %v1782_v53  ;;  %v1785_v16 = vmin.f32 %v1777_v5, %v1782_v53  ;;  %v1790_v58 = vsel %vm1421_vm9, %v1787_v36, %v1789_v2  ;;  %2084 = vmatpush.msra.mxu0 %v1963_v1  ;;  %v1945_v2 = vld [vmem:[%s4091_s5 + $0xe8] sm:$0xff]  ;;  %2047 = vmatpush.msrb.mxu1 %v1928_v0  ;;  %v1951_v0 = vld [vmem:[%s4091_s5 + $0x118] sm:$0xff]  ;;  %vm2257_vm9 = vcmask 261120  }
 0x3ac   : > { %v1961_v53 = vld [vmem:[%s4091_s5 + $0x168] sm:$0xff]  ;;  %2066 = vmatpush.msra.mxu3 %v1945_v2  ;;  %v1967_v2 = vld [vmem:[%s4091_s5 + $0x198] sm:$0xff] }
 0x3ad   : > { %v1792_v4 = vmax.f32 %v1784_v3, %v1790_v58  ;;  %v1793_v61 = vmin.f32 %v1785_v16, %v1790_v58  ;;  %2085 = vmatpush.msra.mxu0 %v1962_v62  ;;  %v1977_v58 = vld [vmem:[%s4091_s5 + $0x1e8] sm:$0xff]  ;;  %v1936_v62 = vld [vmem:[%s4091_s5 + $0xa0] sm:$0xff] }
 0x3ae   : > { %2106 = vmatpush.msrb.mxu2 %v1977_v58  ;;  %v1950_v58 = vld [vmem:[%s4091_s5 + $0x110] sm:$0xff] }
 0x3af   : > { %v1800_v12 = vmax.f32 %v1792_v4, %v1798_v11  ;;  %v1801_v27 = vmin.f32 %v1793_v61, %v1798_v11  ;;  %v1927_v4 = vld [vmem:[%s4091_s5 + $0x58] sm:$0xff]  ;;  %v1944_v61 = vld [vmem:[%s4091_s5 + $0xe0] sm:$0xff]  ;;  %2086 = vmatpush.msra.mxu0 %v1961_v53 }
 0x3b0   : > { %v1976_v11 = vld [vmem:[%s4091_s5 + $0x1e0] sm:$0xff]  ;;  %2048 = vmatpush.msrb.mxu1 %v1927_v4  ;;  %2067 = vmatpush.msra.mxu3 %v1944_v61  ;;  %v1966_v4 = vld [vmem:[%s4091_s5 + $0x190] sm:$0xff] }
 0x3b1   : > { %v1805_v42 = vpop.permute.xlu1 %1804  ;;  %2087 = vmatpush.msra.mxu0 %v1960_v25  ;;  %2107 = vmatpush.msrb.mxu2 %v1976_v11  ;;  %v1916_v25 = vld [vmem:[%s4091_s5] sm:$0xff]  ;;  %v1933_v11 = vld [vmem:[%s4091_s5 + $0x88] sm:$0xff] }
 0x3b2   : > { %v1803_v44 = vpop.permute.xlu0 %1802 }
 0x3b3   : > { %v1806_v22 = vsel %vm1454_vm13, %v1803_v44, %v1805_v42 }
 0x3b4   : > { %v3581_v50 = vmax.f32 %v1800_v12, %v1806_v22  ;;  %v3583_v19 = vmin.f32 %v1801_v27, %v1806_v22  ;;  %v1926_v12 = vld [vmem:[%s4091_s5 + $0x50] sm:$0xff]  ;;  %v1943_v27 = vld [vmem:[%s4091_s5 + $0xd8] sm:$0xff] }
 0x3b5   : > { %v1959_v22 = vld [vmem:[%s4091_s5 + $0x158] sm:$0xff]  ;;  %2049 = vmatpush.msrb.mxu1 %v1926_v12  ;;  %2068 = vmatpush.msra.mxu3 %v1943_v27  ;;  %v1932_v27 = vld [vmem:[%s4091_s5 + $0x80] sm:$0xff] }
 0x3b6   : > { %v1811_v20 = vmul.f32 0.70710677, %v3581_v50  ;;  %v1841_v21 = vmul.f32 0.70710677, %v3583_v19  ;;  %2088 = vmatpush.msra.mxu0 %v1959_v22  ;;  %v1995_v12 = vld [vmem:[%s4091_s5 + $0x278] sm:$0xff] }
 0x3b8   : > { %v3587_v32 = vclamps-f32 %v1811_v20, 3.832507  ;;  %v3589_v49 = vclamps-f32 %v1841_v21, 3.832507  ;;  %v1975_v20 = vld [vmem:[%s4091_s5 + $0x1d8] sm:$0xff] }
 0x3b9   : > { %2108 = vmatpush.msrb.mxu2 %v1975_v20 }
 0x3ba   : > { %v3593_v39 = vmul.f32 %v3587_v32, %v3587_v32  ;;  %v3597_v15 = vmul.f32 %v3589_v49, %v3589_v49 }
 0x3bc   : > { %v1815_v38 = vmul.f32 -2.7261424e-10, %v3593_v39  ;;  %v1828_v7 = vmul.f32 -1.45660715e-05, %v3593_v39  ;;  %v1845_v9 = vmul.f32 -2.7261424e-10, %v3597_v15 }
 0x3bd   : > { %v1858_v8 = vmul.f32 -1.45660715e-05, %v3597_v15 }
 0x3be   : > { %v1816_v43 = vadd.f32 2.7706815e-08, %v1815_v38  ;;  %v1829_v17 = vadd.f32 -0.00021337405, %v1828_v7  ;;  %v1846_v28 = vadd.f32 2.7706815e-08, %v1845_v9 }
 0x3bf   : > { %v1859_v30 = vadd.f32 -0.00021337405, %v1858_v8  ;;  %v1925_v7 = vld [vmem:[%s4091_s5 + $0x48] sm:$0xff]  ;;  %v1942_v9 = vld [vmem:[%s4091_s5 + $0xd0] sm:$0xff] }
 0x3c0   : > { %v1817_v34 = vmul.f32 %v1816_v43, %v3593_v39  ;;  %v1830_v55 = vmul.f32 %v1829_v17, %v3593_v39  ;;  %v1847_v6 = vmul.f32 %v1846_v28, %v3597_v15  ;;  %v1958_v8 = vld [vmem:[%s4091_s5 + $0x150] sm:$0xff]  ;;  %2050 = vmatpush.msrb.mxu1 %v1925_v7  ;;  %2069 = vmatpush.msra.mxu3 %v1942_v9  ;;  %v1924_v17 = vld [vmem:[%s4091_s5 + $0x40] sm:$0xff]  ;;  %v1941_v28 = vld [vmem:[%s4091_s5 + $0xc8] sm:$0xff] }
 0x3c1   : > { %v1860_v14 = vmul.f32 %v1859_v30, %v3597_v15  ;;  %2089 = vmatpush.msra.mxu0 %v1958_v8  ;;  %v1957_v30 = vld [vmem:[%s4091_s5 + $0x148] sm:$0xff]  ;;  %v1994_v7 = vld [vmem:[%s4091_s5 + $0x270] sm:$0xff]  ;;  %v2011_v9 = vld [vmem:[%s4091_s5 + $0x2f8] sm:$0xff] }
 0x3c2   : > { %v1818_v10 = vadd.f32 -2.101024e-06, %v1817_v34  ;;  %v1831_v23 = vadd.f32 -0.001682827, %v1830_v55  ;;  %v1848_v35 = vadd.f32 -2.101024e-06, %v1847_v6  ;;  %2051 = vmatpush.msrb.mxu1 %v1924_v17  ;;  %2070 = vmatpush.msra.mxu3 %v1941_v28 }
 0x3c3   : > { %v1861_v24 = vadd.f32 -0.001682827, %v1860_v14  ;;  %v1973_v34 = vld [vmem:[%s4091_s5 + $0x1c8] sm:$0xff]  ;;  %2090 = vmatpush.msra.mxu0 %v1957_v30  ;;  %v2010_v28 = vld [vmem:[%s4091_s5 + $0x2f0] sm:$0xff] }
 0x3c4   : > { %v1819_v26 = vmul.f32 %v1818_v10, %v3593_v39  ;;  %v1832_v29 = vmul.f32 %v1831_v23, %v3593_v39  ;;  %v1849_v45 = vmul.f32 %v1848_v35, %v3597_v15  ;;  %v1923_v10 = vld [vmem:[%s4091_s5 + $0x38] sm:$0xff]  ;;  %v1940_v23 = vld [vmem:[%s4091_s5 + $0xc0] sm:$0xff]  ;;  %v1993_v17 = vld [vmem:[%s4091_s5 + $0x268] sm:$0xff] }
 0x3c5   : > { %v1862_v40 = vmul.f32 %v1861_v24, %v3597_v15  ;;  %v1956_v35 = vld [vmem:[%s4091_s5 + $0x140] sm:$0xff]  ;;  %2052 = vmatpush.msrb.mxu1 %v1923_v10  ;;  %2071 = vmatpush.msra.mxu3 %v1940_v23  ;;  %v2009_v10 = vld [vmem:[%s4091_s5 + $0x2e8] sm:$0xff] }
 0x3c6   : > { %v1820_v37 = vadd.f32 -5.6925062e-05, %v1819_v26  ;;  %v1833_v57 = vadd.f32 -0.0073733293, %v1832_v29  ;;  %v1850_v51 = vadd.f32 -5.6925062e-05, %v1849_v45  ;;  %2091 = vmatpush.msra.mxu0 %v1956_v35 }
 0x3c7   : > { %v1863_v18 = vadd.f32 -0.0073733293, %v1862_v40  ;;  %v1922_v29 = vld [vmem:[%s4091_s5 + $0x30] sm:$0xff]  ;;  %v1939_v45 = vld [vmem:[%s4091_s5 + $0xb8] sm:$0xff]  ;;  %v1810_v40 = vmul.f32 0.5, %v3581_v50 }
 0x3c8   : > { %v1821_v36 = vmul.f32 %v1820_v37, %v3593_v39  ;;  %v1834_v46 = vmul.f32 %v1833_v57, %v3593_v39  ;;  %v1851_v56 = vmul.f32 %v1850_v51, %v3597_v15  ;;  %v1971_v37 = vld [vmem:[%s4091_s5 + $0x1b8] sm:$0xff]  ;;  %v1840_v51 = vmul.f32 0.5, %v3583_v19  ;;  %2053 = vmatpush.msrb.mxu1 %v1922_v29  ;;  %2072 = vmatpush.msra.mxu3 %v1939_v45  ;;  %v1938_v50 = vld [vmem:[%s4091_s5 + $0xb0] sm:$0xff] }
 0x3c9   : > { %v1864_v59 = vmul.f32 %v1863_v18, %v3597_v15  ;;  %2092 = vmatpush.msra.mxu0 %v1955_v60  ;;  %v1970_v19 = vld [vmem:[%s4091_s5 + $0x1b0] sm:$0xff]  ;;  %v2024_v60 = vld [vmem:[%s4091_s5 + $0x360] sm:$0xff] }
 0x3ca   : > { %v1822_v63 = vadd.f32 -0.00073499064, %v1821_v36  ;;  %v1835_v33 = vadd.f32 -0.014264739, %v1834_v46  ;;  %v1852_v52 = vadd.f32 -0.00073499064, %v1851_v56  ;;  %2054 = vmatpush.msrb.mxu1 %v1921_v41  ;;  %2073 = vmatpush.msra.mxu3 %v1938_v50 }
 0x3cb   : > { %v1865_v5 = vadd.f32 -0.014264739, %v1864_v59  ;;  %v1920_v46 = vld [vmem:[%s4091_s5 + $0x20] sm:$0xff]  ;;  %v1937_v56 = vld [vmem:[%s4091_s5 + $0xa8] sm:$0xff]  ;;  %2093 = vmatpush.msra.mxu0 %v1954_v47  ;;  %v1919_v59 = vld [vmem:[%s4091_s5 + $0x18] sm:$0xff] }
 0x3cc   : > { %v1823_v3 = vmul.f32 %v1822_v63, %v3593_v39  ;;  %v1853_v16 = vmul.f32 %v1852_v52, %v3597_v15  ;;  %2695 = vrcp.f32 %v1835_v33  ;;  %2055 = vmatpush.msrb.mxu1 %v1920_v46  ;;  %2074 = vmatpush.msra.mxu3 %v1937_v56  ;;  %v1968_v63 = vld [vmem:[%s4091_s5 + $0x1a0] sm:$0xff]  ;;  %v1918_v52 = vld [vmem:[%s4091_s5 + $0x10] sm:$0xff]  ;;  %v2023_v41 = vld [vmem:[%s4091_s5 + $0x358] sm:$0xff] }
 0x3cd   : > { %2697 = vrcp.f32 %v1865_v5  ;;  %2094 = vmatpush.msra.mxu0 %v1953_v54  ;;  %v1935_v5 = vld [vmem:[%s4091_s5 + $0x98] sm:$0xff]  ;;  %v1989_v47 = vld [vmem:[%s4091_s5 + $0x248] sm:$0xff]  ;;  %v2022_v46 = vld [vmem:[%s4091_s5 + $0x350] sm:$0xff] }
 0x3ce   : > { %v1824_v42 = vadd.f32 -0.0029546, %v1823_v3  ;;  %v1854_v44 = vadd.f32 -0.0029546, %v1853_v16  ;;  %2056 = vmatpush.msrb.mxu1 %v1919_v59  ;;  %2075 = vmatpush.msra.mxu3 %v1936_v62  ;;  %v1917_v3 = vld [vmem:[%s4091_s5 + $0x8] sm:$0xff]  ;;  %v1934_v16 = vld [vmem:[%s4091_s5 + $0x90] sm:$0xff] }
 0x3cf   : > { %2095 = vmatpush.msra.mxu0 %v1952_v31  ;;  %v2039_v50 = vld [vmem:[%s4091_s5 + $0x3d8] sm:$0xff]  ;;  %v2038_v56 = vld [vmem:[%s4091_s5 + $0x3d0] sm:$0xff]  ;;  %v1988_v54 = vld [vmem:[%s4091_s5 + $0x240] sm:$0xff] }
 0x3d0   : > { %v1825_v21 = vmul.f32 %v1824_v42, %v3593_v39  ;;  %v1855_v38 = vmul.f32 %v1854_v44, %v3597_v15  ;;  %v1974_v39 = vld [vmem:[%s4091_s5 + $0x1d0] sm:$0xff]  ;;  %2057 = vmatpush.msrb.mxu1 %v1918_v52  ;;  %2076 = vmatpush.msra.mxu3 %v1935_v5  ;;  %v1949_v42 = vld [vmem:[%s4091_s5 + $0x108] sm:$0xff]  ;;  %v2004_v52 = vld [vmem:[%s4091_s5 + $0x2c0] sm:$0xff] }
 0x3d1   : > { %2109 = vmatpush.msrb.mxu2 %v1974_v39  ;;  %2096 = vmatpush.msra.mxu0 %v1951_v0  ;;  %v1965_v44 = vld [vmem:[%s4091_s5 + $0x188] sm:$0xff]  ;;  %v2020_v0 = vld [vmem:[%s4091_s5 + $0x340] sm:$0xff] }
 0x3d2   : > { %v1826_v15 = vadd.f32 -0.016096033, %v1825_v21  ;;  %v1856_v43 = vadd.f32 -0.016096033, %v1855_v38  ;;  %v2696_v55 = vpop.eup %2695  ;;  %2058 = vmatpush.msrb.mxu1 %v1917_v3  ;;  %2077 = vmatpush.msra.mxu3 %v1934_v16  ;;  %v1948_v21 = vld [vmem:[%s4091_s5 + $0x100] sm:$0xff]  ;;  %v2021_v62 = vld [vmem:[%s4091_s5 + $0x348] sm:$0xff] }
 0x3d3   : > { %v2698_v24 = vpop.eup %2697  ;;  %2110 = vmatpush.msrb.mxu2 %v1973_v34  ;;  %2097 = vmatpush.msra.mxu0 %v1950_v58  ;;  %v1964_v38 = vld [vmem:[%s4091_s5 + $0x180] sm:$0xff]  ;;  %v2037_v31 = vld [vmem:[%s4091_s5 + $0x3c8] sm:$0xff]  ;;  %v1986_v3 = vld [vmem:[%s4091_s5 + $0x230] sm:$0xff] }
 0x3d4   : > { %v1827_v6 = vmul.f32 %v3587_v32, %v1826_v15  ;;  %v1857_v14 = vmul.f32 %v3589_v49, %v1856_v43  ;;  %v1972_v32 = vld [vmem:[%s4091_s5 + $0x1c0] sm:$0xff]  ;;  %2059 = vmatpush.msrb.mxu1 %v1916_v25  ;;  %2078 = vmatpush.msra.mxu3 %v1933_v11  ;;  %v2027_v15 = vld [vmem:[%s4091_s5 + $0x378] sm:$0xff]  ;;  %v1985_v11 = vld [vmem:[%s4091_s5 + $0x228] sm:$0xff] }
 0x3d5   : > { %2111 = vmatpush.msrb.mxu2 %v1972_v32  ;;  %2098 = vmatpush.msra.mxu0 %v1949_v42  ;;  %v2043_v43 = vld [vmem:[%s4091_s5 + $0x3f8] sm:$0xff]  ;;  %v2041_v32 = vld [vmem:[%s4091_s5 + $0x3e8] sm:$0xff]  ;;  %v2002_v42 = vld [vmem:[%s4091_s5 + $0x2b0] sm:$0xff] }
 0x3d6   : > { %v1837_v49 = vmul.f32 %v2696_v55, %v1827_v6  ;;  %v1867_v26 = vmul.f32 %v2698_v24, %v1857_v14  ;;  %2124 = vmatpush.msra.mxu1 %v1995_v12  ;;  %2079 = vmatpush.msra.mxu3 %v1932_v27  ;;  %v2026_v55 = vld [vmem:[%s4091_s5 + $0x370] sm:$0xff]  ;;  %v1992_v14 = vld [vmem:[%s4091_s5 + $0x260] sm:$0xff]  ;;  %v2025_v24 = vld [vmem:[%s4091_s5 + $0x368] sm:$0xff] }
 0x3d7   : > { %2112 = vmatpush.msrb.mxu2 %v1971_v37  ;;  %2099 = vmatpush.msra.mxu0 %v1948_v21  ;;  %v2042_v6 = vld [vmem:[%s4091_s5 + $0x3f0] sm:$0xff]  ;;  %v2003_v16 = vld [vmem:[%s4091_s5 + $0x2b8] sm:$0xff]  ;;  %v2017_v21 = vld [vmem:[%s4091_s5 + $0x328] sm:$0xff] }
 0x3d8   : > { %v1838_v57 = vadd.f32 1.0, %v1837_v49  ;;  %v1868_v18 = vadd.f32 1.0, %v1867_v26  ;;  %2125 = vmatpush.msra.mxu1 %v1994_v7  ;;  %2144 = vmatpush.msrb.mxu3 %v2011_v9  ;;  %v1991_v49 = vld [vmem:[%s4091_s5 + $0x258] sm:$0xff]  ;;  %v2008_v26 = vld [vmem:[%s4091_s5 + $0x2e0] sm:$0xff]  ;;  %v1990_v37 = vld [vmem:[%s4091_s5 + $0x250] sm:$0xff] }
 0x3d9   : > { %2113 = vmatpush.msrb.mxu2 %v1970_v19  ;;  %2164 = vmatpush.msrb.mxu0 %v2027_v15  ;;  %v2006_v19 = vld [vmem:[%s4091_s5 + $0x2d0] sm:$0xff]  ;;  %v2035_v25 = vld [vmem:[%s4091_s5 + $0x3b8] sm:$0xff]  ;;  %v2000_v9 = vld [vmem:[%s4091_s5 + $0x2a0] sm:$0xff] }
 0x3da   : > { %v1839_v1 = vmul.f32 %v1838_v57, %v1810_v40  ;;  %v1869_v36 = vmul.f32 %v1868_v18, %v1840_v51  ;;  %2126 = vmatpush.msra.mxu1 %v1993_v17  ;;  %2145 = vmatpush.msrb.mxu3 %v2010_v28  ;;  %v2040_v40 = vld [vmem:[%s4091_s5 + $0x3e0] sm:$0xff]  ;;  %v2007_v57 = vld [vmem:[%s4091_s5 + $0x2d8] sm:$0xff]  ;;  %v2018_v12 = vld [vmem:[%s4091_s5 + $0x330] sm:$0xff] }
 0x3db   : > { %2114 = vmatpush.msrb.mxu2 %v1969_v13  ;;  %2165 = vmatpush.msrb.mxu0 %v2026_v55  ;;  %v2005_v13 = vld [vmem:[%s4091_s5 + $0x2c8] sm:$0xff]  ;;  %v2034_v27 = vld [vmem:[%s4091_s5 + $0x3b0] sm:$0xff]  ;;  %v1983_v7 = vld [vmem:[%s4091_s5 + $0x218] sm:$0xff] }
 0x3dc   : > { %v3758_v48 = vmax.f32 %v1839_v1, %v1869_v36  ;;  %2127 = vmatpush.msra.mxu1 %v1992_v14  ;;  %2146 = vmatpush.msrb.mxu3 %v2009_v10  ;;  %v2032_v15 = vld [vmem:[%s4091_s5 + $0x3a0] sm:$0xff]  ;;  %v1982_v17 = vld [vmem:[%s4091_s5 + $0x210] sm:$0xff]  ;;  %v1981_v55 = vld [vmem:[%s4091_s5 + $0x208] sm:$0xff] }
 0x3dd   : > { %2115 = vmatpush.msrb.mxu2 %v1968_v63  ;;  %2166 = vmatpush.msrb.mxu0 %v2025_v24  ;;  %v1997_v24 = vld [vmem:[%s4091_s5 + $0x288] sm:$0xff] }
 0x3de   : > { %v1872_v33 = vmul.f32 0.70710677, %v3758_v48  ;;  %2128 = vmatpush.msra.mxu1 %v1991_v49  ;;  %2147 = vmatpush.msrb.mxu3 %v2008_v26  ;;  %v1871_v14 = vmul.f32 0.5, %v3758_v48  ;;  %v1980_v48 = vld [vmem:[%s4091_s5 + $0x200] sm:$0xff]  ;;  %v2013_v49 = vld [vmem:[%s4091_s5 + $0x308] sm:$0xff] }
 0x3df   : > { %2116 = vmatpush.msrb.mxu2 %v1967_v2  ;;  %2167 = vmatpush.msrb.mxu0 %v2024_v60  ;;  %v2036_v2 = vld [vmem:[%s4091_s5 + $0x3c0] sm:$0xff] }
 0x3e0   : > { %v3785_v53 = vclamps-f32 %v1872_v33, 3.832507  ;;  %2129 = vmatpush.msra.mxu1 %v1990_v37  ;;  %2148 = vmatpush.msrb.mxu3 %v2007_v57  ;;  %v1987_v33 = vld [vmem:[%s4091_s5 + $0x238] sm:$0xff]  ;;  %v1996_v60 = vld [vmem:[%s4091_s5 + $0x280] sm:$0xff] }
 0x3e1   : > { %2117 = vmatpush.msrb.mxu2 %v1966_v4  ;;  %2168 = vmatpush.msrb.mxu0 %v2023_v41  ;;  %v2019_v4 = vld [vmem:[%s4091_s5 + $0x338] sm:$0xff]  ;;  %v2012_v37 = vld [vmem:[%s4091_s5 + $0x300] sm:$0xff] }
 0x3e2   : > { %v3801_v61 = vmul.f32 %v3785_v53, %v3785_v53  ;;  %2130 = vmatpush.msra.mxu1 %v1989_v47  ;;  %2149 = vmatpush.msrb.mxu3 %v2006_v19  ;;  %v2028_v57 = vld [vmem:[%s4091_s5 + $0x380] sm:$0xff] }
 0x3e3   : > { %2118 = vmatpush.msrb.mxu2 %v1965_v44  ;;  %2169 = vmatpush.msrb.mxu0 %v2022_v46 }
 0x3e4   : > { %v1876_v22 = vmul.f32 -2.7261424e-10, %v3801_v61  ;;  %v1889_v20 = vmul.f32 -1.45660715e-05, %v3801_v61  ;;  %2131 = vmatpush.msra.mxu1 %v1988_v54  ;;  %2150 = vmatpush.msrb.mxu3 %v2005_v13 }
 0x3e5   : > { %2119 = vmatpush.msrb.mxu2 %v1964_v38  ;;  %2170 = vmatpush.msrb.mxu0 %v2021_v62  ;;  %v2033_v38 = vld [vmem:[%s4091_s5 + $0x3a8] sm:$0xff] }
 0x3e6   : > { %v1877_v8 = vadd.f32 2.7706815e-08, %v1876_v22  ;;  %v1890_v39 = vadd.f32 -0.00021337405, %v1889_v20  ;;  %2132 = vmatpush.msra.mxu1 %v1987_v33  ;;  %2151 = vmatpush.msrb.mxu3 %v2004_v52  ;;  %v1984_v22 = vld [vmem:[%s4091_s5 + $0x220] sm:$0xff] }
 0x3e7   : > { %2184 = vmatpush.msra.mxu2 %v2043_v43  ;;  %2171 = vmatpush.msrb.mxu0 %v2020_v0 }
 0x3e8   : > { %v1878_v30 = vmul.f32 %v1877_v8, %v3801_v61  ;;  %v1891_v34 = vmul.f32 %v1890_v39, %v3801_v61  ;;  %2133 = vmatpush.msra.mxu1 %v1986_v3  ;;  %2152 = vmatpush.msrb.mxu3 %v2003_v16  ;;  %v2016_v39 = vld [vmem:[%s4091_s5 + $0x320] sm:$0xff] }
 0x3e9   : > { %2185 = vmatpush.msra.mxu2 %v2042_v6  ;;  %2172 = vmatpush.msrb.mxu0 %v2019_v4  ;;  %v1998_v6 = vld [vmem:[%s4091_s5 + $0x290] sm:$0xff] }
 0x3ea   : > { %v1879_v23 = vadd.f32 -2.101024e-06, %v1878_v30  ;;  %v1892_v35 = vadd.f32 -0.001682827, %v1891_v34  ;;  %2134 = vmatpush.msra.mxu1 %v1985_v11  ;;  %2153 = vmatpush.msrb.mxu3 %v2002_v42  ;;  %v2015_v30 = vld [vmem:[%s4091_s5 + $0x318] sm:$0xff] }
 0x3eb   : > { %2186 = vmatpush.msra.mxu2 %v2041_v32  ;;  %2173 = vmatpush.msrb.mxu0 %v2018_v12  ;;  %v2031_v34 = vld [vmem:[%s4091_s5 + $0x398] sm:$0xff]  ;;  %v2220_v11 = vld [vmem:[%s4092_s6] sm:$0x1] }
 0x3ec   : > { %v1880_v29 = vmul.f32 %v1879_v23, %v3801_v61  ;;  %v1893_v45 = vmul.f32 %v1892_v35, %v3801_v61  ;;  %2135 = vmatpush.msra.mxu1 %v1984_v22  ;;  %v2014_v23 = vld [vmem:[%s4091_s5 + $0x310] sm:$0xff] }
 0x3ed   : > { %2187 = vmatpush.msra.mxu2 %v2040_v40  ;;  %2174 = vmatpush.msrb.mxu0 %v2017_v21  ;;  %v2030_v35 = vld [vmem:[%s4091_s5 + $0x390] sm:$0xff]  ;;  %v2029_v40 = vld [vmem:[%s4091_s5 + $0x388] sm:$0xff] }
 0x3ee   : > { %v1881_v51 = vadd.f32 -5.6925062e-05, %v1880_v29  ;;  %v1894_v18 = vadd.f32 -0.0073733293, %v1893_v45  ;;  %2136 = vmatpush.msra.mxu1 %v1983_v7  ;;  %v2253_v7 = vld [vmem:[%s4093_s7 + $0x8] sm:$0xff] }
 0x3ef   : > { %2188 = vmatpush.msra.mxu2 %v2039_v50  ;;  %2175 = vmatpush.msrb.mxu0 %v2016_v39  ;;  %v2252_v39 = vld [vmem:[%s4093_s7] sm:$0xff] }
 0x3f0   : > { %v1882_v1 = vmul.f32 %v1881_v51, %v3801_v61  ;;  %v1895_v36 = vmul.f32 %v1894_v18, %v3801_v61  ;;  %2137 = vmatpush.msra.mxu1 %v1982_v17 }
 0x3f1   : > { %2189 = vmatpush.msra.mxu2 %v2038_v56  ;;  %2176 = vmatpush.msrb.mxu0 %v2015_v30 }
 0x3f2   : > { %v1883_v59 = vadd.f32 -0.00073499064, %v1882_v1  ;;  %v1896_v63 = vadd.f32 -0.014264739, %v1895_v36  ;;  %2138 = vmatpush.msra.mxu1 %v1981_v55 }
 0x3f3   : > { %2190 = vmatpush.msra.mxu2 %v2037_v31  ;;  %2177 = vmatpush.msrb.mxu0 %v2014_v23 }
 0x3f4   : > { %v1884_v5 = vmul.f32 %v1883_v59, %v3801_v61  ;;  %2699 = vrcp.f32 %v1896_v63  ;;  %2139 = vmatpush.msra.mxu1 %v1980_v48 }
 0x3f5   : > { %2191 = vmatpush.msra.mxu2 %v2036_v2  ;;  %2178 = vmatpush.msrb.mxu0 %v2013_v49 }
 0x3f6   : > { %v1885_v58 = vadd.f32 -0.0029546, %v1884_v5 }
 0x3f7   : > { %2192 = vmatpush.msra.mxu2 %v2035_v25  ;;  %2179 = vmatpush.msrb.mxu0 %v2012_v37  ;;  %v2256_v37 = vld [vmem:[%s4094_s8] sm:$0x1] }
 0x3f8   : > { %v1886_v44 = vmul.f32 %v1885_v58, %v3801_v61  ;;  %v2001_v61 = vld [vmem:[%s4091_s5 + $0x2a8] sm:$0xff] }
 0x3f9   : > { %2193 = vmatpush.msra.mxu2 %v2034_v27  ;;  %2154 = vmatpush.msrb.mxu3 %v2001_v61  ;;  %v2255_v61 = vld [vmem:[%s4093_s7 + $0x18] sm:$0xff] }
 0x3fa   : > { %v1887_v20 = vadd.f32 -0.016096033, %v1886_v44  ;;  %v2700_v43 = vpop.eup %2699 }
 0x3fb   : > { %2194 = vmatpush.msra.mxu2 %v2033_v38  ;;  %2155 = vmatpush.msrb.mxu3 %v2000_v9 }
 0x3fc   : > { %v1888_v8 = vmul.f32 %v3785_v53, %v1887_v20  ;;  %v1999_v53 = vld [vmem:[%s4091_s5 + $0x298] sm:$0xff]  ;;  %v2254_v20 = vld [vmem:[%s4093_s7 + $0x10] sm:$0xff] }
 0x3fd   : > { %2195 = vmatpush.msra.mxu2 %v2032_v15  ;;  %2156 = vmatpush.msrb.mxu3 %v1999_v53 }
 0x3fe   : > { %v1898_v28 = vmul.f32 %v2700_v43, %v1888_v8 }
 0x3ff   : > { %2196 = vmatpush.msra.mxu2 %v2031_v34  ;;  %2157 = vmatpush.msrb.mxu3 %v1998_v6 }
 0x400   : > { %v1899_v10 = vadd.f32 1.0, %v1898_v28 }
 0x401   : > { %2197 = vmatpush.msra.mxu2 %v2030_v35  ;;  %2158 = vmatpush.msrb.mxu3 %v1997_v24 }
 0x402   : > { %v1900_v32 = vmul.f32 %v1899_v10, %v1871_v14 }
 0x403   : > { %2159 = vmatpush.msrb.mxu3 %v1996_v60  ;;  %2198 = vmatpush.msra.mxu2 %v2029_v40 }
 0x404   : > { %2060 = vmatmul.f32.vlgmr.msrb.gmra.mxu1 %v1900_v32  ;;  %v1902_v26 = vrot.slane %v1900_v32, 1  ;;  %v1903_v29 = vrot.slane %v1900_v32, 2  ;;  %v1904_v45 = vrot.slane %v1900_v32, 3  ;;  %v1905_v51 = vrot.slane %v1900_v32, 4 }
 0x405   : > { %2199 = vmatpush.msra.mxu2 %v2028_v57  ;;  %v1906_v18 = vrot.slane %v1900_v32, 5  ;;  %v1907_v41 = vrot.slane %v1900_v32, 6  ;;  %v1908_v50 = vrot.slane %v1900_v32, 7  ;;  %2273 = vmatpush.msrb.mxu1 %v2255_v61 }
 0x406   : > { %2080 = vmatmul.f32.vlgmr.msra.gmra.mxu3 %v1902_v26  ;;  %2100 = vmatmul.f32.vlgmr.msra.gmra.mxu0 %v1903_v29 }
 0x407   : > { %2120 = vmatmul.f32.vlgmr.msrb.gmra.mxu2 %v1904_v45  ;;  %2274 = vmatpush.msrb.mxu1 %v2254_v20 }
 0x409   : > { %2275 = vmatpush.msrb.mxu1 %v2253_v7 }
 0x40b   : > { %2276 = vmatpush.msrb.mxu1 %v2252_v39 }
 0x40c   : > { %2140 = vmatmul.f32.vlgmr.msra.gmra.mxu1 %v1905_v51 }
 0x40e   : > { %2160 = vmatmul.f32.vlgmr.msrb.gmra.mxu3 %v1906_v18  ;;  %2180 = vmatmul.f32.vlgmr.msrb.gmra.mxu0 %v1907_v41 }
 0x40f   : > { %2200 = vmatmul.f32.vlgmr.msra.gmra.mxu2 %v1908_v50 }
 0x481   : > { %v2061_v47 = vpop.f32.mrf.mxu1 }
 0x482   : > { %v2205_v36 = vsel %vm2204_vm5, %v2061_v47, 0.0 }
 0x483   : > { %v2101_v19 = vpop.f32.mrf.mxu0 }
 0x484   : > { %v2208_v13 = vsel %vm2204_vm5, %v2101_v19, 0.0 }
 0x489   : > { %v2081_v1 = vpop.f32.mrf.mxu3  ;;  %v2141_v62 = vpop.f32.mrf.mxu1 }
 0x48a   : > { %v2206_v46 = vsel %vm2204_vm5, %v2081_v1, 0.0  ;;  %v2121_v56 = vpop.f32.mrf.mxu2  ;;  %v2212_v33 = vsel %vm2204_vm5, %v2141_v62, 0.0 }
 0x48b   : > { %v2207_v54 = vadd.f32 %v2206_v46, %v2205_v36  ;;  %v2210_v31 = vsel %vm2204_vm5, %v2121_v56, 0.0  ;;  %v2181_v5 = vpop.f32.mrf.mxu0 }
 0x48c   : > { %v2216_v58 = vsel %vm2204_vm5, %v2181_v5, 0.0 }
 0x48d   : > { %v2209_v59 = vadd.f32 %v2208_v13, %v2207_v54 }
 0x48f   : > { %v2211_v63 = vadd.f32 %v2210_v31, %v2209_v59 }
 0x491   : > { %v2213_v52 = vadd.f32 %v2212_v33, %v2211_v63  ;;  %v2161_v0 = vpop.f32.mrf.mxu3 }
 0x492   : > { %v2214_v2 = vsel %vm2204_vm5, %v2161_v0, 0.0  ;;  %v2201_v16 = vpop.f32.mrf.mxu2 }
 0x493   : > { %v2215_v3 = vadd.f32 %v2214_v2, %v2213_v52  ;;  %v2218_v25 = vsel %vm2204_vm5, %v2201_v16, 0.0 }
 0x495   : > { %v2217_v4 = vadd.f32 %v2216_v58, %v2215_v3 }
 0x497   : > { %v2219_v42 = vadd.f32 %v2218_v25, %v2217_v4 }
 0x499   : > { %v2221_v44 = vadd.f32 %v2220_v11, %v2219_v42 }
 0x49b   : > { %v2223_v12 = vmul.f32 0.70710677, %v2221_v44  ;;  %v2222_v45 = vmul.f32 0.5, %v2221_v44 }
 0x49d   : > { %v2417_v27 = vclamps-f32 %v2223_v12, 3.832507 }
 0x49f   : > { %v2226_v22 = vmul.f32 %v2417_v27, %v2417_v27 }
 0x4a1   : > { %v2227_v21 = vmul.f32 -2.7261424e-10, %v2226_v22  ;;  %v2240_v38 = vmul.f32 -1.45660715e-05, %v2226_v22 }
 0x4a3   : > { %v2228_v9 = vadd.f32 2.7706815e-08, %v2227_v21  ;;  %v2241_v8 = vadd.f32 -0.00021337405, %v2240_v38 }
 0x4a5   : > { %v2229_v15 = vmul.f32 %v2228_v9, %v2226_v22  ;;  %v2242_v43 = vmul.f32 %v2241_v8, %v2226_v22 }
 0x4a7   : > { %v2230_v17 = vadd.f32 -2.101024e-06, %v2229_v15  ;;  %v2243_v53 = vadd.f32 -0.001682827, %v2242_v43 }
 0x4a9   : > { %v2231_v28 = vmul.f32 %v2230_v17, %v2226_v22  ;;  %v2244_v30 = vmul.f32 %v2243_v53, %v2226_v22 }
 0x4ab   : > { %v2232_v34 = vadd.f32 -5.6925062e-05, %v2231_v28  ;;  %v2245_v55 = vadd.f32 -0.0073733293, %v2244_v30 }
 0x4ad   : > { %v2233_v6 = vmul.f32 %v2232_v34, %v2226_v22  ;;  %v2246_v14 = vmul.f32 %v2245_v55, %v2226_v22 }
 0x4af   : > { %v2234_v10 = vadd.f32 -0.00073499064, %v2233_v6  ;;  %v2247_v23 = vadd.f32 -0.014264739, %v2246_v14 }
 0x4b1   : > { %v2235_v35 = vmul.f32 %v2234_v10, %v2226_v22  ;;  %2701 = vrcp.f32 %v2247_v23 }
 0x4b3   : > { %v2236_v24 = vadd.f32 -0.0029546, %v2235_v35 }
 0x4b5   : > { %v2237_v32 = vmul.f32 %v2236_v24, %v2226_v22 }
 0x4b7   : > { %v2238_v48 = vadd.f32 -0.016096033, %v2237_v32  ;;  %v2702_v26 = vpop.eup %2701 }
 0x4b9   : > { %v2239_v49 = vmul.f32 %v2417_v27, %v2238_v48 }
 0x4bb   : > { %v2249_v29 = vmul.f32 %v2702_v26, %v2239_v49 }
 0x4bd   : > { %v2250_v60 = vadd.f32 1.0, %v2249_v29 }
 0x4bf   : > { %v2251_v40 = vmul.f32 %v2250_v60, %v2222_v45 }
 0x4c1   : > { %2418 = vmatmul.msk.f32.vlgmr.msrb.gmra.mxu1 %vm2257_vm9, %v2251_v40 }
 0x53e   : > { %v2278_v57 = vpop.f32.mrf.mxu1 }
 0x53f   : > { %v2279_v51 = vadd.f32 %v2278_v57, %v2256_v37 }
 0x541   : > { %2281 = vst [vmem:[%s324_s23] sm:$0x1] %v2279_v51 }
 0x542   : > { %2730 = shalt.err (!%p2727_p3)
}
 0x543   : > { %2422 = dma.vmem_to_hbm [thread:$0]  (%p2879_p5), %s2294_s25, 16, %s2296_s21, %s2283_s27  }
 0x544 PF: > { %p2428_p4 = scmp.ge.s32.totalorder %s2765_s12, 2  ;;  %s2307_s29 = sand.u32 1, %s2753_s30  }
 0x545   : > { %s2308_s24 = scalar_lea.sflag [#allocation5], %s2307_s29 }
 0x546   : > { %p2425_p7 = pnand %p2428_p4, %p2883_p6 }
 0x548   : > { %p2426_p8 = pneg %p2425_p7 }
 0x54a   : > { %2748 = dma.done.wait (%p2426_p8), %s2308_s24, 16  }
 0x54b   : > { %2750 = vsyncadd (%p2426_p8), %s2308_s24, 4294967280  ;;  %p19_p9 = scmp.ge.s32.totalorder %s2866_s15, 4   ;;  %s4130_s30 = smov %s2757_s10 }
 0x54c   : > { %s4131_s10 = smov %s2761_s11  ;;  %s4132_s11 = smov %s2877_s18 }
 0x54d   : > { %s4133_s12 = smov %s2866_s15  ;;  %21 = sbr.rel (!%p19_p9) target bundleno = 3 (0x3), region = 91 }
 0x552   :  { %2313 = vsyncpa [#allocation5], 1 }
 0x553   :  { %2315 = vsyncpa [#allocation5 + $0x1], 1 }

</bundles_post_ra>
